<compile_context>
chip_gen: v5e
topology: v5e:2x2
jax: 0.10.0
libtpu: 0.0.40
codegen_flags: <defaults>
</compile_context>

<pallas_src>
import functools
import numpy as np
import jax
import jax.numpy as jnp
from jax.experimental import pallas as pl
from jax.experimental.pallas import tpu as pltpu


# ---------------------------------------------------------------------------
# Kernel 1: fused conv / BN / reduction path
# ---------------------------------------------------------------------------

def _yblock_main_kernel(masks_ref, bmask_ref, msf_ref, pan_ref,
                        w0m_ref, p0m_ref, w0p_ref, p0p_ref,
                        w1m_ref, p1m_ref, w1p_ref, p1p_ref,
                        we1_ref, pe1_ref, we2_ref, pe2_ref,
                        ms_o, mo_o, ps_o, po_o, e1_o, e2_o, sums_o,
                        *, img_w, batch, eps):
    masks = masks_ref[...]                     # (9, M) per-tap boundary masks
    bmask = bmask_ref[...]                     # (B, M) per-batch lane masks
    m_lanes = masks.shape[1]

    def bn(y, prm):
        # Training-mode BatchNorm over the M = B*H*W lane axis (biased variance).
        mean = jnp.mean(y, axis=1, keepdims=True)
        var = jnp.mean((y - mean) ** 2, axis=1, keepdims=True)
        yn = (y - mean) * jax.lax.rsqrt(var + eps)
        return prm[:, 1:2] * yn + prm[:, 2:3]          # gamma * yn + beta

    def taps(x):
        # 9 shifted windows of x (C, M) with zero "same" padding, built with
        # XLU lane rolls + precomputed boundary masks (no HBM im2col).
        out = []
        for t in range(9):
            dy, dx = t // 3 - 1, t % 3 - 1
            off = dy * img_w + dx
            v = x if off == 0 else pltpu.roll(x, shift=(-off) % m_lanes, axis=1)
            out.append(v * masks[t:t + 1, :])
        return out

    def conv3_bn(tap_list, w_ref, p_ref):
        # 3x3 conv = 9 accumulated (Cout, Cin) @ (Cin, M) MXU matmuls, +bias, BN.
        acc = jnp.dot(w_ref[0], tap_list[0], preferred_element_type=jnp.float32)
        for t in range(1, 9):
            acc = acc + jnp.dot(w_ref[t], tap_list[t],
                                preferred_element_type=jnp.float32)
        prm = p_ref[...]
        return bn(acc + prm[:, 0:1], prm)

    # NOTE: operands kept in f32 for exact parity with the PyTorch module; on
    # v6e/v7x the matmul operands could be cast to bf16 (f32 accumulation) for
    # higher MXU throughput at larger problem sizes.
    msf_in = msf_ref[...]                      # (ch, M)
    pan_in = pan_ref[...]

    # Stage 1 (com_conv or msf_conv0 / pan_conv0) + com_bn1 / com_bn2.
    msf_mid = conv3_bn(taps(msf_in), w0m_ref, p0m_ref)   # (2ch, M)
    pan_mid = conv3_bn(taps(pan_in), w0p_ref, p0p_ref)

    # Stage 2: sibling convs fused along Cout -> (4ch, M), then split self/other.
    msf_sc = conv3_bn(taps(msf_mid), w1m_ref, p1m_ref)
    pan_sc = conv3_bn(taps(pan_mid), w1p_ref, p1p_ref)
    c2 = msf_sc.shape[0] // 2
    msf_self, msf_other = msf_sc[:c2], msf_sc[c2:]
    pan_self, pan_other = pan_sc[:c2], pan_sc[c2:]

    # Extra 1x1 conv + BN branches (inputs are the original msf / pan).
    pe1 = pe1_ref[...]
    pe2 = pe2_ref[...]
    e1 = bn(jnp.dot(we1_ref[...], msf_in, preferred_element_type=jnp.float32)
            + pe1[:, 0:1], pe1)
    e2 = bn(jnp.dot(we2_ref[...], pan_in, preferred_element_type=jnp.float32)
            + pe2[:, 0:1], pe2)

    # Squared-difference energies reduced over H*W, per (channel, batch).
    def per_batch_sums(d):
        cols = [jnp.sum(d * bmask[b:b + 1, :], axis=1, keepdims=True)
                for b in range(batch)]
        return jnp.concatenate(cols, axis=1)            # (2ch, B)

    m_pos = per_batch_sums((msf_other - pan_self) ** 2)
    m_neg = per_batch_sums((msf_other - msf_self) ** 2)
    p_pos = per_batch_sums((pan_other - msf_self) ** 2)
    p_neg = per_batch_sums((pan_other - pan_self) ** 2)

    ms_o[...] = msf_self
    mo_o[...] = msf_other
    ps_o[...] = pan_self
    po_o[...] = pan_other
    e1_o[...] = e1
    e2_o[...] = e2
    sums_o[...] = jnp.concatenate([m_pos, m_neg, p_pos, p_neg], axis=1)  # (2ch, 4B)


# ---------------------------------------------------------------------------
# Kernel 2: gather-as-matmul fusion + extra add + ReLU (grid over batch)
# ---------------------------------------------------------------------------

def _fusion_kernel(amsf_ref, apan_ref, bpan_ref, bmsf_ref,
                   ms_ref, mo_ref, ps_ref, po_ref, e1_ref, e2_ref,
                   o1_ref, o2_ref):
    a_msf = amsf_ref[0]                        # (3ch, 2ch) one-hot selections
    a_pan = apan_ref[0]
    b_pan = bpan_ref[0]
    b_msf = bmsf_ref[0]
    f1 = (jnp.dot(a_msf, ms_ref[...], preferred_element_type=jnp.float32)
          + jnp.dot(a_pan, po_ref[...], preferred_element_type=jnp.float32))
    f2 = (jnp.dot(b_pan, ps_ref[...], preferred_element_type=jnp.float32)
          + jnp.dot(b_msf, mo_ref[...], preferred_element_type=jnp.float32))
    o1_ref[0] = jnp.maximum(f1 + e1_ref[...], 0.0)
    o2_ref[0] = jnp.maximum(f2 + e2_ref[...], 0.0)


# ---------------------------------------------------------------------------
# Wrapper helpers
# ---------------------------------------------------------------------------

def _full_spec(shape):
    return pl.BlockSpec(shape, lambda i: (0,) * len(shape))


def _prep_conv3_weight(w):
    # (Cout, Cin, 3, 3) -> (9, Cout, Cin) with tap index t = ky*3 + kx
    return jnp.transpose(w, (2, 3, 0, 1)).reshape(9, w.shape[0], w.shape[1])


def _pack_affine(bias, gamma, beta):
    # per-channel [bias, gamma, beta] columns -> (Cout, 3)
    return jnp.stack([bias, gamma, beta], axis=1)


# ---------------------------------------------------------------------------
# YBlock forward
# ---------------------------------------------------------------------------

def yblock_forward(params, msf, pan, ch, com):
    margin = 0.3
    eps = 1e-5
    B, _, H, W = msf.shape
    HW = H * W
    M = B * HW
    C2, C3 = 2 * ch, 3 * ch

    # ---- constant masks (numpy at trace time) ----
    p_idx = np.arange(M)
    xx = p_idx % W
    yy = (p_idx // W) % H
    tap_masks_np = np.zeros((9, M), np.float32)
    for t in range(9):
        dy, dx = t // 3 - 1, t % 3 - 1
        valid = (yy + dy >= 0) & (yy + dy < H) & (xx + dx >= 0) & (xx + dx < W)
        tap_masks_np[t] = valid.astype(np.float32)
    tap_masks = jnp.asarray(tap_masks_np)
    bmask = jnp.asarray((p_idx[None, :] // HW == np.arange(B)[:, None])
                        .astype(np.float32))                        # (B, M)

    # ---- channel-major, spatial-flattened activations (C, B*H*W) ----
    msf_cm = jnp.transpose(msf, (1, 0, 2, 3)).reshape(ch, M)
    pan_cm = jnp.transpose(pan, (1, 0, 2, 3)).reshape(ch, M)

    # ---- weight / affine packing ----
    if com == 1:
        w0m = w0p = _prep_conv3_weight(params["com_conv"]["w"])
        b0m = b0p = params["com_conv"]["b"]
    else:
        w0m = _prep_conv3_weight(params["msf_conv0"]["w"])
        b0m = params["msf_conv0"]["b"]
        w0p = _prep_conv3_weight(params["pan_conv0"]["w"])
        b0p = params["pan_conv0"]["b"]
    p0m = _pack_affine(b0m, params["com_bn1"]["gamma"], params["com_bn1"]["beta"])
    p0p = _pack_affine(b0p, params["com_bn2"]["gamma"], params["com_bn2"]["beta"])

    w1m = jnp.concatenate([_prep_conv3_weight(params["msf_conv1"]["w"]),
                           _prep_conv3_weight(params["msf_conv2"]["w"])], axis=1)
    p1m = jnp.concatenate([
        _pack_affine(params["msf_conv1"]["b"],
                     params["msf_bn1"]["gamma"], params["msf_bn1"]["beta"]),
        _pack_affine(params["msf_conv2"]["b"],
                     params["msf_bn2"]["gamma"], params["msf_bn2"]["beta"])], axis=0)
    w1p = jnp.concatenate([_prep_conv3_weight(params["pan_conv1"]["w"]),
                           _prep_conv3_weight(params["pan_conv2"]["w"])], axis=1)
    p1p = jnp.concatenate([
        _pack_affine(params["pan_conv1"]["b"],
                     params["pan_bn1"]["gamma"], params["pan_bn1"]["beta"]),
        _pack_affine(params["pan_conv2"]["b"],
                     params["pan_bn2"]["gamma"], params["pan_bn2"]["beta"])], axis=0)

    we1 = params["extra1_conv"]["w"].reshape(C3, ch)
    pe1 = _pack_affine(params["extra1_conv"]["b"],
                       params["extra1_bn"]["gamma"], params["extra1_bn"]["beta"])
    we2 = params["extra2_conv"]["w"].reshape(C3, ch)
    pe2 = _pack_affine(params["extra2_conv"]["b"],
                       params["extra2_bn"]["gamma"], params["extra2_bn"]["beta"])

    inputs = [tap_masks, bmask, msf_cm, pan_cm,
              w0m, p0m, w0p, p0p, w1m, p1m, w1p, p1p, we1, pe1, we2, pe2]
    in_specs = [_full_spec(x.shape) for x in inputs]
    out_shapes = (
        jax.ShapeDtypeStruct((C2, M), jnp.float32),      # msf_self
        jax.ShapeDtypeStruct((C2, M), jnp.float32),      # msf_other
        jax.ShapeDtypeStruct((C2, M), jnp.float32),      # pan_self
        jax.ShapeDtypeStruct((C2, M), jnp.float32),      # pan_other
        jax.ShapeDtypeStruct((C3, M), jnp.float32),      # extra1
        jax.ShapeDtypeStruct((C3, M), jnp.float32),      # extra2
        jax.ShapeDtypeStruct((C2, 4 * B), jnp.float32),  # packed reductions
    )
    out_specs = tuple(_full_spec(s.shape) for s in out_shapes)

    kernel1 = functools.partial(_yblock_main_kernel, img_w=W, batch=B, eps=eps)
    (msf_self, msf_other, pan_self, pan_other, e1, e2, sums) = pl.pallas_call(
        kernel1,
        out_shape=out_shapes,
        grid=(1,),
        in_specs=in_specs,
        out_specs=out_specs,
        compiler_params=pltpu.CompilerParams(
            dimension_semantics=("arbitrary",),
            vmem_limit_bytes=32 * 1024 * 1024),
    )(*inputs)

    # ---- tiny XLA glue on (B, 2ch)-sized data only ----
    m_pos_cb = sums[:, 0 * B:1 * B]
    m_neg_cb = sums[:, 1 * B:2 * B]
    p_pos_cb = sums[:, 2 * B:3 * B]
    p_neg_cb = sums[:, 3 * B:4 * B]

    M_pos = jnp.sqrt(jnp.sum(m_pos_cb, axis=0))
    M_neg = jnp.sqrt(jnp.sum(m_neg_cb, axis=0))
    P_pos = jnp.sqrt(jnp.sum(p_pos_cb, axis=0))
    P_neg = jnp.sqrt(jnp.sum(p_neg_cb, axis=0))
    msf_loss = jnp.mean(jax.nn.relu(M_pos - M_neg + margin))
    pan_loss = jnp.mean(jax.nn.relu(P_pos - P_neg + margin))
    loss = 0.5 * (msf_loss + pan_loss)

    M_dif = (m_neg_cb - m_pos_cb).T                      # (B, 2ch)
    P_dif = (p_neg_cb - p_pos_cb).T
    _, M_ini = jax.lax.top_k(M_dif, ch)                  # descending, like torch.topk
    _, P_ini = jax.lax.top_k(P_dif, ch)
    # TODO(synk): top-k tie-breaking may differ from torch.topk when scores are exactly equal.

    def complement(idx):
        # ascending-ordered complement (mirrors list(set(range(2ch)) - set(ini)))
        sel = jnp.zeros((B, C2), jnp.float32).at[jnp.arange(B)[:, None], idx].set(1.0)
        return jnp.argsort(sel, axis=-1)[:, :ch]

    M_out = complement(M_ini)
    P_out = complement(P_ini)

    def onehot(idx):
        return jax.nn.one_hot(idx, C2, dtype=jnp.float32)    # (B, ch, 2ch)

    zblk = jnp.zeros((B, ch, C2), jnp.float32)
    # msf_fusion = cat([msf_self[P_out], 0.5*(msf_self[P_ini]+pan_other[P_ini]), pan_other[P_out]])
    a_msf = jnp.concatenate([onehot(P_out), 0.5 * onehot(P_ini), zblk], axis=1)
    a_pan = jnp.concatenate([zblk, 0.5 * onehot(P_ini), onehot(P_out)], axis=1)
    # pan_fusion = cat([pan_self[M_out], 0.5*(pan_self[M_ini]+msf_other[M_ini]), msf_other[M_out]])
    b_pan = jnp.concatenate([onehot(M_out), 0.5 * onehot(M_ini), zblk], axis=1)
    b_msf = jnp.concatenate([zblk, 0.5 * onehot(M_ini), onehot(M_out)], axis=1)

    # ---- Kernel 2: per-batch fusion, grid parallel over batch ----
    sel_spec = pl.BlockSpec((1, C3, C2), lambda b: (b, 0, 0))
    act_spec = pl.BlockSpec((C2, HW), lambda b: (0, b))
    ex_spec = pl.BlockSpec((C3, HW), lambda b: (0, b))
    out_spec = pl.BlockSpec((1, C3, HW), lambda b: (b, 0, 0))
    out1, out2 = pl.pallas_call(
        _fusion_kernel,
        out_shape=(jax.ShapeDtypeStruct((B, C3, HW), jnp.float32),
                   jax.ShapeDtypeStruct((B, C3, HW), jnp.float32)),
        grid=(B,),
        in_specs=[sel_spec, sel_spec, sel_spec, sel_spec,
                  act_spec, act_spec, act_spec, act_spec, ex_spec, ex_spec],
        out_specs=(out_spec, out_spec),
        compiler_params=pltpu.CompilerParams(
            dimension_semantics=("parallel",),
            vmem_limit_bytes=32 * 1024 * 1024),
    )(a_msf, a_pan, b_pan, b_msf, msf_self, msf_other, pan_self, pan_other, e1, e2)

    return out1.reshape(B, C3, H, W), out2.reshape(B, C3, H, W), loss


# ---------------------------------------------------------------------------
# Parameter init (deterministic, synthetic)
# ---------------------------------------------------------------------------

def init_conv(key, cout, cin, k):
    kw, kb = jax.random.split(key)
    fan_in = cin * k * k
    w = jax.random.normal(kw, (cout, cin, k, k), jnp.float32) / np.sqrt(fan_in)
    b = 0.01 * jax.random.normal(kb, (cout,), jnp.float32)
    return {"w": w, "b": b}


def init_bn(c):
    return {"gamma": jnp.ones((c,), jnp.float32), "beta": jnp.zeros((c,), jnp.float32)}


def init_yblock_params(key, ch):
    ks = jax.random.split(key, 12)
    return {
        "com_conv": init_conv(ks[0], 2 * ch, ch, 3),
        "msf_conv0": init_conv(ks[1], 2 * ch, ch, 3),
        "pan_conv0": init_conv(ks[2], 2 * ch, ch, 3),
        "com_bn1": init_bn(2 * ch),
        "com_bn2": init_bn(2 * ch),
        "msf_conv1": init_conv(ks[3], 2 * ch, 2 * ch, 3),
        "msf_bn1": init_bn(2 * ch),
        "msf_conv2": init_conv(ks[4], 2 * ch, 2 * ch, 3),
        "msf_bn2": init_bn(2 * ch),
        "pan_conv1": init_conv(ks[5], 2 * ch, 2 * ch, 3),
        "pan_bn1": init_bn(2 * ch),
        "pan_conv2": init_conv(ks[6], 2 * ch, 2 * ch, 3),
        "pan_bn2": init_bn(2 * ch),
        "extra1_conv": init_conv(ks[7], 3 * ch, ch, 1),
        "extra1_bn": init_bn(3 * ch),
        "extra2_conv": init_conv(ks[8], 3 * ch, ch, 1),
        "extra2_bn": init_bn(3 * ch),
    }


# ---------------------------------------------------------------------------
# Main
# ---------------------------------------------------------------------------

if __name__ == "__main__":
    ch, com = 4, 1
    B, H, W = 2, 16, 16

    key = jax.random.PRNGKey(0)
    kp, kmsf, kpan = jax.random.split(key, 3)

    params = init_yblock_params(kp, ch)
    msf = jax.random.normal(kmsf, (B, ch, H, W), jnp.float32)
    pan = jax.random.normal(kpan, (B, ch, H, W), jnp.float32)

    fwd = jax.jit(functools.partial(yblock_forward, ch=ch, com=com))
    out_msf, out_pan, loss = fwd(params, msf, pan)
    jax.block_until_ready((out_msf, out_pan, loss))

    assert out_msf.shape == (B, 3 * ch, H, W)
    assert out_pan.shape == (B, 3 * ch, H, W)
    assert loss.shape == ()
    assert bool(jnp.isfinite(loss))
    print("KERNEL_OK")
</pallas_src>

<mosaic_0001>
module attributes {stable_mosaic.version = 11 : i64} {
  func.func @_yblock_main_kernel(%arg0: i32, %arg1: memref<9x512xf32, #tpu.memory_space<vmem>>, %arg2: memref<2x512xf32, #tpu.memory_space<vmem>>, %arg3: memref<4x512xf32, #tpu.memory_space<vmem>>, %arg4: memref<4x512xf32, #tpu.memory_space<vmem>>, %arg5: memref<9x8x4xf32, #tpu.memory_space<vmem>>, %arg6: memref<8x3xf32, #tpu.memory_space<vmem>>, %arg7: memref<9x8x4xf32, #tpu.memory_space<vmem>>, %arg8: memref<8x3xf32, #tpu.memory_space<vmem>>, %arg9: memref<9x16x8xf32, #tpu.memory_space<vmem>>, %arg10: memref<16x3xf32, #tpu.memory_space<vmem>>, %arg11: memref<9x16x8xf32, #tpu.memory_space<vmem>>, %arg12: memref<16x3xf32, #tpu.memory_space<vmem>>, %arg13: memref<12x4xf32, #tpu.memory_space<vmem>>, %arg14: memref<12x3xf32, #tpu.memory_space<vmem>>, %arg15: memref<12x4xf32, #tpu.memory_space<vmem>>, %arg16: memref<12x3xf32, #tpu.memory_space<vmem>>, %arg17: memref<8x512xf32, #tpu.memory_space<vmem>>, %arg18: memref<8x512xf32, #tpu.memory_space<vmem>>, %arg19: memref<8x512xf32, #tpu.memory_space<vmem>>, %arg20: memref<8x512xf32, #tpu.memory_space<vmem>>, %arg21: memref<12x512xf32, #tpu.memory_space<vmem>>, %arg22: memref<12x512xf32, #tpu.memory_space<vmem>>, %arg23: memref<8x8xf32, #tpu.memory_space<vmem>>) attributes {dimension_semantics = [#tpu.dimension_semantics<arbitrary>], iteration_bounds = array<i64: 1>, scalar_prefetch = 0 : i64, scratch_operands = 0 : i64, tpu.core_type = #tpu.core_type<tc>, window_params = [{pipeline_mode = #tpu.pipeline_mode<synchronous>, transform_indices = @transform_0, window_bounds = array<i64: 9, 512>}, {pipeline_mode = #tpu.pipeline_mode<synchronous>, transform_indices = @transform_1, window_bounds = array<i64: 2, 512>}, {pipeline_mode = #tpu.pipeline_mode<synchronous>, transform_indices = @transform_2, window_bounds = array<i64: 4, 512>}, {pipeline_mode = #tpu.pipeline_mode<synchronous>, transform_indices = @transform_3, window_bounds = array<i64: 4, 512>}, {pipeline_mode = #tpu.pipeline_mode<synchronous>, transform_indices = @transform_4, window_bounds = array<i64: 9, 8, 4>}, {pipeline_mode = #tpu.pipeline_mode<synchronous>, transform_indices = @transform_5, window_bounds = array<i64: 8, 3>}, {pipeline_mode = #tpu.pipeline_mode<synchronous>, transform_indices = @transform_6, window_bounds = array<i64: 9, 8, 4>}, {pipeline_mode = #tpu.pipeline_mode<synchronous>, transform_indices = @transform_7, window_bounds = array<i64: 8, 3>}, {pipeline_mode = #tpu.pipeline_mode<synchronous>, transform_indices = @transform_8, window_bounds = array<i64: 9, 16, 8>}, {pipeline_mode = #tpu.pipeline_mode<synchronous>, transform_indices = @transform_9, window_bounds = array<i64: 16, 3>}, {pipeline_mode = #tpu.pipeline_mode<synchronous>, transform_indices = @transform_10, window_bounds = array<i64: 9, 16, 8>}, {pipeline_mode = #tpu.pipeline_mode<synchronous>, transform_indices = @transform_11, window_bounds = array<i64: 16, 3>}, {pipeline_mode = #tpu.pipeline_mode<synchronous>, transform_indices = @transform_12, window_bounds = array<i64: 12, 4>}, {pipeline_mode = #tpu.pipeline_mode<synchronous>, transform_indices = @transform_13, window_bounds = array<i64: 12, 3>}, {pipeline_mode = #tpu.pipeline_mode<synchronous>, transform_indices = @transform_14, window_bounds = array<i64: 12, 4>}, {pipeline_mode = #tpu.pipeline_mode<synchronous>, transform_indices = @transform_15, window_bounds = array<i64: 12, 3>}, {pipeline_mode = #tpu.pipeline_mode<synchronous>, transform_indices = @transform_16, window_bounds = array<i64: 8, 512>}, {pipeline_mode = #tpu.pipeline_mode<synchronous>, transform_indices = @transform_17, window_bounds = array<i64: 8, 512>}, {pipeline_mode = #tpu.pipeline_mode<synchronous>, transform_indices = @transform_18, window_bounds = array<i64: 8, 512>}, {pipeline_mode = #tpu.pipeline_mode<synchronous>, transform_indices = @transform_19, window_bounds = array<i64: 8, 512>}, {pipeline_mode = #tpu.pipeline_mode<synchronous>, transform_indices = @transform_20, window_bounds = array<i64: 12, 512>}, {pipeline_mode = #tpu.pipeline_mode<synchronous>, transform_indices = @transform_21, window_bounds = array<i64: 12, 512>}, {pipeline_mode = #tpu.pipeline_mode<synchronous>, transform_indices = @transform_22, window_bounds = array<i64: 8, 8>}]} {
    %c0 = arith.constant 0 : index
    %c0_0 = arith.constant 0 : index
    %0 = vector.load %arg1[%c0, %c0_0] : memref<9x512xf32, #tpu.memory_space<vmem>>, vector<9x512xf32>
    %c0_1 = arith.constant 0 : index
    %c0_2 = arith.constant 0 : index
    %1 = vector.load %arg2[%c0_1, %c0_2] : memref<2x512xf32, #tpu.memory_space<vmem>>, vector<2x512xf32>
    %c0_3 = arith.constant 0 : index
    %c0_4 = arith.constant 0 : index
    %2 = vector.load %arg3[%c0_3, %c0_4] : memref<4x512xf32, #tpu.memory_space<vmem>>, vector<4x512xf32>
    %c0_5 = arith.constant 0 : index
    %c0_6 = arith.constant 0 : index
    %3 = vector.load %arg4[%c0_5, %c0_6] : memref<4x512xf32, #tpu.memory_space<vmem>>, vector<4x512xf32>
    %c17_i32 = arith.constant 17 : i32
    %4 = tpu.dynamic_rotate %2 by %c17_i32 dim 1 : vector<4x512xf32>, i32 -> vector<4x512xf32>
    %5 = vector.extract_strided_slice %0 {offsets = [0, 0], sizes = [1, 512], strides = [1, 1]} : vector<9x512xf32> to vector<1x512xf32>
    %6 = vector.broadcast %5 : vector<1x512xf32> to vector<4x512xf32>
    %7 = arith.mulf %4, %6 : vector<4x512xf32>
    %c16_i32 = arith.constant 16 : i32
    %8 = tpu.dynamic_rotate %2 by %c16_i32 dim 1 : vector<4x512xf32>, i32 -> vector<4x512xf32>
    %9 = vector.extract_strided_slice %0 {offsets = [1, 0], sizes = [1, 512], strides = [1, 1]} : vector<9x512xf32> to vector<1x512xf32>
    %10 = vector.broadcast %9 : vector<1x512xf32> to vector<4x512xf32>
    %11 = arith.mulf %8, %10 : vector<4x512xf32>
    %c15_i32 = arith.constant 15 : i32
    %12 = tpu.dynamic_rotate %2 by %c15_i32 dim 1 : vector<4x512xf32>, i32 -> vector<4x512xf32>
    %13 = vector.extract_strided_slice %0 {offsets = [2, 0], sizes = [1, 512], strides = [1, 1]} : vector<9x512xf32> to vector<1x512xf32>
    %14 = vector.broadcast %13 : vector<1x512xf32> to vector<4x512xf32>
    %15 = arith.mulf %12, %14 : vector<4x512xf32>
    %c1_i32 = arith.constant 1 : i32
    %16 = tpu.dynamic_rotate %2 by %c1_i32 dim 1 : vector<4x512xf32>, i32 -> vector<4x512xf32>
    %17 = vector.extract_strided_slice %0 {offsets = [3, 0], sizes = [1, 512], strides = [1, 1]} : vector<9x512xf32> to vector<1x512xf32>
    %18 = vector.broadcast %17 : vector<1x512xf32> to vector<4x512xf32>
    %19 = arith.mulf %16, %18 : vector<4x512xf32>
    %20 = vector.extract_strided_slice %0 {offsets = [4, 0], sizes = [1, 512], strides = [1, 1]} : vector<9x512xf32> to vector<1x512xf32>
    %21 = vector.broadcast %20 : vector<1x512xf32> to vector<4x512xf32>
    %22 = arith.mulf %2, %21 : vector<4x512xf32>
    %c511_i32 = arith.constant 511 : i32
    %23 = tpu.dynamic_rotate %2 by %c511_i32 dim 1 : vector<4x512xf32>, i32 -> vector<4x512xf32>
    %24 = vector.extract_strided_slice %0 {offsets = [5, 0], sizes = [1, 512], strides = [1, 1]} : vector<9x512xf32> to vector<1x512xf32>
    %25 = vector.broadcast %24 : vector<1x512xf32> to vector<4x512xf32>
    %26 = arith.mulf %23, %25 : vector<4x512xf32>
    %c497_i32 = arith.constant 497 : i32
    %27 = tpu.dynamic_rotate %2 by %c497_i32 dim 1 : vector<4x512xf32>, i32 -> vector<4x512xf32>
    %28 = vector.extract_strided_slice %0 {offsets = [6, 0], sizes = [1, 512], strides = [1, 1]} : vector<9x512xf32> to vector<1x512xf32>
    %29 = vector.broadcast %28 : vector<1x512xf32> to vector<4x512xf32>
    %30 = arith.mulf %27, %29 : vector<4x512xf32>
    %c496_i32 = arith.constant 496 : i32
    %31 = tpu.dynamic_rotate %2 by %c496_i32 dim 1 : vector<4x512xf32>, i32 -> vector<4x512xf32>
    %32 = vector.extract_strided_slice %0 {offsets = [7, 0], sizes = [1, 512], strides = [1, 1]} : vector<9x512xf32> to vector<1x512xf32>
    %33 = vector.broadcast %32 : vector<1x512xf32> to vector<4x512xf32>
    %34 = arith.mulf %31, %33 : vector<4x512xf32>
    %c495_i32 = arith.constant 495 : i32
    %35 = tpu.dynamic_rotate %2 by %c495_i32 dim 1 : vector<4x512xf32>, i32 -> vector<4x512xf32>
    %36 = vector.extract_strided_slice %0 {offsets = [8, 0], sizes = [1, 512], strides = [1, 1]} : vector<9x512xf32> to vector<1x512xf32>
    %37 = vector.broadcast %36 : vector<1x512xf32> to vector<4x512xf32>
    %38 = arith.mulf %35, %37 : vector<4x512xf32>
    %c0_7 = arith.constant 0 : index
    %c0_8 = arith.constant 0 : index
    %c0_9 = arith.constant 0 : index
    %39 = vector.load %arg5[%c0_7, %c0_8, %c0_9] : memref<9x8x4xf32, #tpu.memory_space<vmem>>, vector<1x8x4xf32>
    %40 = vector.shape_cast %39 : vector<1x8x4xf32> to vector<8x4xf32>
    %cst = arith.constant dense<0.000000e+00> : vector<8x512xf32>
    %41 = tpu.matmul %40, %7, %cst {dimension_numbers = #tpu.dot_dimension_numbers<[1], [0], [0], [1], [0, 0, 1, 1], [], []>} : vector<8x4xf32>, vector<4x512xf32>, vector<8x512xf32> -> vector<8x512xf32>
    %c1 = arith.constant 1 : index
    %c0_10 = arith.constant 0 : index
    %c0_11 = arith.constant 0 : index
    %42 = vector.load %arg5[%c1, %c0_10, %c0_11] : memref<9x8x4xf32, #tpu.memory_space<vmem>>, vector<1x8x4xf32>
    %43 = vector.shape_cast %42 : vector<1x8x4xf32> to vector<8x4xf32>
    %cst_12 = arith.constant dense<0.000000e+00> : vector<8x512xf32>
    %44 = tpu.matmul %43, %11, %cst_12 {dimension_numbers = #tpu.dot_dimension_numbers<[1], [0], [0], [1], [0, 0, 1, 1], [], []>} : vector<8x4xf32>, vector<4x512xf32>, vector<8x512xf32> -> vector<8x512xf32>
    %45 = arith.addf %41, %44 : vector<8x512xf32>
    %c2 = arith.constant 2 : index
    %c0_13 = arith.constant 0 : index
    %c0_14 = arith.constant 0 : index
    %46 = vector.load %arg5[%c2, %c0_13, %c0_14] : memref<9x8x4xf32, #tpu.memory_space<vmem>>, vector<1x8x4xf32>
    %47 = vector.shape_cast %46 : vector<1x8x4xf32> to vector<8x4xf32>
    %cst_15 = arith.constant dense<0.000000e+00> : vector<8x512xf32>
    %48 = tpu.matmul %47, %15, %cst_15 {dimension_numbers = #tpu.dot_dimension_numbers<[1], [0], [0], [1], [0, 0, 1, 1], [], []>} : vector<8x4xf32>, vector<4x512xf32>, vector<8x512xf32> -> vector<8x512xf32>
    %49 = arith.addf %45, %48 : vector<8x512xf32>
    %c3 = arith.constant 3 : index
    %c0_16 = arith.constant 0 : index
    %c0_17 = arith.constant 0 : index
    %50 = vector.load %arg5[%c3, %c0_16, %c0_17] : memref<9x8x4xf32, #tpu.memory_space<vmem>>, vector<1x8x4xf32>
    %51 = vector.shape_cast %50 : vector<1x8x4xf32> to vector<8x4xf32>
    %cst_18 = arith.constant dense<0.000000e+00> : vector<8x512xf32>
    %52 = tpu.matmul %51, %19, %cst_18 {dimension_numbers = #tpu.dot_dimension_numbers<[1], [0], [0], [1], [0, 0, 1, 1], [], []>} : vector<8x4xf32>, vector<4x512xf32>, vector<8x512xf32> -> vector<8x512xf32>
    %53 = arith.addf %49, %52 : vector<8x512xf32>
    %c4 = arith.constant 4 : index
    %c0_19 = arith.constant 0 : index
    %c0_20 = arith.constant 0 : index
    %54 = vector.load %arg5[%c4, %c0_19, %c0_20] : memref<9x8x4xf32, #tpu.memory_space<vmem>>, vector<1x8x4xf32>
    %55 = vector.shape_cast %54 : vector<1x8x4xf32> to vector<8x4xf32>
    %cst_21 = arith.constant dense<0.000000e+00> : vector<8x512xf32>
    %56 = tpu.matmul %55, %22, %cst_21 {dimension_numbers = #tpu.dot_dimension_numbers<[1], [0], [0], [1], [0, 0, 1, 1], [], []>} : vector<8x4xf32>, vector<4x512xf32>, vector<8x512xf32> -> vector<8x512xf32>
    %57 = arith.addf %53, %56 : vector<8x512xf32>
    %c5 = arith.constant 5 : index
    %c0_22 = arith.constant 0 : index
    %c0_23 = arith.constant 0 : index
    %58 = vector.load %arg5[%c5, %c0_22, %c0_23] : memref<9x8x4xf32, #tpu.memory_space<vmem>>, vector<1x8x4xf32>
    %59 = vector.shape_cast %58 : vector<1x8x4xf32> to vector<8x4xf32>
    %cst_24 = arith.constant dense<0.000000e+00> : vector<8x512xf32>
    %60 = tpu.matmul %59, %26, %cst_24 {dimension_numbers = #tpu.dot_dimension_numbers<[1], [0], [0], [1], [0, 0, 1, 1], [], []>} : vector<8x4xf32>, vector<4x512xf32>, vector<8x512xf32> -> vector<8x512xf32>
    %61 = arith.addf %57, %60 : vector<8x512xf32>
    %c6 = arith.constant 6 : index
    %c0_25 = arith.constant 0 : index
    %c0_26 = arith.constant 0 : index
    %62 = vector.load %arg5[%c6, %c0_25, %c0_26] : memref<9x8x4xf32, #tpu.memory_space<vmem>>, vector<1x8x4xf32>
    %63 = vector.shape_cast %62 : vector<1x8x4xf32> to vector<8x4xf32>
    %cst_27 = arith.constant dense<0.000000e+00> : vector<8x512xf32>
    %64 = tpu.matmul %63, %30, %cst_27 {dimension_numbers = #tpu.dot_dimension_numbers<[1], [0], [0], [1], [0, 0, 1, 1], [], []>} : vector<8x4xf32>, vector<4x512xf32>, vector<8x512xf32> -> vector<8x512xf32>
    %65 = arith.addf %61, %64 : vector<8x512xf32>
    %c7 = arith.constant 7 : index
    %c0_28 = arith.constant 0 : index
    %c0_29 = arith.constant 0 : index
    %66 = vector.load %arg5[%c7, %c0_28, %c0_29] : memref<9x8x4xf32, #tpu.memory_space<vmem>>, vector<1x8x4xf32>
    %67 = vector.shape_cast %66 : vector<1x8x4xf32> to vector<8x4xf32>
    %cst_30 = arith.constant dense<0.000000e+00> : vector<8x512xf32>
    %68 = tpu.matmul %67, %34, %cst_30 {dimension_numbers = #tpu.dot_dimension_numbers<[1], [0], [0], [1], [0, 0, 1, 1], [], []>} : vector<8x4xf32>, vector<4x512xf32>, vector<8x512xf32> -> vector<8x512xf32>
    %69 = arith.addf %65, %68 : vector<8x512xf32>
    %c8 = arith.constant 8 : index
    %c0_31 = arith.constant 0 : index
    %c0_32 = arith.constant 0 : index
    %70 = vector.load %arg5[%c8, %c0_31, %c0_32] : memref<9x8x4xf32, #tpu.memory_space<vmem>>, vector<1x8x4xf32>
    %71 = vector.shape_cast %70 : vector<1x8x4xf32> to vector<8x4xf32>
    %cst_33 = arith.constant dense<0.000000e+00> : vector<8x512xf32>
    %72 = tpu.matmul %71, %38, %cst_33 {dimension_numbers = #tpu.dot_dimension_numbers<[1], [0], [0], [1], [0, 0, 1, 1], [], []>} : vector<8x4xf32>, vector<4x512xf32>, vector<8x512xf32> -> vector<8x512xf32>
    %73 = arith.addf %69, %72 : vector<8x512xf32>
    %c0_34 = arith.constant 0 : index
    %c0_35 = arith.constant 0 : index
    %74 = vector.load %arg6[%c0_34, %c0_35] : memref<8x3xf32, #tpu.memory_space<vmem>>, vector<8x3xf32>
    %75 = vector.extract_strided_slice %74 {offsets = [0, 0], sizes = [8, 1], strides = [1, 1]} : vector<8x3xf32> to vector<8x1xf32>
    %76 = vector.broadcast %75 : vector<8x1xf32> to vector<8x512xf32>
    %77 = arith.addf %73, %76 : vector<8x512xf32>
    %cst_36 = arith.constant dense<0.000000e+00> : vector<8xf32>
    %78 = vector.multi_reduction <add>, %77, %cst_36 [1] : vector<8x512xf32> to vector<8xf32>
    %79 = vector.shape_cast %78 : vector<8xf32> to vector<8x1xf32>
    %cst_37 = arith.constant 5.120000e+02 : f32
    %80 = vector.broadcast %cst_37 : f32 to vector<8x1xf32>
    %81 = arith.divf %79, %80 : vector<8x1xf32>
    %82 = vector.broadcast %81 : vector<8x1xf32> to vector<8x512xf32>
    %83 = arith.subf %77, %82 : vector<8x512xf32>
    %84 = arith.mulf %83, %83 : vector<8x512xf32>
    %cst_38 = arith.constant dense<0.000000e+00> : vector<8xf32>
    %85 = vector.multi_reduction <add>, %84, %cst_38 [1] : vector<8x512xf32> to vector<8xf32>
    %86 = vector.shape_cast %85 : vector<8xf32> to vector<8x1xf32>
    %cst_39 = arith.constant 5.120000e+02 : f32
    %87 = vector.broadcast %cst_39 : f32 to vector<8x1xf32>
    %88 = arith.divf %86, %87 : vector<8x1xf32>
    %89 = vector.broadcast %81 : vector<8x1xf32> to vector<8x512xf32>
    %90 = arith.subf %77, %89 : vector<8x512xf32>
    %cst_40 = arith.constant 9.99999974E-6 : f32
    %91 = vector.broadcast %cst_40 : f32 to vector<8x1xf32>
    %92 = arith.addf %88, %91 : vector<8x1xf32>
    %93 = math.rsqrt %92 : vector<8x1xf32>
    %94 = vector.broadcast %93 : vector<8x1xf32> to vector<8x512xf32>
    %95 = arith.mulf %90, %94 : vector<8x512xf32>
    %96 = vector.extract_strided_slice %74 {offsets = [0, 1], sizes = [8, 1], strides = [1, 1]} : vector<8x3xf32> to vector<8x1xf32>
    %97 = vector.broadcast %96 : vector<8x1xf32> to vector<8x512xf32>
    %98 = arith.mulf %97, %95 : vector<8x512xf32>
    %99 = vector.extract_strided_slice %74 {offsets = [0, 2], sizes = [8, 1], strides = [1, 1]} : vector<8x3xf32> to vector<8x1xf32>
    %100 = vector.broadcast %99 : vector<8x1xf32> to vector<8x512xf32>
    %101 = arith.addf %98, %100 : vector<8x512xf32>
    %c17_i32_41 = arith.constant 17 : i32
    %102 = tpu.dynamic_rotate %3 by %c17_i32_41 dim 1 : vector<4x512xf32>, i32 -> vector<4x512xf32>
    %103 = vector.extract_strided_slice %0 {offsets = [0, 0], sizes = [1, 512], strides = [1, 1]} : vector<9x512xf32> to vector<1x512xf32>
    %104 = vector.broadcast %103 : vector<1x512xf32> to vector<4x512xf32>
    %105 = arith.mulf %102, %104 : vector<4x512xf32>
    %c16_i32_42 = arith.constant 16 : i32
    %106 = tpu.dynamic_rotate %3 by %c16_i32_42 dim 1 : vector<4x512xf32>, i32 -> vector<4x512xf32>
    %107 = vector.extract_strided_slice %0 {offsets = [1, 0], sizes = [1, 512], strides = [1, 1]} : vector<9x512xf32> to vector<1x512xf32>
    %108 = vector.broadcast %107 : vector<1x512xf32> to vector<4x512xf32>
    %109 = arith.mulf %106, %108 : vector<4x512xf32>
    %c15_i32_43 = arith.constant 15 : i32
    %110 = tpu.dynamic_rotate %3 by %c15_i32_43 dim 1 : vector<4x512xf32>, i32 -> vector<4x512xf32>
    %111 = vector.extract_strided_slice %0 {offsets = [2, 0], sizes = [1, 512], strides = [1, 1]} : vector<9x512xf32> to vector<1x512xf32>
    %112 = vector.broadcast %111 : vector<1x512xf32> to vector<4x512xf32>
    %113 = arith.mulf %110, %112 : vector<4x512xf32>
    %c1_i32_44 = arith.constant 1 : i32
    %114 = tpu.dynamic_rotate %3 by %c1_i32_44 dim 1 : vector<4x512xf32>, i32 -> vector<4x512xf32>
    %115 = vector.extract_strided_slice %0 {offsets = [3, 0], sizes = [1, 512], strides = [1, 1]} : vector<9x512xf32> to vector<1x512xf32>
    %116 = vector.broadcast %115 : vector<1x512xf32> to vector<4x512xf32>
    %117 = arith.mulf %114, %116 : vector<4x512xf32>
    %118 = vector.extract_strided_slice %0 {offsets = [4, 0], sizes = [1, 512], strides = [1, 1]} : vector<9x512xf32> to vector<1x512xf32>
    %119 = vector.broadcast %118 : vector<1x512xf32> to vector<4x512xf32>
    %120 = arith.mulf %3, %119 : vector<4x512xf32>
    %c511_i32_45 = arith.constant 511 : i32
    %121 = tpu.dynamic_rotate %3 by %c511_i32_45 dim 1 : vector<4x512xf32>, i32 -> vector<4x512xf32>
    %122 = vector.extract_strided_slice %0 {offsets = [5, 0], sizes = [1, 512], strides = [1, 1]} : vector<9x512xf32> to vector<1x512xf32>
    %123 = vector.broadcast %122 : vector<1x512xf32> to vector<4x512xf32>
    %124 = arith.mulf %121, %123 : vector<4x512xf32>
    %c497_i32_46 = arith.constant 497 : i32
    %125 = tpu.dynamic_rotate %3 by %c497_i32_46 dim 1 : vector<4x512xf32>, i32 -> vector<4x512xf32>
    %126 = vector.extract_strided_slice %0 {offsets = [6, 0], sizes = [1, 512], strides = [1, 1]} : vector<9x512xf32> to vector<1x512xf32>
    %127 = vector.broadcast %126 : vector<1x512xf32> to vector<4x512xf32>
    %128 = arith.mulf %125, %127 : vector<4x512xf32>
    %c496_i32_47 = arith.constant 496 : i32
    %129 = tpu.dynamic_rotate %3 by %c496_i32_47 dim 1 : vector<4x512xf32>, i32 -> vector<4x512xf32>
    %130 = vector.extract_strided_slice %0 {offsets = [7, 0], sizes = [1, 512], strides = [1, 1]} : vector<9x512xf32> to vector<1x512xf32>
    %131 = vector.broadcast %130 : vector<1x512xf32> to vector<4x512xf32>
    %132 = arith.mulf %129, %131 : vector<4x512xf32>
    %c495_i32_48 = arith.constant 495 : i32
    %133 = tpu.dynamic_rotate %3 by %c495_i32_48 dim 1 : vector<4x512xf32>, i32 -> vector<4x512xf32>
    %134 = vector.extract_strided_slice %0 {offsets = [8, 0], sizes = [1, 512], strides = [1, 1]} : vector<9x512xf32> to vector<1x512xf32>
    %135 = vector.broadcast %134 : vector<1x512xf32> to vector<4x512xf32>
    %136 = arith.mulf %133, %135 : vector<4x512xf32>
    %c0_49 = arith.constant 0 : index
    %c0_50 = arith.constant 0 : index
    %c0_51 = arith.constant 0 : index
    %137 = vector.load %arg7[%c0_49, %c0_50, %c0_51] : memref<9x8x4xf32, #tpu.memory_space<vmem>>, vector<1x8x4xf32>
    %138 = vector.shape_cast %137 : vector<1x8x4xf32> to vector<8x4xf32>
    %cst_52 = arith.constant dense<0.000000e+00> : vector<8x512xf32>
    %139 = tpu.matmul %138, %105, %cst_52 {dimension_numbers = #tpu.dot_dimension_numbers<[1], [0], [0], [1], [0, 0, 1, 1], [], []>} : vector<8x4xf32>, vector<4x512xf32>, vector<8x512xf32> -> vector<8x512xf32>
    %c1_53 = arith.constant 1 : index
    %c0_54 = arith.constant 0 : index
    %c0_55 = arith.constant 0 : index
    %140 = vector.load %arg7[%c1_53, %c0_54, %c0_55] : memref<9x8x4xf32, #tpu.memory_space<vmem>>, vector<1x8x4xf32>
    %141 = vector.shape_cast %140 : vector<1x8x4xf32> to vector<8x4xf32>
    %cst_56 = arith.constant dense<0.000000e+00> : vector<8x512xf32>
    %142 = tpu.matmul %141, %109, %cst_56 {dimension_numbers = #tpu.dot_dimension_numbers<[1], [0], [0], [1], [0, 0, 1, 1], [], []>} : vector<8x4xf32>, vector<4x512xf32>, vector<8x512xf32> -> vector<8x512xf32>
    %143 = arith.addf %139, %142 : vector<8x512xf32>
    %c2_57 = arith.constant 2 : index
    %c0_58 = arith.constant 0 : index
    %c0_59 = arith.constant 0 : index
    %144 = vector.load %arg7[%c2_57, %c0_58, %c0_59] : memref<9x8x4xf32, #tpu.memory_space<vmem>>, vector<1x8x4xf32>
    %145 = vector.shape_cast %144 : vector<1x8x4xf32> to vector<8x4xf32>
    %cst_60 = arith.constant dense<0.000000e+00> : vector<8x512xf32>
    %146 = tpu.matmul %145, %113, %cst_60 {dimension_numbers = #tpu.dot_dimension_numbers<[1], [0], [0], [1], [0, 0, 1, 1], [], []>} : vector<8x4xf32>, vector<4x512xf32>, vector<8x512xf32> -> vector<8x512xf32>
    %147 = arith.addf %143, %146 : vector<8x512xf32>
    %c3_61 = arith.constant 3 : index
    %c0_62 = arith.constant 0 : index
    %c0_63 = arith.constant 0 : index
    %148 = vector.load %arg7[%c3_61, %c0_62, %c0_63] : memref<9x8x4xf32, #tpu.memory_space<vmem>>, vector<1x8x4xf32>
    %149 = vector.shape_cast %148 : vector<1x8x4xf32> to vector<8x4xf32>
    %cst_64 = arith.constant dense<0.000000e+00> : vector<8x512xf32>
    %150 = tpu.matmul %149, %117, %cst_64 {dimension_numbers = #tpu.dot_dimension_numbers<[1], [0], [0], [1], [0, 0, 1, 1], [], []>} : vector<8x4xf32>, vector<4x512xf32>, vector<8x512xf32> -> vector<8x512xf32>
    %151 = arith.addf %147, %150 : vector<8x512xf32>
    %c4_65 = arith.constant 4 : index
    %c0_66 = arith.constant 0 : index
    %c0_67 = arith.constant 0 : index
    %152 = vector.load %arg7[%c4_65, %c0_66, %c0_67] : memref<9x8x4xf32, #tpu.memory_space<vmem>>, vector<1x8x4xf32>
    %153 = vector.shape_cast %152 : vector<1x8x4xf32> to vector<8x4xf32>
    %cst_68 = arith.constant dense<0.000000e+00> : vector<8x512xf32>
    %154 = tpu.matmul %153, %120, %cst_68 {dimension_numbers = #tpu.dot_dimension_numbers<[1], [0], [0], [1], [0, 0, 1, 1], [], []>} : vector<8x4xf32>, vector<4x512xf32>, vector<8x512xf32> -> vector<8x512xf32>
    %155 = arith.addf %151, %154 : vector<8x512xf32>
    %c5_69 = arith.constant 5 : index
    %c0_70 = arith.constant 0 : index
    %c0_71 = arith.constant 0 : index
    %156 = vector.load %arg7[%c5_69, %c0_70, %c0_71] : memref<9x8x4xf32, #tpu.memory_space<vmem>>, vector<1x8x4xf32>
    %157 = vector.shape_cast %156 : vector<1x8x4xf32> to vector<8x4xf32>
    %cst_72 = arith.constant dense<0.000000e+00> : vector<8x512xf32>
    %158 = tpu.matmul %157, %124, %cst_72 {dimension_numbers = #tpu.dot_dimension_numbers<[1], [0], [0], [1], [0, 0, 1, 1], [], []>} : vector<8x4xf32>, vector<4x512xf32>, vector<8x512xf32> -> vector<8x512xf32>
    %159 = arith.addf %155, %158 : vector<8x512xf32>
    %c6_73 = arith.constant 6 : index
    %c0_74 = arith.constant 0 : index
    %c0_75 = arith.constant 0 : index
    %160 = vector.load %arg7[%c6_73, %c0_74, %c0_75] : memref<9x8x4xf32, #tpu.memory_space<vmem>>, vector<1x8x4xf32>
    %161 = vector.shape_cast %160 : vector<1x8x4xf32> to vector<8x4xf32>
    %cst_76 = arith.constant dense<0.000000e+00> : vector<8x512xf32>
    %162 = tpu.matmul %161, %128, %cst_76 {dimension_numbers = #tpu.dot_dimension_numbers<[1], [0], [0], [1], [0, 0, 1, 1], [], []>} : vector<8x4xf32>, vector<4x512xf32>, vector<8x512xf32> -> vector<8x512xf32>
    %163 = arith.addf %159, %162 : vector<8x512xf32>
    %c7_77 = arith.constant 7 : index
    %c0_78 = arith.constant 0 : index
    %c0_79 = arith.constant 0 : index
    %164 = vector.load %arg7[%c7_77, %c0_78, %c0_79] : memref<9x8x4xf32, #tpu.memory_space<vmem>>, vector<1x8x4xf32>
    %165 = vector.shape_cast %164 : vector<1x8x4xf32> to vector<8x4xf32>
    %cst_80 = arith.constant dense<0.000000e+00> : vector<8x512xf32>
    %166 = tpu.matmul %165, %132, %cst_80 {dimension_numbers = #tpu.dot_dimension_numbers<[1], [0], [0], [1], [0, 0, 1, 1], [], []>} : vector<8x4xf32>, vector<4x512xf32>, vector<8x512xf32> -> vector<8x512xf32>
    %167 = arith.addf %163, %166 : vector<8x512xf32>
    %c8_81 = arith.constant 8 : index
    %c0_82 = arith.constant 0 : index
    %c0_83 = arith.constant 0 : index
    %168 = vector.load %arg7[%c8_81, %c0_82, %c0_83] : memref<9x8x4xf32, #tpu.memory_space<vmem>>, vector<1x8x4xf32>
    %169 = vector.shape_cast %168 : vector<1x8x4xf32> to vector<8x4xf32>
    %cst_84 = arith.constant dense<0.000000e+00> : vector<8x512xf32>
    %170 = tpu.matmul %169, %136, %cst_84 {dimension_numbers = #tpu.dot_dimension_numbers<[1], [0], [0], [1], [0, 0, 1, 1], [], []>} : vector<8x4xf32>, vector<4x512xf32>, vector<8x512xf32> -> vector<8x512xf32>
    %171 = arith.addf %167, %170 : vector<8x512xf32>
    %c0_85 = arith.constant 0 : index
    %c0_86 = arith.constant 0 : index
    %172 = vector.load %arg8[%c0_85, %c0_86] : memref<8x3xf32, #tpu.memory_space<vmem>>, vector<8x3xf32>
    %173 = vector.extract_strided_slice %172 {offsets = [0, 0], sizes = [8, 1], strides = [1, 1]} : vector<8x3xf32> to vector<8x1xf32>
    %174 = vector.broadcast %173 : vector<8x1xf32> to vector<8x512xf32>
    %175 = arith.addf %171, %174 : vector<8x512xf32>
    %cst_87 = arith.constant dense<0.000000e+00> : vector<8xf32>
    %176 = vector.multi_reduction <add>, %175, %cst_87 [1] : vector<8x512xf32> to vector<8xf32>
    %177 = vector.shape_cast %176 : vector<8xf32> to vector<8x1xf32>
    %cst_88 = arith.constant 5.120000e+02 : f32
    %178 = vector.broadcast %cst_88 : f32 to vector<8x1xf32>
    %179 = arith.divf %177, %178 : vector<8x1xf32>
    %180 = vector.broadcast %179 : vector<8x1xf32> to vector<8x512xf32>
    %181 = arith.subf %175, %180 : vector<8x512xf32>
    %182 = arith.mulf %181, %181 : vector<8x512xf32>
    %cst_89 = arith.constant dense<0.000000e+00> : vector<8xf32>
    %183 = vector.multi_reduction <add>, %182, %cst_89 [1] : vector<8x512xf32> to vector<8xf32>
    %184 = vector.shape_cast %183 : vector<8xf32> to vector<8x1xf32>
    %cst_90 = arith.constant 5.120000e+02 : f32
    %185 = vector.broadcast %cst_90 : f32 to vector<8x1xf32>
    %186 = arith.divf %184, %185 : vector<8x1xf32>
    %187 = vector.broadcast %179 : vector<8x1xf32> to vector<8x512xf32>
    %188 = arith.subf %175, %187 : vector<8x512xf32>
    %cst_91 = arith.constant 9.99999974E-6 : f32
    %189 = vector.broadcast %cst_91 : f32 to vector<8x1xf32>
    %190 = arith.addf %186, %189 : vector<8x1xf32>
    %191 = math.rsqrt %190 : vector<8x1xf32>
    %192 = vector.broadcast %191 : vector<8x1xf32> to vector<8x512xf32>
    %193 = arith.mulf %188, %192 : vector<8x512xf32>
    %194 = vector.extract_strided_slice %172 {offsets = [0, 1], sizes = [8, 1], strides = [1, 1]} : vector<8x3xf32> to vector<8x1xf32>
    %195 = vector.broadcast %194 : vector<8x1xf32> to vector<8x512xf32>
    %196 = arith.mulf %195, %193 : vector<8x512xf32>
    %197 = vector.extract_strided_slice %172 {offsets = [0, 2], sizes = [8, 1], strides = [1, 1]} : vector<8x3xf32> to vector<8x1xf32>
    %198 = vector.broadcast %197 : vector<8x1xf32> to vector<8x512xf32>
    %199 = arith.addf %196, %198 : vector<8x512xf32>
    %c17_i32_92 = arith.constant 17 : i32
    %200 = tpu.dynamic_rotate %101 by %c17_i32_92 dim 1 : vector<8x512xf32>, i32 -> vector<8x512xf32>
    %201 = vector.extract_strided_slice %0 {offsets = [0, 0], sizes = [1, 512], strides = [1, 1]} : vector<9x512xf32> to vector<1x512xf32>
    %202 = vector.broadcast %201 : vector<1x512xf32> to vector<8x512xf32>
    %203 = arith.mulf %200, %202 : vector<8x512xf32>
    %c16_i32_93 = arith.constant 16 : i32
    %204 = tpu.dynamic_rotate %101 by %c16_i32_93 dim 1 : vector<8x512xf32>, i32 -> vector<8x512xf32>
    %205 = vector.extract_strided_slice %0 {offsets = [1, 0], sizes = [1, 512], strides = [1, 1]} : vector<9x512xf32> to vector<1x512xf32>
    %206 = vector.broadcast %205 : vector<1x512xf32> to vector<8x512xf32>
    %207 = arith.mulf %204, %206 : vector<8x512xf32>
    %c15_i32_94 = arith.constant 15 : i32
    %208 = tpu.dynamic_rotate %101 by %c15_i32_94 dim 1 : vector<8x512xf32>, i32 -> vector<8x512xf32>
    %209 = vector.extract_strided_slice %0 {offsets = [2, 0], sizes = [1, 512], strides = [1, 1]} : vector<9x512xf32> to vector<1x512xf32>
    %210 = vector.broadcast %209 : vector<1x512xf32> to vector<8x512xf32>
    %211 = arith.mulf %208, %210 : vector<8x512xf32>
    %c1_i32_95 = arith.constant 1 : i32
    %212 = tpu.dynamic_rotate %101 by %c1_i32_95 dim 1 : vector<8x512xf32>, i32 -> vector<8x512xf32>
    %213 = vector.extract_strided_slice %0 {offsets = [3, 0], sizes = [1, 512], strides = [1, 1]} : vector<9x512xf32> to vector<1x512xf32>
    %214 = vector.broadcast %213 : vector<1x512xf32> to vector<8x512xf32>
    %215 = arith.mulf %212, %214 : vector<8x512xf32>
    %216 = vector.extract_strided_slice %0 {offsets = [4, 0], sizes = [1, 512], strides = [1, 1]} : vector<9x512xf32> to vector<1x512xf32>
    %217 = vector.broadcast %216 : vector<1x512xf32> to vector<8x512xf32>
    %218 = arith.mulf %101, %217 : vector<8x512xf32>
    %c511_i32_96 = arith.constant 511 : i32
    %219 = tpu.dynamic_rotate %101 by %c511_i32_96 dim 1 : vector<8x512xf32>, i32 -> vector<8x512xf32>
    %220 = vector.extract_strided_slice %0 {offsets = [5, 0], sizes = [1, 512], strides = [1, 1]} : vector<9x512xf32> to vector<1x512xf32>
    %221 = vector.broadcast %220 : vector<1x512xf32> to vector<8x512xf32>
    %222 = arith.mulf %219, %221 : vector<8x512xf32>
    %c497_i32_97 = arith.constant 497 : i32
    %223 = tpu.dynamic_rotate %101 by %c497_i32_97 dim 1 : vector<8x512xf32>, i32 -> vector<8x512xf32>
    %224 = vector.extract_strided_slice %0 {offsets = [6, 0], sizes = [1, 512], strides = [1, 1]} : vector<9x512xf32> to vector<1x512xf32>
    %225 = vector.broadcast %224 : vector<1x512xf32> to vector<8x512xf32>
    %226 = arith.mulf %223, %225 : vector<8x512xf32>
    %c496_i32_98 = arith.constant 496 : i32
    %227 = tpu.dynamic_rotate %101 by %c496_i32_98 dim 1 : vector<8x512xf32>, i32 -> vector<8x512xf32>
    %228 = vector.extract_strided_slice %0 {offsets = [7, 0], sizes = [1, 512], strides = [1, 1]} : vector<9x512xf32> to vector<1x512xf32>
    %229 = vector.broadcast %228 : vector<1x512xf32> to vector<8x512xf32>
    %230 = arith.mulf %227, %229 : vector<8x512xf32>
    %c495_i32_99 = arith.constant 495 : i32
    %231 = tpu.dynamic_rotate %101 by %c495_i32_99 dim 1 : vector<8x512xf32>, i32 -> vector<8x512xf32>
    %232 = vector.extract_strided_slice %0 {offsets = [8, 0], sizes = [1, 512], strides = [1, 1]} : vector<9x512xf32> to vector<1x512xf32>
    %233 = vector.broadcast %232 : vector<1x512xf32> to vector<8x512xf32>
    %234 = arith.mulf %231, %233 : vector<8x512xf32>
    %c0_100 = arith.constant 0 : index
    %c0_101 = arith.constant 0 : index
    %c0_102 = arith.constant 0 : index
    %235 = vector.load %arg9[%c0_100, %c0_101, %c0_102] : memref<9x16x8xf32, #tpu.memory_space<vmem>>, vector<1x16x8xf32>
    %236 = vector.shape_cast %235 : vector<1x16x8xf32> to vector<16x8xf32>
    %cst_103 = arith.constant dense<0.000000e+00> : vector<16x512xf32>
    %237 = tpu.matmul %236, %203, %cst_103 {dimension_numbers = #tpu.dot_dimension_numbers<[1], [0], [0], [1], [0, 0, 1, 1], [], []>} : vector<16x8xf32>, vector<8x512xf32>, vector<16x512xf32> -> vector<16x512xf32>
    %c1_104 = arith.constant 1 : index
    %c0_105 = arith.constant 0 : index
    %c0_106 = arith.constant 0 : index
    %238 = vector.load %arg9[%c1_104, %c0_105, %c0_106] : memref<9x16x8xf32, #tpu.memory_space<vmem>>, vector<1x16x8xf32>
    %239 = vector.shape_cast %238 : vector<1x16x8xf32> to vector<16x8xf32>
    %cst_107 = arith.constant dense<0.000000e+00> : vector<16x512xf32>
    %240 = tpu.matmul %239, %207, %cst_107 {dimension_numbers = #tpu.dot_dimension_numbers<[1], [0], [0], [1], [0, 0, 1, 1], [], []>} : vector<16x8xf32>, vector<8x512xf32>, vector<16x512xf32> -> vector<16x512xf32>
    %241 = arith.addf %237, %240 : vector<16x512xf32>
    %c2_108 = arith.constant 2 : index
    %c0_109 = arith.constant 0 : index
    %c0_110 = arith.constant 0 : index
    %242 = vector.load %arg9[%c2_108, %c0_109, %c0_110] : memref<9x16x8xf32, #tpu.memory_space<vmem>>, vector<1x16x8xf32>
    %243 = vector.shape_cast %242 : vector<1x16x8xf32> to vector<16x8xf32>
    %cst_111 = arith.constant dense<0.000000e+00> : vector<16x512xf32>
    %244 = tpu.matmul %243, %211, %cst_111 {dimension_numbers = #tpu.dot_dimension_numbers<[1], [0], [0], [1], [0, 0, 1, 1], [], []>} : vector<16x8xf32>, vector<8x512xf32>, vector<16x512xf32> -> vector<16x512xf32>
    %245 = arith.addf %241, %244 : vector<16x512xf32>
    %c3_112 = arith.constant 3 : index
    %c0_113 = arith.constant 0 : index
    %c0_114 = arith.constant 0 : index
    %246 = vector.load %arg9[%c3_112, %c0_113, %c0_114] : memref<9x16x8xf32, #tpu.memory_space<vmem>>, vector<1x16x8xf32>
    %247 = vector.shape_cast %246 : vector<1x16x8xf32> to vector<16x8xf32>
    %cst_115 = arith.constant dense<0.000000e+00> : vector<16x512xf32>
    %248 = tpu.matmul %247, %215, %cst_115 {dimension_numbers = #tpu.dot_dimension_numbers<[1], [0], [0], [1], [0, 0, 1, 1], [], []>} : vector<16x8xf32>, vector<8x512xf32>, vector<16x512xf32> -> vector<16x512xf32>
    %249 = arith.addf %245, %248 : vector<16x512xf32>
    %c4_116 = arith.constant 4 : index
    %c0_117 = arith.constant 0 : index
    %c0_118 = arith.constant 0 : index
    %250 = vector.load %arg9[%c4_116, %c0_117, %c0_118] : memref<9x16x8xf32, #tpu.memory_space<vmem>>, vector<1x16x8xf32>
    %251 = vector.shape_cast %250 : vector<1x16x8xf32> to vector<16x8xf32>
    %cst_119 = arith.constant dense<0.000000e+00> : vector<16x512xf32>
    %252 = tpu.matmul %251, %218, %cst_119 {dimension_numbers = #tpu.dot_dimension_numbers<[1], [0], [0], [1], [0, 0, 1, 1], [], []>} : vector<16x8xf32>, vector<8x512xf32>, vector<16x512xf32> -> vector<16x512xf32>
    %253 = arith.addf %249, %252 : vector<16x512xf32>
    %c5_120 = arith.constant 5 : index
    %c0_121 = arith.constant 0 : index
    %c0_122 = arith.constant 0 : index
    %254 = vector.load %arg9[%c5_120, %c0_121, %c0_122] : memref<9x16x8xf32, #tpu.memory_space<vmem>>, vector<1x16x8xf32>
    %255 = vector.shape_cast %254 : vector<1x16x8xf32> to vector<16x8xf32>
    %cst_123 = arith.constant dense<0.000000e+00> : vector<16x512xf32>
    %256 = tpu.matmul %255, %222, %cst_123 {dimension_numbers = #tpu.dot_dimension_numbers<[1], [0], [0], [1], [0, 0, 1, 1], [], []>} : vector<16x8xf32>, vector<8x512xf32>, vector<16x512xf32> -> vector<16x512xf32>
    %257 = arith.addf %253, %256 : vector<16x512xf32>
    %c6_124 = arith.constant 6 : index
    %c0_125 = arith.constant 0 : index
    %c0_126 = arith.constant 0 : index
    %258 = vector.load %arg9[%c6_124, %c0_125, %c0_126] : memref<9x16x8xf32, #tpu.memory_space<vmem>>, vector<1x16x8xf32>
    %259 = vector.shape_cast %258 : vector<1x16x8xf32> to vector<16x8xf32>
    %cst_127 = arith.constant dense<0.000000e+00> : vector<16x512xf32>
    %260 = tpu.matmul %259, %226, %cst_127 {dimension_numbers = #tpu.dot_dimension_numbers<[1], [0], [0], [1], [0, 0, 1, 1], [], []>} : vector<16x8xf32>, vector<8x512xf32>, vector<16x512xf32> -> vector<16x512xf32>
    %261 = arith.addf %257, %260 : vector<16x512xf32>
    %c7_128 = arith.constant 7 : index
    %c0_129 = arith.constant 0 : index
    %c0_130 = arith.constant 0 : index
    %262 = vector.load %arg9[%c7_128, %c0_129, %c0_130] : memref<9x16x8xf32, #tpu.memory_space<vmem>>, vector<1x16x8xf32>
    %263 = vector.shape_cast %262 : vector<1x16x8xf32> to vector<16x8xf32>
    %cst_131 = arith.constant dense<0.000000e+00> : vector<16x512xf32>
    %264 = tpu.matmul %263, %230, %cst_131 {dimension_numbers = #tpu.dot_dimension_numbers<[1], [0], [0], [1], [0, 0, 1, 1], [], []>} : vector<16x8xf32>, vector<8x512xf32>, vector<16x512xf32> -> vector<16x512xf32>
    %265 = arith.addf %261, %264 : vector<16x512xf32>
    %c8_132 = arith.constant 8 : index
    %c0_133 = arith.constant 0 : index
    %c0_134 = arith.constant 0 : index
    %266 = vector.load %arg9[%c8_132, %c0_133, %c0_134] : memref<9x16x8xf32, #tpu.memory_space<vmem>>, vector<1x16x8xf32>
    %267 = vector.shape_cast %266 : vector<1x16x8xf32> to vector<16x8xf32>
    %cst_135 = arith.constant dense<0.000000e+00> : vector<16x512xf32>
    %268 = tpu.matmul %267, %234, %cst_135 {dimension_numbers = #tpu.dot_dimension_numbers<[1], [0], [0], [1], [0, 0, 1, 1], [], []>} : vector<16x8xf32>, vector<8x512xf32>, vector<16x512xf32> -> vector<16x512xf32>
    %269 = arith.addf %265, %268 : vector<16x512xf32>
    %c0_136 = arith.constant 0 : index
    %c0_137 = arith.constant 0 : index
    %270 = vector.load %arg10[%c0_136, %c0_137] : memref<16x3xf32, #tpu.memory_space<vmem>>, vector<16x3xf32>
    %271 = vector.extract_strided_slice %270 {offsets = [0, 0], sizes = [16, 1], strides = [1, 1]} : vector<16x3xf32> to vector<16x1xf32>
    %272 = vector.broadcast %271 : vector<16x1xf32> to vector<16x512xf32>
    %273 = arith.addf %269, %272 : vector<16x512xf32>
    %cst_138 = arith.constant dense<0.000000e+00> : vector<16xf32>
    %274 = vector.multi_reduction <add>, %273, %cst_138 [1] : vector<16x512xf32> to vector<16xf32>
    %275 = vector.shape_cast %274 : vector<16xf32> to vector<16x1xf32>
    %cst_139 = arith.constant 5.120000e+02 : f32
    %276 = vector.broadcast %cst_139 : f32 to vector<16x1xf32>
    %277 = arith.divf %275, %276 : vector<16x1xf32>
    %278 = vector.broadcast %277 : vector<16x1xf32> to vector<16x512xf32>
    %279 = arith.subf %273, %278 : vector<16x512xf32>
    %280 = arith.mulf %279, %279 : vector<16x512xf32>
    %cst_140 = arith.constant dense<0.000000e+00> : vector<16xf32>
    %281 = vector.multi_reduction <add>, %280, %cst_140 [1] : vector<16x512xf32> to vector<16xf32>
    %282 = vector.shape_cast %281 : vector<16xf32> to vector<16x1xf32>
    %cst_141 = arith.constant 5.120000e+02 : f32
    %283 = vector.broadcast %cst_141 : f32 to vector<16x1xf32>
    %284 = arith.divf %282, %283 : vector<16x1xf32>
    %285 = vector.broadcast %277 : vector<16x1xf32> to vector<16x512xf32>
    %286 = arith.subf %273, %285 : vector<16x512xf32>
    %cst_142 = arith.constant 9.99999974E-6 : f32
    %287 = vector.broadcast %cst_142 : f32 to vector<16x1xf32>
    %288 = arith.addf %284, %287 : vector<16x1xf32>
    %289 = math.rsqrt %288 : vector<16x1xf32>
    %290 = vector.broadcast %289 : vector<16x1xf32> to vector<16x512xf32>
    %291 = arith.mulf %286, %290 : vector<16x512xf32>
    %292 = vector.extract_strided_slice %270 {offsets = [0, 1], sizes = [16, 1], strides = [1, 1]} : vector<16x3xf32> to vector<16x1xf32>
    %293 = vector.broadcast %292 : vector<16x1xf32> to vector<16x512xf32>
    %294 = arith.mulf %293, %291 : vector<16x512xf32>
    %295 = vector.extract_strided_slice %270 {offsets = [0, 2], sizes = [16, 1], strides = [1, 1]} : vector<16x3xf32> to vector<16x1xf32>
    %296 = vector.broadcast %295 : vector<16x1xf32> to vector<16x512xf32>
    %297 = arith.addf %294, %296 : vector<16x512xf32>
    %c17_i32_143 = arith.constant 17 : i32
    %298 = tpu.dynamic_rotate %199 by %c17_i32_143 dim 1 : vector<8x512xf32>, i32 -> vector<8x512xf32>
    %299 = vector.extract_strided_slice %0 {offsets = [0, 0], sizes = [1, 512], strides = [1, 1]} : vector<9x512xf32> to vector<1x512xf32>
    %300 = vector.broadcast %299 : vector<1x512xf32> to vector<8x512xf32>
    %301 = arith.mulf %298, %300 : vector<8x512xf32>
    %c16_i32_144 = arith.constant 16 : i32
    %302 = tpu.dynamic_rotate %199 by %c16_i32_144 dim 1 : vector<8x512xf32>, i32 -> vector<8x512xf32>
    %303 = vector.extract_strided_slice %0 {offsets = [1, 0], sizes = [1, 512], strides = [1, 1]} : vector<9x512xf32> to vector<1x512xf32>
    %304 = vector.broadcast %303 : vector<1x512xf32> to vector<8x512xf32>
    %305 = arith.mulf %302, %304 : vector<8x512xf32>
    %c15_i32_145 = arith.constant 15 : i32
    %306 = tpu.dynamic_rotate %199 by %c15_i32_145 dim 1 : vector<8x512xf32>, i32 -> vector<8x512xf32>
    %307 = vector.extract_strided_slice %0 {offsets = [2, 0], sizes = [1, 512], strides = [1, 1]} : vector<9x512xf32> to vector<1x512xf32>
    %308 = vector.broadcast %307 : vector<1x512xf32> to vector<8x512xf32>
    %309 = arith.mulf %306, %308 : vector<8x512xf32>
    %c1_i32_146 = arith.constant 1 : i32
    %310 = tpu.dynamic_rotate %199 by %c1_i32_146 dim 1 : vector<8x512xf32>, i32 -> vector<8x512xf32>
    %311 = vector.extract_strided_slice %0 {offsets = [3, 0], sizes = [1, 512], strides = [1, 1]} : vector<9x512xf32> to vector<1x512xf32>
    %312 = vector.broadcast %311 : vector<1x512xf32> to vector<8x512xf32>
    %313 = arith.mulf %310, %312 : vector<8x512xf32>
    %314 = vector.extract_strided_slice %0 {offsets = [4, 0], sizes = [1, 512], strides = [1, 1]} : vector<9x512xf32> to vector<1x512xf32>
    %315 = vector.broadcast %314 : vector<1x512xf32> to vector<8x512xf32>
    %316 = arith.mulf %199, %315 : vector<8x512xf32>
    %c511_i32_147 = arith.constant 511 : i32
    %317 = tpu.dynamic_rotate %199 by %c511_i32_147 dim 1 : vector<8x512xf32>, i32 -> vector<8x512xf32>
    %318 = vector.extract_strided_slice %0 {offsets = [5, 0], sizes = [1, 512], strides = [1, 1]} : vector<9x512xf32> to vector<1x512xf32>
    %319 = vector.broadcast %318 : vector<1x512xf32> to vector<8x512xf32>
    %320 = arith.mulf %317, %319 : vector<8x512xf32>
    %c497_i32_148 = arith.constant 497 : i32
    %321 = tpu.dynamic_rotate %199 by %c497_i32_148 dim 1 : vector<8x512xf32>, i32 -> vector<8x512xf32>
    %322 = vector.extract_strided_slice %0 {offsets = [6, 0], sizes = [1, 512], strides = [1, 1]} : vector<9x512xf32> to vector<1x512xf32>
    %323 = vector.broadcast %322 : vector<1x512xf32> to vector<8x512xf32>
    %324 = arith.mulf %321, %323 : vector<8x512xf32>
    %c496_i32_149 = arith.constant 496 : i32
    %325 = tpu.dynamic_rotate %199 by %c496_i32_149 dim 1 : vector<8x512xf32>, i32 -> vector<8x512xf32>
    %326 = vector.extract_strided_slice %0 {offsets = [7, 0], sizes = [1, 512], strides = [1, 1]} : vector<9x512xf32> to vector<1x512xf32>
    %327 = vector.broadcast %326 : vector<1x512xf32> to vector<8x512xf32>
    %328 = arith.mulf %325, %327 : vector<8x512xf32>
    %c495_i32_150 = arith.constant 495 : i32
    %329 = tpu.dynamic_rotate %199 by %c495_i32_150 dim 1 : vector<8x512xf32>, i32 -> vector<8x512xf32>
    %330 = vector.extract_strided_slice %0 {offsets = [8, 0], sizes = [1, 512], strides = [1, 1]} : vector<9x512xf32> to vector<1x512xf32>
    %331 = vector.broadcast %330 : vector<1x512xf32> to vector<8x512xf32>
    %332 = arith.mulf %329, %331 : vector<8x512xf32>
    %c0_151 = arith.constant 0 : index
    %c0_152 = arith.constant 0 : index
    %c0_153 = arith.constant 0 : index
    %333 = vector.load %arg11[%c0_151, %c0_152, %c0_153] : memref<9x16x8xf32, #tpu.memory_space<vmem>>, vector<1x16x8xf32>
    %334 = vector.shape_cast %333 : vector<1x16x8xf32> to vector<16x8xf32>
    %cst_154 = arith.constant dense<0.000000e+00> : vector<16x512xf32>
    %335 = tpu.matmul %334, %301, %cst_154 {dimension_numbers = #tpu.dot_dimension_numbers<[1], [0], [0], [1], [0, 0, 1, 1], [], []>} : vector<16x8xf32>, vector<8x512xf32>, vector<16x512xf32> -> vector<16x512xf32>
    %c1_155 = arith.constant 1 : index
    %c0_156 = arith.constant 0 : index
    %c0_157 = arith.constant 0 : index
    %336 = vector.load %arg11[%c1_155, %c0_156, %c0_157] : memref<9x16x8xf32, #tpu.memory_space<vmem>>, vector<1x16x8xf32>
    %337 = vector.shape_cast %336 : vector<1x16x8xf32> to vector<16x8xf32>
    %cst_158 = arith.constant dense<0.000000e+00> : vector<16x512xf32>
    %338 = tpu.matmul %337, %305, %cst_158 {dimension_numbers = #tpu.dot_dimension_numbers<[1], [0], [0], [1], [0, 0, 1, 1], [], []>} : vector<16x8xf32>, vector<8x512xf32>, vector<16x512xf32> -> vector<16x512xf32>
    %339 = arith.addf %335, %338 : vector<16x512xf32>
    %c2_159 = arith.constant 2 : index
    %c0_160 = arith.constant 0 : index
    %c0_161 = arith.constant 0 : index
    %340 = vector.load %arg11[%c2_159, %c0_160, %c0_161] : memref<9x16x8xf32, #tpu.memory_space<vmem>>, vector<1x16x8xf32>
    %341 = vector.shape_cast %340 : vector<1x16x8xf32> to vector<16x8xf32>
    %cst_162 = arith.constant dense<0.000000e+00> : vector<16x512xf32>
    %342 = tpu.matmul %341, %309, %cst_162 {dimension_numbers = #tpu.dot_dimension_numbers<[1], [0], [0], [1], [0, 0, 1, 1], [], []>} : vector<16x8xf32>, vector<8x512xf32>, vector<16x512xf32> -> vector<16x512xf32>
    %343 = arith.addf %339, %342 : vector<16x512xf32>
    %c3_163 = arith.constant 3 : index
    %c0_164 = arith.constant 0 : index
    %c0_165 = arith.constant 0 : index
    %344 = vector.load %arg11[%c3_163, %c0_164, %c0_165] : memref<9x16x8xf32, #tpu.memory_space<vmem>>, vector<1x16x8xf32>
    %345 = vector.shape_cast %344 : vector<1x16x8xf32> to vector<16x8xf32>
    %cst_166 = arith.constant dense<0.000000e+00> : vector<16x512xf32>
    %346 = tpu.matmul %345, %313, %cst_166 {dimension_numbers = #tpu.dot_dimension_numbers<[1], [0], [0], [1], [0, 0, 1, 1], [], []>} : vector<16x8xf32>, vector<8x512xf32>, vector<16x512xf32> -> vector<16x512xf32>
    %347 = arith.addf %343, %346 : vector<16x512xf32>
    %c4_167 = arith.constant 4 : index
    %c0_168 = arith.constant 0 : index
    %c0_169 = arith.constant 0 : index
    %348 = vector.load %arg11[%c4_167, %c0_168, %c0_169] : memref<9x16x8xf32, #tpu.memory_space<vmem>>, vector<1x16x8xf32>
    %349 = vector.shape_cast %348 : vector<1x16x8xf32> to vector<16x8xf32>
    %cst_170 = arith.constant dense<0.000000e+00> : vector<16x512xf32>
    %350 = tpu.matmul %349, %316, %cst_170 {dimension_numbers = #tpu.dot_dimension_numbers<[1], [0], [0], [1], [0, 0, 1, 1], [], []>} : vector<16x8xf32>, vector<8x512xf32>, vector<16x512xf32> -> vector<16x512xf32>
    %351 = arith.addf %347, %350 : vector<16x512xf32>
    %c5_171 = arith.constant 5 : index
    %c0_172 = arith.constant 0 : index
    %c0_173 = arith.constant 0 : index
    %352 = vector.load %arg11[%c5_171, %c0_172, %c0_173] : memref<9x16x8xf32, #tpu.memory_space<vmem>>, vector<1x16x8xf32>
    %353 = vector.shape_cast %352 : vector<1x16x8xf32> to vector<16x8xf32>
    %cst_174 = arith.constant dense<0.000000e+00> : vector<16x512xf32>
    %354 = tpu.matmul %353, %320, %cst_174 {dimension_numbers = #tpu.dot_dimension_numbers<[1], [0], [0], [1], [0, 0, 1, 1], [], []>} : vector<16x8xf32>, vector<8x512xf32>, vector<16x512xf32> -> vector<16x512xf32>
    %355 = arith.addf %351, %354 : vector<16x512xf32>
    %c6_175 = arith.constant 6 : index
    %c0_176 = arith.constant 0 : index
    %c0_177 = arith.constant 0 : index
    %356 = vector.load %arg11[%c6_175, %c0_176, %c0_177] : memref<9x16x8xf32, #tpu.memory_space<vmem>>, vector<1x16x8xf32>
    %357 = vector.shape_cast %356 : vector<1x16x8xf32> to vector<16x8xf32>
    %cst_178 = arith.constant dense<0.000000e+00> : vector<16x512xf32>
    %358 = tpu.matmul %357, %324, %cst_178 {dimension_numbers = #tpu.dot_dimension_numbers<[1], [0], [0], [1], [0, 0, 1, 1], [], []>} : vector<16x8xf32>, vector<8x512xf32>, vector<16x512xf32> -> vector<16x512xf32>
    %359 = arith.addf %355, %358 : vector<16x512xf32>
    %c7_179 = arith.constant 7 : index
    %c0_180 = arith.constant 0 : index
    %c0_181 = arith.constant 0 : index
    %360 = vector.load %arg11[%c7_179, %c0_180, %c0_181] : memref<9x16x8xf32, #tpu.memory_space<vmem>>, vector<1x16x8xf32>
    %361 = vector.shape_cast %360 : vector<1x16x8xf32> to vector<16x8xf32>
    %cst_182 = arith.constant dense<0.000000e+00> : vector<16x512xf32>
    %362 = tpu.matmul %361, %328, %cst_182 {dimension_numbers = #tpu.dot_dimension_numbers<[1], [0], [0], [1], [0, 0, 1, 1], [], []>} : vector<16x8xf32>, vector<8x512xf32>, vector<16x512xf32> -> vector<16x512xf32>
    %363 = arith.addf %359, %362 : vector<16x512xf32>
    %c8_183 = arith.constant 8 : index
    %c0_184 = arith.constant 0 : index
    %c0_185 = arith.constant 0 : index
    %364 = vector.load %arg11[%c8_183, %c0_184, %c0_185] : memref<9x16x8xf32, #tpu.memory_space<vmem>>, vector<1x16x8xf32>
    %365 = vector.shape_cast %364 : vector<1x16x8xf32> to vector<16x8xf32>
    %cst_186 = arith.constant dense<0.000000e+00> : vector<16x512xf32>
    %366 = tpu.matmul %365, %332, %cst_186 {dimension_numbers = #tpu.dot_dimension_numbers<[1], [0], [0], [1], [0, 0, 1, 1], [], []>} : vector<16x8xf32>, vector<8x512xf32>, vector<16x512xf32> -> vector<16x512xf32>
    %367 = arith.addf %363, %366 : vector<16x512xf32>
    %c0_187 = arith.constant 0 : index
    %c0_188 = arith.constant 0 : index
    %368 = vector.load %arg12[%c0_187, %c0_188] : memref<16x3xf32, #tpu.memory_space<vmem>>, vector<16x3xf32>
    %369 = vector.extract_strided_slice %368 {offsets = [0, 0], sizes = [16, 1], strides = [1, 1]} : vector<16x3xf32> to vector<16x1xf32>
    %370 = vector.broadcast %369 : vector<16x1xf32> to vector<16x512xf32>
    %371 = arith.addf %367, %370 : vector<16x512xf32>
    %cst_189 = arith.constant dense<0.000000e+00> : vector<16xf32>
    %372 = vector.multi_reduction <add>, %371, %cst_189 [1] : vector<16x512xf32> to vector<16xf32>
    %373 = vector.shape_cast %372 : vector<16xf32> to vector<16x1xf32>
    %cst_190 = arith.constant 5.120000e+02 : f32
    %374 = vector.broadcast %cst_190 : f32 to vector<16x1xf32>
    %375 = arith.divf %373, %374 : vector<16x1xf32>
    %376 = vector.broadcast %375 : vector<16x1xf32> to vector<16x512xf32>
    %377 = arith.subf %371, %376 : vector<16x512xf32>
    %378 = arith.mulf %377, %377 : vector<16x512xf32>
    %cst_191 = arith.constant dense<0.000000e+00> : vector<16xf32>
    %379 = vector.multi_reduction <add>, %378, %cst_191 [1] : vector<16x512xf32> to vector<16xf32>
    %380 = vector.shape_cast %379 : vector<16xf32> to vector<16x1xf32>
    %cst_192 = arith.constant 5.120000e+02 : f32
    %381 = vector.broadcast %cst_192 : f32 to vector<16x1xf32>
    %382 = arith.divf %380, %381 : vector<16x1xf32>
    %383 = vector.broadcast %375 : vector<16x1xf32> to vector<16x512xf32>
    %384 = arith.subf %371, %383 : vector<16x512xf32>
    %cst_193 = arith.constant 9.99999974E-6 : f32
    %385 = vector.broadcast %cst_193 : f32 to vector<16x1xf32>
    %386 = arith.addf %382, %385 : vector<16x1xf32>
    %387 = math.rsqrt %386 : vector<16x1xf32>
    %388 = vector.broadcast %387 : vector<16x1xf32> to vector<16x512xf32>
    %389 = arith.mulf %384, %388 : vector<16x512xf32>
    %390 = vector.extract_strided_slice %368 {offsets = [0, 1], sizes = [16, 1], strides = [1, 1]} : vector<16x3xf32> to vector<16x1xf32>
    %391 = vector.broadcast %390 : vector<16x1xf32> to vector<16x512xf32>
    %392 = arith.mulf %391, %389 : vector<16x512xf32>
    %393 = vector.extract_strided_slice %368 {offsets = [0, 2], sizes = [16, 1], strides = [1, 1]} : vector<16x3xf32> to vector<16x1xf32>
    %394 = vector.broadcast %393 : vector<16x1xf32> to vector<16x512xf32>
    %395 = arith.addf %392, %394 : vector<16x512xf32>
    %396 = vector.extract_strided_slice %297 {offsets = [0, 0], sizes = [8, 512], strides = [1, 1]} : vector<16x512xf32> to vector<8x512xf32>
    %397 = vector.extract_strided_slice %297 {offsets = [8, 0], sizes = [8, 512], strides = [1, 1]} : vector<16x512xf32> to vector<8x512xf32>
    %398 = vector.extract_strided_slice %395 {offsets = [0, 0], sizes = [8, 512], strides = [1, 1]} : vector<16x512xf32> to vector<8x512xf32>
    %399 = vector.extract_strided_slice %395 {offsets = [8, 0], sizes = [8, 512], strides = [1, 1]} : vector<16x512xf32> to vector<8x512xf32>
    %c0_194 = arith.constant 0 : index
    %c0_195 = arith.constant 0 : index
    %400 = vector.load %arg14[%c0_194, %c0_195] : memref<12x3xf32, #tpu.memory_space<vmem>>, vector<12x3xf32>
    %c0_196 = arith.constant 0 : index
    %c0_197 = arith.constant 0 : index
    %401 = vector.load %arg16[%c0_196, %c0_197] : memref<12x3xf32, #tpu.memory_space<vmem>>, vector<12x3xf32>
    %c0_198 = arith.constant 0 : index
    %c0_199 = arith.constant 0 : index
    %402 = vector.load %arg13[%c0_198, %c0_199] : memref<12x4xf32, #tpu.memory_space<vmem>>, vector<12x4xf32>
    %cst_200 = arith.constant dense<0.000000e+00> : vector<12x512xf32>
    %403 = tpu.matmul %402, %2, %cst_200 {dimension_numbers = #tpu.dot_dimension_numbers<[1], [0], [0], [1], [0, 0, 1, 1], [], []>} : vector<12x4xf32>, vector<4x512xf32>, vector<12x512xf32> -> vector<12x512xf32>
    %404 = vector.extract_strided_slice %400 {offsets = [0, 0], sizes = [12, 1], strides = [1, 1]} : vector<12x3xf32> to vector<12x1xf32>
    %405 = vector.broadcast %404 : vector<12x1xf32> to vector<12x512xf32>
    %406 = arith.addf %403, %405 : vector<12x512xf32>
    %cst_201 = arith.constant dense<0.000000e+00> : vector<12xf32>
    %407 = vector.multi_reduction <add>, %406, %cst_201 [1] : vector<12x512xf32> to vector<12xf32>
    %408 = vector.shape_cast %407 : vector<12xf32> to vector<12x1xf32>
    %cst_202 = arith.constant 5.120000e+02 : f32
    %409 = vector.broadcast %cst_202 : f32 to vector<12x1xf32>
    %410 = arith.divf %408, %409 : vector<12x1xf32>
    %411 = vector.broadcast %410 : vector<12x1xf32> to vector<12x512xf32>
    %412 = arith.subf %406, %411 : vector<12x512xf32>
    %413 = arith.mulf %412, %412 : vector<12x512xf32>
    %cst_203 = arith.constant dense<0.000000e+00> : vector<12xf32>
    %414 = vector.multi_reduction <add>, %413, %cst_203 [1] : vector<12x512xf32> to vector<12xf32>
    %415 = vector.shape_cast %414 : vector<12xf32> to vector<12x1xf32>
    %cst_204 = arith.constant 5.120000e+02 : f32
    %416 = vector.broadcast %cst_204 : f32 to vector<12x1xf32>
    %417 = arith.divf %415, %416 : vector<12x1xf32>
    %418 = vector.broadcast %410 : vector<12x1xf32> to vector<12x512xf32>
    %419 = arith.subf %406, %418 : vector<12x512xf32>
    %cst_205 = arith.constant 9.99999974E-6 : f32
    %420 = vector.broadcast %cst_205 : f32 to vector<12x1xf32>
    %421 = arith.addf %417, %420 : vector<12x1xf32>
    %422 = math.rsqrt %421 : vector<12x1xf32>
    %423 = vector.broadcast %422 : vector<12x1xf32> to vector<12x512xf32>
    %424 = arith.mulf %419, %423 : vector<12x512xf32>
    %425 = vector.extract_strided_slice %400 {offsets = [0, 1], sizes = [12, 1], strides = [1, 1]} : vector<12x3xf32> to vector<12x1xf32>
    %426 = vector.broadcast %425 : vector<12x1xf32> to vector<12x512xf32>
    %427 = arith.mulf %426, %424 : vector<12x512xf32>
    %428 = vector.extract_strided_slice %400 {offsets = [0, 2], sizes = [12, 1], strides = [1, 1]} : vector<12x3xf32> to vector<12x1xf32>
    %429 = vector.broadcast %428 : vector<12x1xf32> to vector<12x512xf32>
    %430 = arith.addf %427, %429 : vector<12x512xf32>
    %c0_206 = arith.constant 0 : index
    %c0_207 = arith.constant 0 : index
    %431 = vector.load %arg15[%c0_206, %c0_207] : memref<12x4xf32, #tpu.memory_space<vmem>>, vector<12x4xf32>
    %cst_208 = arith.constant dense<0.000000e+00> : vector<12x512xf32>
    %432 = tpu.matmul %431, %3, %cst_208 {dimension_numbers = #tpu.dot_dimension_numbers<[1], [0], [0], [1], [0, 0, 1, 1], [], []>} : vector<12x4xf32>, vector<4x512xf32>, vector<12x512xf32> -> vector<12x512xf32>
    %433 = vector.extract_strided_slice %401 {offsets = [0, 0], sizes = [12, 1], strides = [1, 1]} : vector<12x3xf32> to vector<12x1xf32>
    %434 = vector.broadcast %433 : vector<12x1xf32> to vector<12x512xf32>
    %435 = arith.addf %432, %434 : vector<12x512xf32>
    %cst_209 = arith.constant dense<0.000000e+00> : vector<12xf32>
    %436 = vector.multi_reduction <add>, %435, %cst_209 [1] : vector<12x512xf32> to vector<12xf32>
    %437 = vector.shape_cast %436 : vector<12xf32> to vector<12x1xf32>
    %cst_210 = arith.constant 5.120000e+02 : f32
    %438 = vector.broadcast %cst_210 : f32 to vector<12x1xf32>
    %439 = arith.divf %437, %438 : vector<12x1xf32>
    %440 = vector.broadcast %439 : vector<12x1xf32> to vector<12x512xf32>
    %441 = arith.subf %435, %440 : vector<12x512xf32>
    %442 = arith.mulf %441, %441 : vector<12x512xf32>
    %cst_211 = arith.constant dense<0.000000e+00> : vector<12xf32>
    %443 = vector.multi_reduction <add>, %442, %cst_211 [1] : vector<12x512xf32> to vector<12xf32>
    %444 = vector.shape_cast %443 : vector<12xf32> to vector<12x1xf32>
    %cst_212 = arith.constant 5.120000e+02 : f32
    %445 = vector.broadcast %cst_212 : f32 to vector<12x1xf32>
    %446 = arith.divf %444, %445 : vector<12x1xf32>
    %447 = vector.broadcast %439 : vector<12x1xf32> to vector<12x512xf32>
    %448 = arith.subf %435, %447 : vector<12x512xf32>
    %cst_213 = arith.constant 9.99999974E-6 : f32
    %449 = vector.broadcast %cst_213 : f32 to vector<12x1xf32>
    %450 = arith.addf %446, %449 : vector<12x1xf32>
    %451 = math.rsqrt %450 : vector<12x1xf32>
    %452 = vector.broadcast %451 : vector<12x1xf32> to vector<12x512xf32>
    %453 = arith.mulf %448, %452 : vector<12x512xf32>
    %454 = vector.extract_strided_slice %401 {offsets = [0, 1], sizes = [12, 1], strides = [1, 1]} : vector<12x3xf32> to vector<12x1xf32>
    %455 = vector.broadcast %454 : vector<12x1xf32> to vector<12x512xf32>
    %456 = arith.mulf %455, %453 : vector<12x512xf32>
    %457 = vector.extract_strided_slice %401 {offsets = [0, 2], sizes = [12, 1], strides = [1, 1]} : vector<12x3xf32> to vector<12x1xf32>
    %458 = vector.broadcast %457 : vector<12x1xf32> to vector<12x512xf32>
    %459 = arith.addf %456, %458 : vector<12x512xf32>
    %460 = arith.subf %397, %398 : vector<8x512xf32>
    %461 = arith.mulf %460, %460 : vector<8x512xf32>
    %462 = vector.extract_strided_slice %1 {offsets = [0, 0], sizes = [1, 512], strides = [1, 1]} : vector<2x512xf32> to vector<1x512xf32>
    %463 = vector.broadcast %462 : vector<1x512xf32> to vector<8x512xf32>
    %464 = arith.mulf %461, %463 : vector<8x512xf32>
    %cst_214 = arith.constant dense<0.000000e+00> : vector<8xf32>
    %465 = vector.multi_reduction <add>, %464, %cst_214 [1] : vector<8x512xf32> to vector<8xf32>
    %466 = vector.shape_cast %465 : vector<8xf32> to vector<8x1xf32>
    %467 = vector.extract_strided_slice %1 {offsets = [1, 0], sizes = [1, 512], strides = [1, 1]} : vector<2x512xf32> to vector<1x512xf32>
    %468 = vector.broadcast %467 : vector<1x512xf32> to vector<8x512xf32>
    %469 = arith.mulf %461, %468 : vector<8x512xf32>
    %cst_215 = arith.constant dense<0.000000e+00> : vector<8xf32>
    %470 = vector.multi_reduction <add>, %469, %cst_215 [1] : vector<8x512xf32> to vector<8xf32>
    %471 = vector.shape_cast %470 : vector<8xf32> to vector<8x1xf32>
    %472 = tpu.concatenate %466, %471 in 1 : vector<8x1xf32>, vector<8x1xf32> -> vector<8x2xf32>
    %473 = arith.subf %397, %396 : vector<8x512xf32>
    %474 = arith.mulf %473, %473 : vector<8x512xf32>
    %475 = vector.extract_strided_slice %1 {offsets = [0, 0], sizes = [1, 512], strides = [1, 1]} : vector<2x512xf32> to vector<1x512xf32>
    %476 = vector.broadcast %475 : vector<1x512xf32> to vector<8x512xf32>
    %477 = arith.mulf %474, %476 : vector<8x512xf32>
    %cst_216 = arith.constant dense<0.000000e+00> : vector<8xf32>
    %478 = vector.multi_reduction <add>, %477, %cst_216 [1] : vector<8x512xf32> to vector<8xf32>
    %479 = vector.shape_cast %478 : vector<8xf32> to vector<8x1xf32>
    %480 = vector.extract_strided_slice %1 {offsets = [1, 0], sizes = [1, 512], strides = [1, 1]} : vector<2x512xf32> to vector<1x512xf32>
    %481 = vector.broadcast %480 : vector<1x512xf32> to vector<8x512xf32>
    %482 = arith.mulf %474, %481 : vector<8x512xf32>
    %cst_217 = arith.constant dense<0.000000e+00> : vector<8xf32>
    %483 = vector.multi_reduction <add>, %482, %cst_217 [1] : vector<8x512xf32> to vector<8xf32>
    %484 = vector.shape_cast %483 : vector<8xf32> to vector<8x1xf32>
    %485 = tpu.concatenate %479, %484 in 1 : vector<8x1xf32>, vector<8x1xf32> -> vector<8x2xf32>
    %486 = arith.subf %399, %396 : vector<8x512xf32>
    %487 = arith.mulf %486, %486 : vector<8x512xf32>
    %488 = vector.extract_strided_slice %1 {offsets = [0, 0], sizes = [1, 512], strides = [1, 1]} : vector<2x512xf32> to vector<1x512xf32>
    %489 = vector.broadcast %488 : vector<1x512xf32> to vector<8x512xf32>
    %490 = arith.mulf %487, %489 : vector<8x512xf32>
    %cst_218 = arith.constant dense<0.000000e+00> : vector<8xf32>
    %491 = vector.multi_reduction <add>, %490, %cst_218 [1] : vector<8x512xf32> to vector<8xf32>
    %492 = vector.shape_cast %491 : vector<8xf32> to vector<8x1xf32>
    %493 = vector.extract_strided_slice %1 {offsets = [1, 0], sizes = [1, 512], strides = [1, 1]} : vector<2x512xf32> to vector<1x512xf32>
    %494 = vector.broadcast %493 : vector<1x512xf32> to vector<8x512xf32>
    %495 = arith.mulf %487, %494 : vector<8x512xf32>
    %cst_219 = arith.constant dense<0.000000e+00> : vector<8xf32>
    %496 = vector.multi_reduction <add>, %495, %cst_219 [1] : vector<8x512xf32> to vector<8xf32>
    %497 = vector.shape_cast %496 : vector<8xf32> to vector<8x1xf32>
    %498 = tpu.concatenate %492, %497 in 1 : vector<8x1xf32>, vector<8x1xf32> -> vector<8x2xf32>
    %499 = arith.subf %399, %398 : vector<8x512xf32>
    %500 = arith.mulf %499, %499 : vector<8x512xf32>
    %501 = vector.extract_strided_slice %1 {offsets = [0, 0], sizes = [1, 512], strides = [1, 1]} : vector<2x512xf32> to vector<1x512xf32>
    %502 = vector.broadcast %501 : vector<1x512xf32> to vector<8x512xf32>
    %503 = arith.mulf %500, %502 : vector<8x512xf32>
    %cst_220 = arith.constant dense<0.000000e+00> : vector<8xf32>
    %504 = vector.multi_reduction <add>, %503, %cst_220 [1] : vector<8x512xf32> to vector<8xf32>
    %505 = vector.shape_cast %504 : vector<8xf32> to vector<8x1xf32>
    %506 = vector.extract_strided_slice %1 {offsets = [1, 0], sizes = [1, 512], strides = [1, 1]} : vector<2x512xf32> to vector<1x512xf32>
    %507 = vector.broadcast %506 : vector<1x512xf32> to vector<8x512xf32>
    %508 = arith.mulf %500, %507 : vector<8x512xf32>
    %cst_221 = arith.constant dense<0.000000e+00> : vector<8xf32>
    %509 = vector.multi_reduction <add>, %508, %cst_221 [1] : vector<8x512xf32> to vector<8xf32>
    %510 = vector.shape_cast %509 : vector<8xf32> to vector<8x1xf32>
    %511 = tpu.concatenate %505, %510 in 1 : vector<8x1xf32>, vector<8x1xf32> -> vector<8x2xf32>
    %c0_222 = arith.constant 0 : index
    %c0_223 = arith.constant 0 : index
    %512 = vector.load %arg17[%c0_222, %c0_223] : memref<8x512xf32, #tpu.memory_space<vmem>>, vector<8x512xf32>
    tpu.vector_store %arg17[%c0_222, %c0_223], %396 {strides = array<i32>} : memref<8x512xf32, #tpu.memory_space<vmem>>, vector<8x512xf32>,
    %c0_224 = arith.constant 0 : index
    %c0_225 = arith.constant 0 : index
    %513 = vector.load %arg18[%c0_224, %c0_225] : memref<8x512xf32, #tpu.memory_space<vmem>>, vector<8x512xf32>
    tpu.vector_store %arg18[%c0_224, %c0_225], %397 {strides = array<i32>} : memref<8x512xf32, #tpu.memory_space<vmem>>, vector<8x512xf32>,
    %c0_226 = arith.constant 0 : index
    %c0_227 = arith.constant 0 : index
    %514 = vector.load %arg19[%c0_226, %c0_227] : memref<8x512xf32, #tpu.memory_space<vmem>>, vector<8x512xf32>
    tpu.vector_store %arg19[%c0_226, %c0_227], %398 {strides = array<i32>} : memref<8x512xf32, #tpu.memory_space<vmem>>, vector<8x512xf32>,
    %c0_228 = arith.constant 0 : index
    %c0_229 = arith.constant 0 : index
    %515 = vector.load %arg20[%c0_228, %c0_229] : memref<8x512xf32, #tpu.memory_space<vmem>>, vector<8x512xf32>
    tpu.vector_store %arg20[%c0_228, %c0_229], %399 {strides = array<i32>} : memref<8x512xf32, #tpu.memory_space<vmem>>, vector<8x512xf32>,
    %c0_230 = arith.constant 0 : index
    %c0_231 = arith.constant 0 : index
    %516 = vector.load %arg21[%c0_230, %c0_231] : memref<12x512xf32, #tpu.memory_space<vmem>>, vector<12x512xf32>
    tpu.vector_store %arg21[%c0_230, %c0_231], %430 {strides = array<i32>} : memref<12x512xf32, #tpu.memory_space<vmem>>, vector<12x512xf32>,
    %c0_232 = arith.constant 0 : index
    %c0_233 = arith.constant 0 : index
    %517 = vector.load %arg22[%c0_232, %c0_233] : memref<12x512xf32, #tpu.memory_space<vmem>>, vector<12x512xf32>
    tpu.vector_store %arg22[%c0_232, %c0_233], %459 {strides = array<i32>} : memref<12x512xf32, #tpu.memory_space<vmem>>, vector<12x512xf32>,
    %518 = tpu.concatenate %472, %485, %498, %511 in 1 : vector<8x2xf32>, vector<8x2xf32>, vector<8x2xf32>, vector<8x2xf32> -> vector<8x8xf32>
    %c0_234 = arith.constant 0 : index
    %c0_235 = arith.constant 0 : index
    %519 = vector.load %arg23[%c0_234, %c0_235] : memref<8x8xf32, #tpu.memory_space<vmem>>, vector<8x8xf32>
    tpu.vector_store %arg23[%c0_234, %c0_235], %518 {strides = array<i32>} : memref<8x8xf32, #tpu.memory_space<vmem>>, vector<8x8xf32>,
    return
  }
  func.func @transform_0(%arg0: i32) -> (i32, i32) {
    %c0_i32 = arith.constant 0 : i32
    %c0_i32_0 = arith.constant 0 : i32
    %c0_i32_1 = arith.constant 0 : i32
    return %c0_i32, %c0_i32_0 : i32, i32
  }
  func.func @transform_1(%arg0: i32) -> (i32, i32) {
    %c0_i32 = arith.constant 0 : i32
    %c0_i32_0 = arith.constant 0 : i32
    %c0_i32_1 = arith.constant 0 : i32
    return %c0_i32, %c0_i32_0 : i32, i32
  }
  func.func @transform_2(%arg0: i32) -> (i32, i32) {
    %c0_i32 = arith.constant 0 : i32
    %c0_i32_0 = arith.constant 0 : i32
    %c0_i32_1 = arith.constant 0 : i32
    return %c0_i32, %c0_i32_0 : i32, i32
  }
  func.func @transform_3(%arg0: i32) -> (i32, i32) {
    %c0_i32 = arith.constant 0 : i32
    %c0_i32_0 = arith.constant 0 : i32
    %c0_i32_1 = arith.constant 0 : i32
    return %c0_i32, %c0_i32_0 : i32, i32
  }
  func.func @transform_4(%arg0: i32) -> (i32, i32, i32) {
    %c0_i32 = arith.constant 0 : i32
    %c0_i32_0 = arith.constant 0 : i32
    %c0_i32_1 = arith.constant 0 : i32
    %c0_i32_2 = arith.constant 0 : i32
    return %c0_i32, %c0_i32_0, %c0_i32_1 : i32, i32, i32
  }
  func.func @transform_5(%arg0: i32) -> (i32, i32) {
    %c0_i32 = arith.constant 0 : i32
    %c0_i32_0 = arith.constant 0 : i32
    %c0_i32_1 = arith.constant 0 : i32
    return %c0_i32, %c0_i32_0 : i32, i32
  }
  func.func @transform_6(%arg0: i32) -> (i32, i32, i32) {
    %c0_i32 = arith.constant 0 : i32
    %c0_i32_0 = arith.constant 0 : i32
    %c0_i32_1 = arith.constant 0 : i32
    %c0_i32_2 = arith.constant 0 : i32
    return %c0_i32, %c0_i32_0, %c0_i32_1 : i32, i32, i32
  }
  func.func @transform_7(%arg0: i32) -> (i32, i32) {
    %c0_i32 = arith.constant 0 : i32
    %c0_i32_0 = arith.constant 0 : i32
    %c0_i32_1 = arith.constant 0 : i32
    return %c0_i32, %c0_i32_0 : i32, i32
  }
  func.func @transform_8(%arg0: i32) -> (i32, i32, i32) {
    %c0_i32 = arith.constant 0 : i32
    %c0_i32_0 = arith.constant 0 : i32
    %c0_i32_1 = arith.constant 0 : i32
    %c0_i32_2 = arith.constant 0 : i32
    return %c0_i32, %c0_i32_0, %c0_i32_1 : i32, i32, i32
  }
  func.func @transform_9(%arg0: i32) -> (i32, i32) {
    %c0_i32 = arith.constant 0 : i32
    %c0_i32_0 = arith.constant 0 : i32
    %c0_i32_1 = arith.constant 0 : i32
    return %c0_i32, %c0_i32_0 : i32, i32
  }
  func.func @transform_10(%arg0: i32) -> (i32, i32, i32) {
    %c0_i32 = arith.constant 0 : i32
    %c0_i32_0 = arith.constant 0 : i32
    %c0_i32_1 = arith.constant 0 : i32
    %c0_i32_2 = arith.constant 0 : i32
    return %c0_i32, %c0_i32_0, %c0_i32_1 : i32, i32, i32
  }
  func.func @transform_11(%arg0: i32) -> (i32, i32) {
    %c0_i32 = arith.constant 0 : i32
    %c0_i32_0 = arith.constant 0 : i32
    %c0_i32_1 = arith.constant 0 : i32
    return %c0_i32, %c0_i32_0 : i32, i32
  }
  func.func @transform_12(%arg0: i32) -> (i32, i32) {
    %c0_i32 = arith.constant 0 : i32
    %c0_i32_0 = arith.constant 0 : i32
    %c0_i32_1 = arith.constant 0 : i32
    return %c0_i32, %c0_i32_0 : i32, i32
  }
  func.func @transform_13(%arg0: i32) -> (i32, i32) {
    %c0_i32 = arith.constant 0 : i32
    %c0_i32_0 = arith.constant 0 : i32
    %c0_i32_1 = arith.constant 0 : i32
    return %c0_i32, %c0_i32_0 : i32, i32
  }
  func.func @transform_14(%arg0: i32) -> (i32, i32) {
    %c0_i32 = arith.constant 0 : i32
    %c0_i32_0 = arith.constant 0 : i32
    %c0_i32_1 = arith.constant 0 : i32
    return %c0_i32, %c0_i32_0 : i32, i32
  }
  func.func @transform_15(%arg0: i32) -> (i32, i32) {
    %c0_i32 = arith.constant 0 : i32
    %c0_i32_0 = arith.constant 0 : i32
    %c0_i32_1 = arith.constant 0 : i32
    return %c0_i32, %c0_i32_0 : i32, i32
  }
  func.func @transform_16(%arg0: i32) -> (i32, i32) {
    %c0_i32 = arith.constant 0 : i32
    %c0_i32_0 = arith.constant 0 : i32
    %c0_i32_1 = arith.constant 0 : i32
    return %c0_i32, %c0_i32_0 : i32, i32
  }
  func.func @transform_17(%arg0: i32) -> (i32, i32) {
    %c0_i32 = arith.constant 0 : i32
    %c0_i32_0 = arith.constant 0 : i32
    %c0_i32_1 = arith.constant 0 : i32
    return %c0_i32, %c0_i32_0 : i32, i32
  }
  func.func @transform_18(%arg0: i32) -> (i32, i32) {
    %c0_i32 = arith.constant 0 : i32
    %c0_i32_0 = arith.constant 0 : i32
    %c0_i32_1 = arith.constant 0 : i32
    return %c0_i32, %c0_i32_0 : i32, i32
  }
  func.func @transform_19(%arg0: i32) -> (i32, i32) {
    %c0_i32 = arith.constant 0 : i32
    %c0_i32_0 = arith.constant 0 : i32
    %c0_i32_1 = arith.constant 0 : i32
    return %c0_i32, %c0_i32_0 : i32, i32
  }
  func.func @transform_20(%arg0: i32) -> (i32, i32) {
    %c0_i32 = arith.constant 0 : i32
    %c0_i32_0 = arith.constant 0 : i32
    %c0_i32_1 = arith.constant 0 : i32
    return %c0_i32, %c0_i32_0 : i32, i32
  }
  func.func @transform_21(%arg0: i32) -> (i32, i32) {
    %c0_i32 = arith.constant 0 : i32
    %c0_i32_0 = arith.constant 0 : i32
    %c0_i32_1 = arith.constant 0 : i32
    return %c0_i32, %c0_i32_0 : i32, i32
  }
  func.func @transform_22(%arg0: i32) -> (i32, i32) {
    %c0_i32 = arith.constant 0 : i32
    %c0_i32_0 = arith.constant 0 : i32
    %c0_i32_1 = arith.constant 0 : i32
    return %c0_i32, %c0_i32_0 : i32, i32
  }
}

module attributes {stable_mosaic.version = 11 : i64} {
  func.func @_fusion_kernel(%arg0: i32, %arg1: memref<1x12x8xf32, #tpu.memory_space<vmem>>, %arg2: memref<1x12x8xf32, #tpu.memory_space<vmem>>, %arg3: memref<1x12x8xf32, #tpu.memory_space<vmem>>, %arg4: memref<1x12x8xf32, #tpu.memory_space<vmem>>, %arg5: memref<8x256xf32, #tpu.memory_space<vmem>>, %arg6: memref<8x256xf32, #tpu.memory_space<vmem>>, %arg7: memref<8x256xf32, #tpu.memory_space<vmem>>, %arg8: memref<8x256xf32, #tpu.memory_space<vmem>>, %arg9: memref<12x256xf32, #tpu.memory_space<vmem>>, %arg10: memref<12x256xf32, #tpu.memory_space<vmem>>, %arg11: memref<1x12x256xf32, #tpu.memory_space<vmem>>, %arg12: memref<1x12x256xf32, #tpu.memory_space<vmem>>) attributes {dimension_semantics = [#tpu.dimension_semantics<parallel>], iteration_bounds = array<i64: 2>, scalar_prefetch = 0 : i64, scratch_operands = 0 : i64, tpu.core_type = #tpu.core_type<tc>, window_params = [{transform_indices = @transform_0, window_bounds = array<i64: 1, 12, 8>}, {transform_indices = @transform_1, window_bounds = array<i64: 1, 12, 8>}, {transform_indices = @transform_2, window_bounds = array<i64: 1, 12, 8>}, {transform_indices = @transform_3, window_bounds = array<i64: 1, 12, 8>}, {transform_indices = @transform_4, window_bounds = array<i64: 8, 256>}, {transform_indices = @transform_5, window_bounds = array<i64: 8, 256>}, {transform_indices = @transform_6, window_bounds = array<i64: 8, 256>}, {transform_indices = @transform_7, window_bounds = array<i64: 8, 256>}, {transform_indices = @transform_8, window_bounds = array<i64: 12, 256>}, {transform_indices = @transform_9, window_bounds = array<i64: 12, 256>}, {transform_indices = @transform_10, window_bounds = array<i64: 1, 12, 256>}, {transform_indices = @transform_11, window_bounds = array<i64: 1, 12, 256>}]} {
    %c0 = arith.constant 0 : index
    %c0_0 = arith.constant 0 : index
    %c0_1 = arith.constant 0 : index
    %0 = vector.load %arg1[%c0, %c0_0, %c0_1] : memref<1x12x8xf32, #tpu.memory_space<vmem>>, vector<1x12x8xf32>
    %1 = vector.shape_cast %0 : vector<1x12x8xf32> to vector<12x8xf32>
    %c0_2 = arith.constant 0 : index
    %c0_3 = arith.constant 0 : index
    %c0_4 = arith.constant 0 : index
    %2 = vector.load %arg2[%c0_2, %c0_3, %c0_4] : memref<1x12x8xf32, #tpu.memory_space<vmem>>, vector<1x12x8xf32>
    %3 = vector.shape_cast %2 : vector<1x12x8xf32> to vector<12x8xf32>
    %c0_5 = arith.constant 0 : index
    %c0_6 = arith.constant 0 : index
    %c0_7 = arith.constant 0 : index
    %4 = vector.load %arg3[%c0_5, %c0_6, %c0_7] : memref<1x12x8xf32, #tpu.memory_space<vmem>>, vector<1x12x8xf32>
    %5 = vector.shape_cast %4 : vector<1x12x8xf32> to vector<12x8xf32>
    %c0_8 = arith.constant 0 : index
    %c0_9 = arith.constant 0 : index
    %c0_10 = arith.constant 0 : index
    %6 = vector.load %arg4[%c0_8, %c0_9, %c0_10] : memref<1x12x8xf32, #tpu.memory_space<vmem>>, vector<1x12x8xf32>
    %7 = vector.shape_cast %6 : vector<1x12x8xf32> to vector<12x8xf32>
    %c0_11 = arith.constant 0 : index
    %c0_12 = arith.constant 0 : index
    %8 = vector.load %arg5[%c0_11, %c0_12] : memref<8x256xf32, #tpu.memory_space<vmem>>, vector<8x256xf32>
    %cst = arith.constant dense<0.000000e+00> : vector<12x256xf32>
    %9 = tpu.matmul %1, %8, %cst {dimension_numbers = #tpu.dot_dimension_numbers<[1], [0], [0], [1], [0, 0, 1, 1], [], []>} : vector<12x8xf32>, vector<8x256xf32>, vector<12x256xf32> -> vector<12x256xf32>
    %c0_13 = arith.constant 0 : index
    %c0_14 = arith.constant 0 : index
    %10 = vector.load %arg8[%c0_13, %c0_14] : memref<8x256xf32, #tpu.memory_space<vmem>>, vector<8x256xf32>
    %cst_15 = arith.constant dense<0.000000e+00> : vector<12x256xf32>
    %11 = tpu.matmul %3, %10, %cst_15 {dimension_numbers = #tpu.dot_dimension_numbers<[1], [0], [0], [1], [0, 0, 1, 1], [], []>} : vector<12x8xf32>, vector<8x256xf32>, vector<12x256xf32> -> vector<12x256xf32>
    %12 = arith.addf %9, %11 : vector<12x256xf32>
    %c0_16 = arith.constant 0 : index
    %c0_17 = arith.constant 0 : index
    %13 = vector.load %arg7[%c0_16, %c0_17] : memref<8x256xf32, #tpu.memory_space<vmem>>, vector<8x256xf32>
    %cst_18 = arith.constant dense<0.000000e+00> : vector<12x256xf32>
    %14 = tpu.matmul %5, %13, %cst_18 {dimension_numbers = #tpu.dot_dimension_numbers<[1], [0], [0], [1], [0, 0, 1, 1], [], []>} : vector<12x8xf32>, vector<8x256xf32>, vector<12x256xf32> -> vector<12x256xf32>
    %c0_19 = arith.constant 0 : index
    %c0_20 = arith.constant 0 : index
    %15 = vector.load %arg6[%c0_19, %c0_20] : memref<8x256xf32, #tpu.memory_space<vmem>>, vector<8x256xf32>
    %cst_21 = arith.constant dense<0.000000e+00> : vector<12x256xf32>
    %16 = tpu.matmul %7, %15, %cst_21 {dimension_numbers = #tpu.dot_dimension_numbers<[1], [0], [0], [1], [0, 0, 1, 1], [], []>} : vector<12x8xf32>, vector<8x256xf32>, vector<12x256xf32> -> vector<12x256xf32>
    %17 = arith.addf %14, %16 : vector<12x256xf32>
    %c0_22 = arith.constant 0 : index
    %c0_23 = arith.constant 0 : index
    %18 = vector.load %arg9[%c0_22, %c0_23] : memref<12x256xf32, #tpu.memory_space<vmem>>, vector<12x256xf32>
    %19 = arith.addf %12, %18 : vector<12x256xf32>
    %cst_24 = arith.constant 0.000000e+00 : f32
    %20 = vector.broadcast %cst_24 : f32 to vector<12x256xf32>
    %21 = arith.maximumf %19, %20 : vector<12x256xf32>
    %c0_25 = arith.constant 0 : index
    %c0_26 = arith.constant 0 : index
    %c0_27 = arith.constant 0 : index
    %22 = vector.load %arg11[%c0_25, %c0_26, %c0_27] : memref<1x12x256xf32, #tpu.memory_space<vmem>>, vector<1x12x256xf32>
    %23 = vector.shape_cast %22 : vector<1x12x256xf32> to vector<12x256xf32>
    %24 = vector.shape_cast %21 : vector<12x256xf32> to vector<1x12x256xf32>
    tpu.vector_store %arg11[%c0_25, %c0_26, %c0_27], %24 {strides = array<i32>} : memref<1x12x256xf32, #tpu.memory_space<vmem>>, vector<1x12x256xf32>,
    %c0_28 = arith.constant 0 : index
    %c0_29 = arith.constant 0 : index
    %25 = vector.load %arg10[%c0_28, %c0_29] : memref<12x256xf32, #tpu.memory_space<vmem>>, vector<12x256xf32>
    %26 = arith.addf %17, %25 : vector<12x256xf32>
    %cst_30 = arith.constant 0.000000e+00 : f32
    %27 = vector.broadcast %cst_30 : f32 to vector<12x256xf32>
    %28 = arith.maximumf %26, %27 : vector<12x256xf32>
    %c0_31 = arith.constant 0 : index
    %c0_32 = arith.constant 0 : index
    %c0_33 = arith.constant 0 : index
    %29 = vector.load %arg12[%c0_31, %c0_32, %c0_33] : memref<1x12x256xf32, #tpu.memory_space<vmem>>, vector<1x12x256xf32>
    %30 = vector.shape_cast %29 : vector<1x12x256xf32> to vector<12x256xf32>
    %31 = vector.shape_cast %28 : vector<12x256xf32> to vector<1x12x256xf32>
    tpu.vector_store %arg12[%c0_31, %c0_32, %c0_33], %31 {strides = array<i32>} : memref<1x12x256xf32, #tpu.memory_space<vmem>>, vector<1x12x256xf32>,
    return
  }
  func.func @transform_0(%arg0: i32) -> (i32, i32, i32) {
    %c0_i32 = arith.constant 0 : i32
    %c0_i32_0 = arith.constant 0 : i32
    %c0_i32_1 = arith.constant 0 : i32
    return %arg0, %c0_i32, %c0_i32_0 : i32, i32, i32
  }
  func.func @transform_1(%arg0: i32) -> (i32, i32, i32) {
    %c0_i32 = arith.constant 0 : i32
    %c0_i32_0 = arith.constant 0 : i32
    %c0_i32_1 = arith.constant 0 : i32
    return %arg0, %c0_i32, %c0_i32_0 : i32, i32, i32
  }
  func.func @transform_2(%arg0: i32) -> (i32, i32, i32) {
    %c0_i32 = arith.constant 0 : i32
    %c0_i32_0 = arith.constant 0 : i32
    %c0_i32_1 = arith.constant 0 : i32
    return %arg0, %c0_i32, %c0_i32_0 : i32, i32, i32
  }
  func.func @transform_3(%arg0: i32) -> (i32, i32, i32) {
    %c0_i32 = arith.constant 0 : i32
    %c0_i32_0 = arith.constant 0 : i32
    %c0_i32_1 = arith.constant 0 : i32
    return %arg0, %c0_i32, %c0_i32_0 : i32, i32, i32
  }
  func.func @transform_4(%arg0: i32) -> (i32, i32) {
    %c0_i32 = arith.constant 0 : i32
    %c0_i32_0 = arith.constant 0 : i32
    return %c0_i32, %arg0 : i32, i32
  }
  func.func @transform_5(%arg0: i32) -> (i32, i32) {
    %c0_i32 = arith.constant 0 : i32
    %c0_i32_0 = arith.constant 0 : i32
    return %c0_i32, %arg0 : i32, i32
  }
  func.func @transform_6(%arg0: i32) -> (i32, i32) {
    %c0_i32 = arith.constant 0 : i32
    %c0_i32_0 = arith.constant 0 : i32
    return %c0_i32, %arg0 : i32, i32
  }
  func.func @transform_7(%arg0: i32) -> (i32, i32) {
    %c0_i32 = arith.constant 0 : i32
    %c0_i32_0 = arith.constant 0 : i32
    return %c0_i32, %arg0 : i32, i32
  }
  func.func @transform_8(%arg0: i32) -> (i32, i32) {
    %c0_i32 = arith.constant 0 : i32
    %c0_i32_0 = arith.constant 0 : i32
    return %c0_i32, %arg0 : i32, i32
  }
  func.func @transform_9(%arg0: i32) -> (i32, i32) {
    %c0_i32 = arith.constant 0 : i32
    %c0_i32_0 = arith.constant 0 : i32
    return %c0_i32, %arg0 : i32, i32
  }
  func.func @transform_10(%arg0: i32) -> (i32, i32, i32) {
    %c0_i32 = arith.constant 0 : i32
    %c0_i32_0 = arith.constant 0 : i32
    %c0_i32_1 = arith.constant 0 : i32
    return %arg0, %c0_i32, %c0_i32_0 : i32, i32, i32
  }
  func.func @transform_11(%arg0: i32) -> (i32, i32, i32) {
    %c0_i32 = arith.constant 0 : i32
    %c0_i32_0 = arith.constant 0 : i32
    %c0_i32_1 = arith.constant 0 : i32
    return %arg0, %c0_i32, %c0_i32_0 : i32, i32, i32
  }
}

</mosaic_0001>

<bundles_post_ra>
// kernel: yblock_forward.3
= control target key start
LH: loop header
LB: loop body
LE: loop exit
PB: predicated region body
PF: predicated region fallthrough
CT: control target
= control target key end

     0   :  { %s1403_s0 = inlined_call_operand.vmem [shape: f32[2,12,8], index: 0, kind: input, shape index: {}]   ;;  %s1404_s1 = inlined_call_operand.vmem [shape: f32[2,12,8], index: 1, kind: input, shape index: {}]   ;;  %s1405_s2 = inlined_call_operand.vmem [shape: f32[2,12,8], index: 2, kind: input, shape index: {}]   ;;  %s1406_s3 = inlined_call_operand.vmem [shape: f32[2,12,8], index: 3, kind: input, shape index: {}]   ;;  %s1407_s4 = inlined_call_operand.vmem [shape: f32[8,512], index: 4, kind: input, shape index: {}]   ;;  %s1408_s5 = inlined_call_operand.vmem [shape: f32[8,512], index: 5, kind: input, shape index: {}]   ;;  %s1409_s6 = inlined_call_operand.vmem [shape: f32[8,512], index: 6, kind: input, shape index: {}]   ;;  %s1410_s7 = inlined_call_operand.vmem [shape: f32[8,512], index: 7, kind: input, shape index: {}]   ;;  %s1411_s8 = inlined_call_operand.vmem [shape: f32[12,512], index: 8, kind: input, shape index: {}]   ;;  %s1412_s9 = inlined_call_operand.vmem [shape: f32[12,512], index: 9, kind: input, shape index: {}]   ;;  %s1413_s10 = inlined_call_operand.vmem [shape: f32[2,12,256], index: 10, kind: output, shape index: {0}]   ;;  %s1414_s11 = inlined_call_operand.vmem [shape: f32[2,12,256], index: 11, kind: output, shape index: {1}]  }
   0x1   :  { %1415 = sst [smem:[#allocation4_spill]] %s1411_s8 }
   0x2   :  { %s1274_s17 = smov 0   ;;  %s1276_s18 = smov 0  }
   0x3   :  { %s1278_s19 = smov 0  }
   0x4 LB: > { %s1290_s20 = sadd.s32 4294967295, %s1212_s19   ;;  %s1293_s21 = sadd.s32 1, %s1212_s19   ;;  %s1212_s19 = sphi %s1278_s19, %s1420_s19   ;;  %s1208_s18 = sphi %s1276_s18, %s1419_s18   ;;  %s1204_s17 = sphi %s1274_s17, %s1418_s17  }
   0x5   : > { %s234_s22 = ssub.s32 %s1212_s19, %s1293_s21  ;;  %s237_s23 = sadd.s32 1, %s1208_s18 }
   0x6   : > { %p235_p0 = scmp.eq.s32.totalorder %s234_s22, 0  ;;  %p244_p1 = scmp.ne.s32.totalorder %s1208_s18, %s1204_s17 }
   0x7   : > { %p245_p2 = scmp.eq.s32.totalorder %s1212_s19, 0  ;;  %p1110_p4 = scmp.ge.s32.totalorder %s1212_s19, 2 }
   0x8   : > { %s1302_s24 = scalar_select %p235_p0, %s1208_s18, %s237_s23  }
   0x9   : > { %p1304_p3 = por %p245_p2, %p244_p1  ;;  %348 = sbr.rel (%p1110_p4) target bundleno = 36 (0x24), region = 16 }
   0xe   : > { %419 = sbr.rel (!%p1304_p3) target bundleno = 28 (0x1c), region = 52  ;;  %s421_s26 = sand.u32 (%p1304_p3), 1, %s1208_s18  }
   0xf   : > { %s1158_s27 = sshll.u32 (%p1304_p3), %s1212_s19, 4  ;;  %s1111_s28 = sshll.u32 (%p1304_p3), %s421_s26, 5 }
  0x10   : > { %s1417_s8 = sld [smem:[#allocation4_spill]] (%p1304_p3)  ;;  %s423_s13 = scalar_lea.vmem (%p1304_p3), [#allocation2], %s1111_s28 }
  0x16   : > { %s426_s12 = scalar_lea.vmem %s1417_s8, %s1158_s27 }
  0x17   : > { %v439_v0 = vld [vmem:[%s426_s12] sm:$0xff]  ;;  %v441_v1 = vld [vmem:[%s426_s12 + $0x8] sm:$0xff] }
  0x18   : > { %v443_v2 = vld [vmem:[%s426_s12 + $0x20] sm:$0xff]  ;;  %440 = vst [vmem:[%s423_s13] sm:$0xff] %v439_v0  ;;  %v445_v3 = vld [vmem:[%s426_s12 + $0x28] sm:$0xff] }
  0x19   : > { %442 = vst [vmem:[%s423_s13 + $0x8] sm:$0xff] %v441_v1 }
  0x1a   : > { %444 = vst [vmem:[%s423_s13 + $0x10] sm:$0xff] %v443_v2 }
  0x1b   : > { %446 = vst [vmem:[%s423_s13 + $0x18] sm:$0xff] %v445_v3 }
  0x1c PF: > { %452 = sbr.rel (!%p1304_p3) target bundleno = 36 (0x24), region = 75  ;;  %s454_s14 = sand.u32 (%p1304_p3), 1, %s1208_s18  }
  0x1d   : > { %s1159_s15 = sshll.u32 (%p1304_p3), %s1212_s19, 4  ;;  %s1114_s16 = sshll.u32 (%p1304_p3), %s454_s14, 5 }
  0x1e   : > { %s459_s26 = scalar_lea.vmem (%p1304_p3), %s1412_s9, %s1159_s15  ;;  %s456_s27 = scalar_lea.vmem (%p1304_p3), [#allocation3], %s1114_s16 }
  0x1f   : > { %v472_v4 = vld [vmem:[%s459_s26] sm:$0xff] (%p1304_p3)  ;;  %v474_v5 = vld [vmem:[%s459_s26 + $0x8] sm:$0xff] (%p1304_p3) }
  0x20   : > { %v476_v6 = vld [vmem:[%s459_s26 + $0x20] sm:$0xff] (%p1304_p3)  ;;  %473 = vst [vmem:[%s456_s27] sm:$0xff] (%p1304_p3), %v472_v4  ;;  %v478_v7 = vld [vmem:[%s459_s26 + $0x28] sm:$0xff] (%p1304_p3) }
  0x21   : > { %475 = vst [vmem:[%s456_s27 + $0x8] sm:$0xff] %v474_v5 }
  0x22   : > { %477 = vst [vmem:[%s456_s27 + $0x10] sm:$0xff] %v476_v6 }
  0x23   : > { %479 = vst [vmem:[%s456_s27 + $0x18] sm:$0xff] %v478_v7 }
  0x24 PF: > { %p1117_p5 = scmp.ge.s32.totalorder %s1212_s19, 1  ;;  %p484_p6 = scmp.lt.s32.totalorder %s1212_s19, 3 }
  0x26   : > { %p485_p7 = pnand %p1117_p5, %p484_p6 }
  0x27   : > { %s1128_s25 = sshll.u32 (!%p485_p7), %s1290_s20, 1  ;;  %p586_p8 = scmp.lt.s32.totalorder (!%p485_p7), %s1290_s20, 1 }
  0x28   : > { %488 = sbr.rel (%p485_p7) target bundleno = 214 (0xd6), region = 98  ;;  %p607_p9 = scmp.lt.s32.totalorder (!%p485_p7), %s1128_s25, 3 }
  0x2d   : > { %s1422_s20 = smov (!%p586_p8, %s1290_s20), 1  ;;  %s1424_s25 = smov (!%p607_p9, %s1128_s25), 3  ;;  %vm654_vm0 = vcmask 64512  }
  0x2e   : > { %s1331_s28 = sshll.u32 %s1422_s20, 4  ;;  %s1129_s29 = sshll.u32 %s1424_s25, 3 }
  0x2f   : > { %s590_s19 = scalar_lea.vmem %s1403_s0, %s1331_s28  ;;  %s610_s15 = scalar_lea.vmem %s1407_s4, %s1129_s29 }
  0x30   : > { %v642_v8 = vld [vmem:[%s590_s19] sm:$0xff]  ;;  %s622_s23 = scalar_lea.vmem %s1409_s6, %s1129_s29  ;;  %v651_v10 = vld [vmem:[%s610_s15 + $0x8] sm:$0xff]  ;;  %s628_s25 = scalar_lea.vmem %s1410_s7, %s1129_s29 }
  0x31   : > { %v650_v9 = vld [vmem:[%s610_s15] sm:$0xff]  ;;  %s595_s12 = scalar_lea.vmem %s1404_s1, %s1331_s28  ;;  %751 = vmatpush.msra.mxu3 %v651_v10  ;;  %v760_v12 = vld [vmem:[%s622_s23 + $0x8] sm:$0xff]  ;;  %s616_s16 = scalar_lea.vmem %s1408_s5, %s1129_s29 }
  0x32   : > { %v759_v11 = vld [vmem:[%s622_s23] sm:$0xff]  ;;  %728 = vmatpush.msra.mxu2 %v650_v9  ;;  %v653_v14 = vld [vmem:[%s628_s25 + $0x8] sm:$0xff]  ;;  %1146 = vmatmul.msk.f32.vlgmr.msra.gmra.mxu3 %vm654_vm0, %v642_v8  ;;  %s600_s15 = scalar_lea.vmem %s1405_s2, %s1331_s28  ;;  %s605_s26 = scalar_lea.vmem %s1406_s3, %s1331_s28 }
  0x33   : > { %v652_v13 = vld [vmem:[%s628_s25] sm:$0xff]  ;;  %1144 = vmatmul.msk.f32.vlgmr.msra.gmra.mxu2 %vm654_vm0, %v642_v8  ;;  %859 = vmatpush.msrb.mxu3 %v760_v12  ;;  %v762_v17 = vld [vmem:[%s616_s16 + $0x8] sm:$0xff]  ;;  %s491_s28 = sand.u32 1, %s1204_s17   ;;  %s1164_s25 = sshll.u32 %s1422_s20, 5 }
  0x34   : > { %v644_v15 = vld [vmem:[%s595_s12] sm:$0xff]  ;;  %836 = vmatpush.msrb.mxu2 %v759_v11  ;;  %676 = vmatpush.msra.mxu0 %v652_v13  ;;  %v643_v18 = vld [vmem:[%s590_s19 + $0x8] sm:$0xf]  ;;  %s1378_s19 = sshll.u32 %s491_s28, 5  ;;  %s636_s17 = scalar_lea.vmem %s1413_s10, %s1164_s25 }
  0x35   : > { %v761_v16 = vld [vmem:[%s616_s16] sm:$0xff]  ;;  %699 = vmatpush.msra.mxu1 %v653_v14  ;;  %1140 = vmatmul.msk.f32.vlgmr.msra.gmra.mxu0 %vm654_vm0, %v644_v15  ;;  %v645_v19 = vld [vmem:[%s595_s12 + $0x8] sm:$0xf]  ;;  %s493_s27 = scalar_lea.vmem [#allocation2], %s1378_s19  ;;  %s500_s13 = scalar_lea.vmem [#allocation3], %s1378_s19 }
  0x36   : > { %1142 = vmatmul.msk.f32.vlgmr.msra.gmra.mxu1 %vm654_vm0, %v644_v15  ;;  %784 = vmatpush.msrb.mxu0 %v761_v16  ;;  %v646_v20 = vld [vmem:[%s600_s15] sm:$0xff]  ;;  %v647_v22 = vld [vmem:[%s600_s15 + $0x8] sm:$0xf]  ;;  %v869_v39 = vld [vmem:[%s493_s27 + $0x10] sm:$0xf]  ;;  %s641_s8 = scalar_lea.vmem %s1414_s11, %s1164_s25 }
  0x37   : > { %807 = vmatpush.msrb.mxu1 %v762_v17  ;;  %v648_v21 = vld [vmem:[%s605_s26] sm:$0xff]  ;;  %v649_v23 = vld [vmem:[%s605_s26 + $0x8] sm:$0xf]  ;;  %v870_v41 = vld [vmem:[%s493_s27 + $0x18] sm:$0xf] }
  0x38   : > { %v867_v27 = vld [vmem:[%s493_s27] sm:$0xff]  ;;  %v868_v29 = vld [vmem:[%s493_s27 + $0x8] sm:$0xff]  ;;  %v885_v63 = vld [vmem:[%s500_s13 + $0x10] sm:$0xf] }
  0x39   : > { %v883_v51 = vld [vmem:[%s500_s13] sm:$0xff]  ;;  %v884_v53 = vld [vmem:[%s500_s13 + $0x8] sm:$0xff]  ;;  %v886_v1 = vld [vmem:[%s500_s13 + $0x18] sm:$0xf] }
  0x3a   : > { %1147 = vmatmul.msk.f32.gmra.mxu3 %vm654_vm0, %v643_v18 }
  0x3b   : > { %1145 = vmatmul.msk.f32.gmra.mxu2 %vm654_vm0, %v643_v18 }
  0x3d   : > { %1141 = vmatmul.msk.f32.gmra.mxu0 %vm654_vm0, %v645_v19 }
  0x3e   : > { %1143 = vmatmul.msk.f32.gmra.mxu1 %vm654_vm0, %v645_v19 }
  0x42   : > { %1154 = vmatmul.msk.f32.vlgmr.msrb.gmra.mxu3 %vm654_vm0, %v646_v20 }
  0x43   : > { %1152 = vmatmul.msk.f32.vlgmr.msrb.gmra.mxu2 %vm654_vm0, %v646_v20 }
  0x45   : > { %1148 = vmatmul.msk.f32.vlgmr.msrb.gmra.mxu0 %vm654_vm0, %v648_v21 }
  0x46   : > { %1150 = vmatmul.msk.f32.vlgmr.msrb.gmra.mxu1 %vm654_vm0, %v648_v21 }
  0x4a   : > { %1155 = vmatmul.msk.f32.gmra.mxu3 %vm654_vm0, %v647_v22 }
  0x4b   : > { %1153 = vmatmul.msk.f32.gmra.mxu2 %vm654_vm0, %v647_v22 }
  0x4d   : > { %1149 = vmatmul.msk.f32.gmra.mxu0 %vm654_vm0, %v649_v23 }
  0x4e   : > { %1151 = vmatmul.msk.f32.gmra.mxu1 %vm654_vm0, %v649_v23 }
  0xb2   : > { %v678_v24 = vpop.f32.mrf.mxu0 }
  0xb3   : > { %v701_v25 = vpop.f32.mrf.mxu1 }
  0xb5   : > { %v753_v28 = vpop.f32.mrf.mxu3 }
  0xb6   : > { %v730_v26 = vpop.f32.mrf.mxu2  ;;  %v754_v31 = vadd.f32 %v753_v28, %v701_v25 }
  0xb7   : > { %v731_v30 = vadd.f32 %v730_v26, %v678_v24 }
  0xb8   : > { %v872_v33 = vadd.f32 %v868_v29, %v754_v31 }
  0xb9   : > { %v871_v32 = vadd.f32 %v867_v27, %v731_v30 }
  0xba   : > { %v876_v35 = vmax.f32 %v872_v33, 0.0  ;;  %v681_v36 = vpop.f32.mrf.mxu0 }
  0xbb   : > { %v875_v34 = vmax.f32 %v871_v32, 0.0  ;;  %v704_v37 = vpop.f32.mrf.mxu1 }
  0xbc   : > { %880 = vst [vmem:[%s636_s17 + $0x8] sm:$0xff] %v876_v35 }
  0xbd   : > { %879 = vst [vmem:[%s636_s17] sm:$0xff] %v875_v34  ;;  %v756_v40 = vpop.f32.mrf.mxu3 }
  0xbe   : > { %v733_v38 = vpop.f32.mrf.mxu2  ;;  %v757_v43 = vadd.f32 %v756_v40, %v704_v37 }
  0xbf   : > { %v734_v42 = vadd.f32 %v733_v38, %v681_v36 }
  0xc0   : > { %v874_v45 = vadd.f32 %v870_v41, %v757_v43 }
  0xc1   : > { %v873_v44 = vadd.f32 %v869_v39, %v734_v42 }
  0xc2   : > { %v878_v47 = vmax.f32 %v874_v45, 0.0  ;;  %v786_v48 = vpop.f32.mrf.mxu0 }
  0xc3   : > { %v877_v46 = vmax.f32 %v873_v44, 0.0  ;;  %v809_v49 = vpop.f32.mrf.mxu1 }
  0xc4   : > { %882 = vst [vmem:[%s636_s17 + $0x18] sm:$0xf] %v878_v47 }
  0xc5   : > { %881 = vst [vmem:[%s636_s17 + $0x10] sm:$0xf] %v877_v46  ;;  %v861_v52 = vpop.f32.mrf.mxu3 }
  0xc6   : > { %v838_v50 = vpop.f32.mrf.mxu2  ;;  %v862_v55 = vadd.f32 %v861_v52, %v809_v49 }
  0xc7   : > { %v839_v54 = vadd.f32 %v838_v50, %v786_v48 }
  0xc8   : > { %v888_v57 = vadd.f32 %v884_v53, %v862_v55 }
  0xc9   : > { %v887_v56 = vadd.f32 %v883_v51, %v839_v54 }
  0xca   : > { %v892_v59 = vmax.f32 %v888_v57, 0.0  ;;  %v789_v60 = vpop.f32.mrf.mxu0 }
  0xcb   : > { %v891_v58 = vmax.f32 %v887_v56, 0.0  ;;  %v812_v61 = vpop.f32.mrf.mxu1 }
  0xcc   : > { %896 = vst [vmem:[%s641_s8 + $0x8] sm:$0xff] %v892_v59 }
  0xcd   : > { %895 = vst [vmem:[%s641_s8] sm:$0xff] %v891_v58  ;;  %v864_v0 = vpop.f32.mrf.mxu3 }
  0xce   : > { %v841_v62 = vpop.f32.mrf.mxu2  ;;  %v865_v3 = vadd.f32 %v864_v0, %v812_v61 }
  0xcf   : > { %v842_v2 = vadd.f32 %v841_v62, %v789_v60 }
  0xd0   : > { %v890_v5 = vadd.f32 %v886_v1, %v865_v3 }
  0xd1   : > { %v889_v4 = vadd.f32 %v885_v63, %v842_v2 }
  0xd2   : > { %v894_v7 = vmax.f32 %v890_v5, 0.0 }
  0xd3   : > { %v893_v6 = vmax.f32 %v889_v4, 0.0 }
  0xd4   : > { %898 = vst [vmem:[%s641_s8 + $0x18] sm:$0xf] %v894_v7 }
  0xd5   : > { %897 = vst [vmem:[%s641_s8 + $0x10] sm:$0xf] %v893_v6 }
  0xd6 PF: > { %p19_p10 = scmp.ge.s32.totalorder %s1293_s21, 4   ;;  %s1418_s17 = smov %s1208_s18 }
  0xd7   : > { %s1419_s18 = smov %s1302_s24  ;;  %s1420_s19 = smov %s1293_s21 }
  0xd8   :  { %21 = sbr.rel (!%p19_p10) target bundleno = 4 (0x4), region = 185 }

// kernel: yblock_forward.2
= control target key start
LH: loop header
LB: loop body
LE: loop exit
PB: predicated region body
PF: predicated region fallthrough
CT: control target
= control target key end

     0   :  { %s6064_s23 = smov 16   ;;  %s6067_s24 = smov 127   ;;  %vm215_vm0 = vcmask 1043456   ;;  %v94_v57 = vlaneseq  ;;  %vm353_vm4 = vcmask 31744   ;;  %vm2647_vm14 = vcmask 64512   ;;  %s8745_s2 = inlined_call_operand.vmem [shape: f32[4,512], index: 2, kind: input, shape index: {}]   ;;  %s8746_s0 = inlined_call_operand.vmem [shape: f32[9,512], index: 0, kind: input, shape index: {}]   ;;  %s8747_s3 = inlined_call_operand.vmem [shape: f32[4,512], index: 3, kind: input, shape index: {}]   ;;  %s8748_s4 = inlined_call_operand.vmem [shape: f32[9,8,4], index: 4, kind: input, shape index: {}, may-alias: {4,6}]   ;;  %s8749_s5 = inlined_call_operand.vmem [shape: f32[8,3], index: 5, kind: input, shape index: {}]   ;;  %s8750_s6 = inlined_call_operand.vmem [shape: f32[9,8,4], index: 6, kind: input, shape index: {}, may-alias: {4,6}]   ;;  %s8751_s7 = inlined_call_operand.vmem [shape: f32[8,3], index: 7, kind: input, shape index: {}]   ;;  %s8752_s8 = inlined_call_operand.vmem [shape: f32[9,16,8], index: 8, kind: input, shape index: {}]   ;;  %s8753_s9 = inlined_call_operand.vmem [shape: f32[16,3], index: 9, kind: input, shape index: {}]   ;;  %s8754_s10 = inlined_call_operand.vmem [shape: f32[9,16,8], index: 10, kind: input, shape index: {}]   ;;  %s8755_s11 = inlined_call_operand.vmem [shape: f32[16,3], index: 11, kind: input, shape index: {}]   ;;  %s8756_s13 = inlined_call_operand.vmem [shape: f32[12,3], index: 13, kind: input, shape index: {}]   ;;  %s8757_s15 = inlined_call_operand.vmem [shape: f32[12,3], index: 15, kind: input, shape index: {}]   ;;  %s8758_s12 = inlined_call_operand.vmem [shape: f32[12,4], index: 12, kind: input, shape index: {}]   ;;  %s8759_s14 = inlined_call_operand.vmem [shape: f32[12,4], index: 14, kind: input, shape index: {}]   ;;  %s8760_s17 = inlined_call_operand.vmem [shape: f32[8,512], index: 17, kind: output, shape index: {1}]   ;;  %s8761_s18 = inlined_call_operand.vmem [shape: f32[8,512], index: 18, kind: output, shape index: {2}]   ;;  %s8762_s1 = inlined_call_operand.vmem [shape: f32[2,512], index: 1, kind: input, shape index: {}]   ;;  %s8763_s16 = inlined_call_operand.vmem [shape: f32[8,512], index: 16, kind: output, shape index: {0}]   ;;  %s8764_s20 = inlined_call_operand.vmem [shape: f32[12,512], index: 20, kind: output, shape index: {4}]   ;;  %s8765_s19 = inlined_call_operand.vmem [shape: f32[8,512], index: 19, kind: output, shape index: {3}]   ;;  %s8766_s21 = inlined_call_operand.vmem [shape: f32[12,512], index: 21, kind: output, shape index: {5}]   ;;  %s8767_s22 = inlined_call_operand.vmem [shape: f32[8,8], index: 22, kind: output, shape index: {6}]  }
   0x1   :  { %8845 = sst [smem:[#allocation46_spill]] %s8745_s2  ;;  %s6063_s2 = smov 17  }
   0x2   :  { %8846 = sst [smem:[#allocation47_spill]] %s8746_s0  ;;  %s6065_s0 = smov 15   ;;  %v6318_v60 = vand.u32 127, %v94_v57 }
   0x3   :  { %8847 = sst [smem:[#allocation48_spill]] %s8747_s3  ;;  %s6069_s25 = smov 112  }
   0x4   :  { %8848 = sst [smem:[#allocation49_spill]] %s8748_s4  ;;  %s6070_s26 = smov 111   ;;  %vm128_vm1 = vcmp.lt.s32.totalorder %v6318_v60, 16  ;;  %vm160_vm2 = vcmp.lt.s32.totalorder %v6318_v60, 15  ;;  %vm96_vm3 = vcmp.lt.s32.totalorder %v6318_v60, 17  ;;  %vm192_vm5 = vcmp.lt.s32.totalorder %v6318_v60, 1 }
   0x5   :  { %8849 = sst [smem:[#allocation50_spill]] %s8749_s5  ;;  %vm241_vm6 = vcmp.lt.s32.totalorder %v6318_v60, 127  ;;  %vm273_vm7 = vcmp.lt.s32.totalorder %v6318_v60, 113  ;;  %vm305_vm8 = vcmp.lt.s32.totalorder %v6318_v60, 112  ;;  %vm337_vm9 = vcmp.lt.s32.totalorder %v6318_v60, 111  ;;  %v5940_v60 = vld [vmem:[%s8754_s10 + $0x68] sm:$0xff] }
   0x6   :  { %8850 = sst [smem:[#allocation51_spill]] %s8750_s6  ;;  %s6066_s6 = smov 1  }
   0x7   :  { %8851 = sst [smem:[#allocation52_spill]] %s8751_s7  ;;  %s6068_s7 = smov 113  }
   0x8   :  { %s8852_s29 = sld [smem:[#allocation46_spill]] }
   0x9   :  { %s8853_s4 = sld [smem:[#allocation47_spill]] }
   0xa   :  { %s8858_s30 = sld [smem:[#allocation48_spill]] }
   0xb   :  { %s8884_s3 = sld [smem:[#allocation51_spill]] }
   0xc   :  { %s8885_s5 = sld [smem:[#allocation52_spill]] }
   0xe   :  { %v6196_v0 = vld [vmem:[%s8852_s29] sm:$0xff]  ;;  %v6201_v1 = vld [vmem:[%s8852_s29 + $0x8] sm:$0xff]  ;;  %s8862_s29 = sld [smem:[#allocation49_spill]] }
   0xf   :  { %75 = vst [vmem:[#allocation1] ss:$2 sm:$0xff] %v6196_v0  ;;  %v6254_v35 = vld [vmem:[%s8853_s4 + $0x18] sm:$0xff]  ;;  %v6259_v36 = vld [vmem:[%s8853_s4 + $0x10] sm:$0xff]  ;;  %v6277_v42 = vld [vmem:[%s8853_s4] sm:$0xff] }
  0x10   :  { %77 = vst [vmem:[#allocation1 + $0x10] ss:$2 sm:$0xff] %v6201_v1  ;;  %v6262_v37 = vperm.slane %v6254_v35, 4  ;;  %v6265_v38 = vperm.slane %v6259_v36, 4  ;;  %v6282_v43 = vld [vmem:[%s8853_s4 + $0x8] sm:$0xff]  ;;  %v6285_v44 = vperm.slane %v6277_v42, 4 }
  0x11   :  { %v6288_v45 = vperm.slane %v6282_v43, 4  ;;  %v6302_v50 = vld [vmem:[%s8858_s30 + $0x8] sm:$0xff]  ;;  %v6323_v61 = vld [vmem:[%s8858_s30] sm:$0xff]  ;;  %v6329_v63 = vperm.slane %v6259_v36, 1  ;;  %s8883_s30 = sld [smem:[#allocation50_spill]] }
  0x12   :  { %8854 = vst [vmem:[#allocation2_spill] sm:$0xff] %v6262_v37  ;;  %v214_v39 = vrot.slane %v6262_v37, 4 }
  0x13   :  { %8855 = vst [vmem:[#allocation3_spill] sm:$0xff] %v6265_v38  ;;  %v213_v47 = vrot.slane %v6288_v45, 4 }
  0x14   :  { %v6270_v40 = vsel %vm215_vm0, %v6265_v38, %v214_v39  ;;  %8856 = vst [vmem:[#allocation4_spill] sm:$0xff] %v6285_v44  ;;  %v6405_v39 = vperm.slane %v6277_v42, 2 }
  0x15   :  { %v221_v41 = vmul.f32 %v6270_v40, %v6201_v1  ;;  %8857 = vst [vmem:[#allocation5_spill] sm:$0xff] %v6288_v45  ;;  %v6295_v48 = vsel %vm215_vm0, %v6285_v44, %v213_v47 }
  0x16   :  { %v78_v2 = vld.sshfl [vmem:[#allocation1] sm:$0xff pattern:$0x75316420]  ;;  %v79_v3 = vld.sshfl [vmem:[#allocation1 + $0x8] sm:$0xff pattern:$0x75316420]  ;;  %v220_v49 = vmul.f32 %v6295_v48, %v6196_v0 }
  0x17   :  { %86 = vrot.lane.b32.xlu1 %v78_v2, %s6063_s2  ;;  %109 = vst [vmem:[#allocation1] ss:$2 sm:$0xff] %v6196_v0  ;;  %v80_v4 = vld.sshfl [vmem:[#allocation1 + $0x10] sm:$0xff pattern:$0x75316420]  ;;  %88 = vrot.lane.b32.xlu2 %v79_v3, %s6063_s2  ;;  %v6332_v2 = vperm.slane %v6254_v35, 1 }
  0x18   :  { %v81_v5 = vld.sshfl [vmem:[#allocation1 + $0x18] sm:$0xff pattern:$0x75316420]  ;;  %8859 = vst [vmem:[#allocation6_spill] sm:$0xff] %v6302_v50 }
  0x19   :  { %111 = vst [vmem:[#allocation1 + $0x10] ss:$2 sm:$0xff] %v6201_v1 }
  0x1a   :  { %8860 = vst [vmem:[#allocation7_spill] sm:$0xff] %v6323_v61 }
  0x1b   :  { %8864 = vst [vmem:[#allocation10_spill] sm:$0xff] %v6405_v39 }
  0x1e   :  { %v113_v6 = vld.sshfl [vmem:[#allocation1 + $0x8] sm:$0xff pattern:$0x75316420]  ;;  %v112_v7 = vld.sshfl [vmem:[#allocation1] sm:$0xff pattern:$0x75316420] }
  0x1f   :  { %122 = vrot.lane.b32.xlu0 %v113_v6, %s6064_s23  ;;  %141 = vst [vmem:[#allocation1] ss:$2 sm:$0xff] %v6196_v0  ;;  %90 = vrot.lane.b32.xlu2 %v80_v4, %s6063_s2 }
  0x20   :  { %v115_v8 = vld.sshfl [vmem:[#allocation1 + $0x18] sm:$0xff pattern:$0x75316420]  ;;  %v114_v9 = vld.sshfl [vmem:[#allocation1 + $0x10] sm:$0xff pattern:$0x75316420] }
  0x21   :  { %126 = vrot.lane.b32.xlu1 %v115_v8, %s6064_s23  ;;  %143 = vst [vmem:[#allocation1 + $0x10] ss:$2 sm:$0xff] %v6201_v1  ;;  %v6346_v8 = vperm.slane %v6282_v43, 1 }
  0x26   :  { %v144_v10 = vld.sshfl [vmem:[#allocation1] sm:$0xff pattern:$0x75316420]  ;;  %v145_v11 = vld.sshfl [vmem:[#allocation1 + $0x8] sm:$0xff pattern:$0x75316420] }
  0x27   :  { %124 = vrot.lane.b32.xlu0 %v114_v9, %s6064_s23  ;;  %173 = vst [vmem:[#allocation1] ss:$2 sm:$0xff] %v6196_v0  ;;  %154 = vrot.lane.b32.xlu2 %v145_v11, %s6065_s0  ;;  %v6349_v9 = vperm.slane %v6282_v43, 0 }
  0x28   :  { %v147_v12 = vld.sshfl [vmem:[#allocation1 + $0x18] sm:$0xff pattern:$0x75316420]  ;;  %v146_v13 = vld.sshfl [vmem:[#allocation1 + $0x10] sm:$0xff pattern:$0x75316420] }
  0x29   :  { %120 = vrot.lane.b32.xlu1 %v112_v7, %s6064_s23  ;;  %175 = vst [vmem:[#allocation1 + $0x10] ss:$2 sm:$0xff] %v6201_v1  ;;  %v6343_v7 = vperm.slane %v6277_v42, 1 }
  0x2e   :  { %v177_v14 = vld.sshfl [vmem:[#allocation1 + $0x8] sm:$0xff pattern:$0x75316420]  ;;  %v176_v15 = vld.sshfl [vmem:[#allocation1] sm:$0xff pattern:$0x75316420] }
  0x2f   :  { %92 = vrot.lane.b32.xlu0 %v81_v5, %s6063_s2  ;;  %222 = vst [vmem:[#allocation1] ss:$2 sm:$0xff] %v6196_v0  ;;  %152 = vrot.lane.b32.xlu2 %v144_v10, %s6065_s0 }
  0x30   :  { %v178_v16 = vld.sshfl [vmem:[#allocation1 + $0x10] sm:$0xff pattern:$0x75316420]  ;;  %v179_v17 = vld.sshfl [vmem:[#allocation1 + $0x18] sm:$0xff pattern:$0x75316420] }
  0x31   :  { %158 = vrot.lane.b32.xlu1 %v147_v12, %s6065_s0  ;;  %224 = vst [vmem:[#allocation1 + $0x10] ss:$2 sm:$0xff] %v6201_v1  ;;  %v6356_v12 = vperm.slane %v6259_v36, 0 }
  0x36   :  { %v226_v18 = vld.sshfl [vmem:[#allocation1 + $0x8] sm:$0xff pattern:$0x75316420]  ;;  %v225_v19 = vld.sshfl [vmem:[#allocation1] sm:$0xff pattern:$0x75316420] }
  0x37   :  { %156 = vrot.lane.b32.xlu0 %v146_v13, %s6065_s0  ;;  %254 = vst [vmem:[#allocation1] ss:$2 sm:$0xff] %v6196_v0  ;;  %190 = vrot.lane.b32.xlu2 %v179_v17, %s6066_s6  ;;  %v6359_v13 = vperm.slane %v6282_v43, 2  ;;  %v5633_v17 = vld [vmem:[%s8862_s29 + $0x8] sm:$0xff] }
  0x38   :  { %v227_v20 = vld.sshfl [vmem:[#allocation1 + $0x10] sm:$0xff pattern:$0x75316420]  ;;  %v228_v21 = vld.sshfl [vmem:[#allocation1 + $0x18] sm:$0xff pattern:$0x75316420] }
  0x39   :  { %188 = vrot.lane.b32.xlu1 %v178_v16, %s6066_s6  ;;  %256 = vst [vmem:[#allocation1 + $0x10] ss:$2 sm:$0xff] %v6201_v1 }
  0x3a   :  { %8861 = vst [vmem:[#allocation8_spill] sm:$0xff] %v6359_v13 }
  0x3e   :  { %v257_v22 = vld.sshfl [vmem:[#allocation1] sm:$0xff pattern:$0x75316420]  ;;  %v258_v23 = vld.sshfl [vmem:[#allocation1 + $0x8] sm:$0xff pattern:$0x75316420] }
  0x3f   :  { %186 = vrot.lane.b32.xlu0 %v177_v14, %s6066_s6  ;;  %286 = vst [vmem:[#allocation1] ss:$2 sm:$0xff] %v6196_v0  ;;  %239 = vrot.lane.b32.xlu2 %v228_v21, %s6067_s24 }
  0x40   :  { %v259_v24 = vld.sshfl [vmem:[#allocation1 + $0x10] sm:$0xff pattern:$0x75316420]  ;;  %v260_v25 = vld.sshfl [vmem:[#allocation1 + $0x18] sm:$0xff pattern:$0x75316420] }
  0x41   :  { %237 = vrot.lane.b32.xlu1 %v227_v20, %s6067_s24  ;;  %288 = vst [vmem:[#allocation1 + $0x10] ss:$2 sm:$0xff] %v6201_v1 }
  0x46   :  { %v290_v26 = vld.sshfl [vmem:[#allocation1 + $0x8] sm:$0xff pattern:$0x75316420]  ;;  %v289_v27 = vld.sshfl [vmem:[#allocation1] sm:$0xff pattern:$0x75316420] }
  0x47   :  { %184 = vrot.lane.b32.xlu0 %v176_v15, %s6066_s6  ;;  %269 = vrot.lane.b32.xlu2 %v259_v24, %s6068_s7  ;;  %318 = vst [vmem:[#allocation1] ss:$2 sm:$0xff] %v6196_v0 }
  0x48   :  { %v292_v28 = vld.sshfl [vmem:[#allocation1 + $0x18] sm:$0xff pattern:$0x75316420]  ;;  %v291_v29 = vld.sshfl [vmem:[#allocation1 + $0x10] sm:$0xff pattern:$0x75316420] }
  0x49   :  { %235 = vrot.lane.b32.xlu1 %v226_v18, %s6067_s24  ;;  %320 = vst [vmem:[#allocation1 + $0x10] ss:$2 sm:$0xff] %v6201_v1 }
  0x4e   :  { %v322_v32 = vld.sshfl [vmem:[#allocation1 + $0x8] sm:$0xff pattern:$0x75316420]  ;;  %v321_v33 = vld.sshfl [vmem:[#allocation1] sm:$0xff pattern:$0x75316420] }
  0x4f   :  { %233 = vrot.lane.b32.xlu0 %v225_v19, %s6067_s24  ;;  %267 = vrot.lane.b32.xlu2 %v258_v23, %s6068_s7  ;;  %750 = vst [vmem:[#allocation1] ss:$2 sm:$0xff] %v220_v49 }
  0x50   :  { %v324_v30 = vld.sshfl [vmem:[#allocation1 + $0x18] sm:$0xff pattern:$0x75316420]  ;;  %v323_v31 = vld.sshfl [vmem:[#allocation1 + $0x10] sm:$0xff pattern:$0x75316420] }
  0x51   :  { %265 = vrot.lane.b32.xlu1 %v257_v22, %s6068_s7  ;;  %752 = vst [vmem:[#allocation1 + $0x10] ss:$2 sm:$0xff] %v221_v41 }
  0x56   :  { %v6334_v3 = vld.sshfl [vmem:[#allocation1] sm:$0xff pattern:$0x75316420]  ;;  %v6336_v5 = vld.sshfl [vmem:[#allocation1 + $0x8] sm:$0xff pattern:$0x75316420] }
  0x57   :  { %271 = vrot.lane.b32.xlu0 %v260_v25, %s6068_s7  ;;  %297 = vrot.lane.b32.xlu2 %v289_v27, %s6069_s25  ;;  %1326 = vst [vmem:[#allocation1] ss:$2 sm:$0xff] %v6323_v61 }
  0x58   :  { %v6304_v51 = vld.sshfl [vmem:[#allocation1 + $0x10] sm:$0xff pattern:$0x75316420]  ;;  %v6306_v52 = vld.sshfl [vmem:[#allocation1 + $0x18] sm:$0xff pattern:$0x75316420] }
  0x59   :  { %303 = vrot.lane.b32.xlu1 %v292_v28, %s6069_s25  ;;  %1328 = vst [vmem:[#allocation1 + $0x10] ss:$2 sm:$0xff] %v6302_v50 }
  0x5f   :  { %301 = vrot.lane.b32.xlu0 %v291_v29, %s6069_s25  ;;  %335 = vrot.lane.b32.xlu2 %v324_v30, %s6070_s26  ;;  %v6393_v29 = vperm.slane %v6277_v42, 0  ;;  %v6396_v30 = vperm.slane %v6254_v35, 0 }
  0x60   :  { %v6313_v55 = vld.sshfl [vmem:[#allocation1 + $0x10] sm:$0xff pattern:$0x75316420]  ;;  %v6315_v56 = vld.sshfl [vmem:[#allocation1 + $0x18] sm:$0xff pattern:$0x75316420] }
  0x61   :  { %333 = vrot.lane.b32.xlu1 %v323_v31, %s6070_s26  ;;  %1355 = vst [vmem:[#allocation1 + $0x10] ss:$2 sm:$0xff] %v6302_v50 }
  0x62   :  { %8863 = vst [vmem:[#allocation9_spill] sm:$0xff] %v6396_v30 }
  0x67   :  { %299 = vrot.lane.b32.xlu0 %v290_v26, %s6069_s25 }
  0x68   :  { %v1358_v4 = vld.sshfl [vmem:[#allocation1 + $0x10] sm:$0xff pattern:$0x75316420]  ;;  %v1359_v25 = vld.sshfl [vmem:[#allocation1 + $0x18] sm:$0xff pattern:$0x75316420] }
  0x69   :  { %331 = vrot.lane.b32.xlu1 %v322_v32, %s6070_s26  ;;  %1382 = vst [vmem:[#allocation1 + $0x10] ss:$2 sm:$0xff] %v6302_v50  ;;  %v1330_v32 = vld.sshfl [vmem:[#allocation1 + $0x8] sm:$0xff pattern:$0x75316420] }
  0x6f   :  { %329 = vrot.lane.b32.xlu0 %v321_v33, %s6070_s26  ;;  %v1329_v33 = vld.sshfl [vmem:[#allocation1] sm:$0xff pattern:$0x75316420] }
  0x70   :  { %1353 = vst [vmem:[#allocation1] ss:$2 sm:$0xff] %v6323_v61 }
  0x71   :  { %v89_v34 = vpop.permute.xlu2 %88  ;;  %1370 = vrot.lane.b32.xlu1 %v1359_v25, %s6064_s23 }
  0x77   :  { %1368 = vrot.lane.b32.xlu0 %v1358_v4, %s6064_s23  ;;  %v6431_v4 = vperm.slane %v6259_v36, 2 }
  0x79   :  { %v6290_v46 = vpop.permute.xlu2 %90  ;;  %8865 = vst [vmem:[#allocation11_spill] sm:$0xff] %v6431_v4  ;;  %1341 = vrot.lane.b32.xlu1 %v6313_v55, %s6063_s2  ;;  %v6466_v55 = vld.sshfl [vmem:[#allocation1 + $0x10] sm:$0xff pattern:$0x75316420] }
  0x7a   :  { %v98_v20 = vsel %vm96_vm3, %v89_v34, %v6290_v46 }
  0x7b   :  { %v107_v28 = vmul.f32 %v6356_v12, %v98_v20 }
  0x7f   :  { %1339 = vrot.lane.b32.xlu0 %v1330_v32, %s6063_s2 }
  0x81   :  { %v6311_v54 = vpop.permute.xlu2 %154 }
  0x87   :  { %1337 = vrot.lane.b32.xlu0 %v1329_v33, %s6063_s2 }
  0x89   :  { %v6309_v53 = vpop.permute.xlu1 %86  ;;  %v6325_v62 = vpop.permute.xlu2 %152 }
  0x8a   :  { %v163_v18 = vsel %vm160_vm2, %v6325_v62, %v6311_v54  ;;  %v99_v19 = vsel %vm96_vm3, %v6309_v53, %v89_v34 }
  0x8b   :  { %v170_v26 = vmul.f32 %v6359_v13, %v163_v18  ;;  %v106_v27 = vmul.f32 %v6349_v9, %v99_v19 }
  0x91   :  { %v123_v58 = vpop.permute.xlu0 %122  ;;  %v6398_v31 = vpop.permute.xlu2 %190 }
  0x93   :  { %v127_v59 = vpop.permute.xlu1 %126 }
  0x99   :  { %v125_v6 = vpop.permute.xlu0 %124 }
  0x9a   :  { %v130_v10 = vsel %vm128_vm1, %v123_v58, %v125_v6  ;;  %v129_v11 = vsel %vm128_vm1, %v125_v6, %v127_v59  ;;  %v6434_v6 = vperm.slane %v6254_v35, 2 }
  0x9b   :  { %v121_v14 = vpop.permute.xlu1 %120  ;;  %v139_v15 = vmul.f32 %v6329_v63, %v130_v10  ;;  %v140_v16 = vmul.f32 %v6332_v2, %v129_v11  ;;  %v1356_v10 = vld.sshfl [vmem:[#allocation1] sm:$0xff pattern:$0x75316420] }
  0x9c   :  { %v132_v21 = vsel %vm128_vm1, %v127_v59, %v121_v14  ;;  %v131_v22 = vsel %vm128_vm1, %v121_v14, %v123_v58  ;;  %v350_v59 = vld [vmem:[%s8862_s29] sm:$0xff]  ;;  %8866 = vst [vmem:[#allocation12_spill] sm:$0xff] %v6434_v6  ;;  %v6441_v14 = vperm.slane %v6254_v35, 3 }
  0x9d   :  { %v137_v23 = vmul.f32 %v6343_v7, %v132_v21  ;;  %v138_v24 = vmul.f32 %v6346_v8, %v131_v22  ;;  %5638 = vmatpush.msk.msra.mxu2 %vm215_vm0, %v139_v15  ;;  %5640 = vmatpush.msk.msra.mxu3 %vm215_vm0, %v140_v16  ;;  %v6443_v15 = vpop.permute.xlu2 %239  ;;  %v5650_v21 = vld [vmem:[%s8862_s29 + $0x10] sm:$0xff] }
  0x9e   :  { %5639 = vmatmul.msk.f32.vlgmr.msra.gmra.mxu2 %vm353_vm4, %v5633_v17  ;;  %5641 = vmatmul.msk.f32.vlgmr.msra.gmra.mxu3 %vm353_vm4, %v5633_v17  ;;  %8867 = vst [vmem:[#allocation13_spill] sm:$0xff] %v6441_v14 }
  0x9f   :  { %5634 = vmatpush.msk.msra.mxu0 %vm215_vm0, %v137_v23  ;;  %5636 = vmatpush.msk.msra.mxu1 %vm215_vm0, %v138_v24  ;;  %v1386_v23 = vld.sshfl [vmem:[#allocation1 + $0x18] sm:$0xff pattern:$0x75316420]  ;;  %v6472_v24 = vperm.slane %v6259_v36, 3 }
  0xa0   :  { %5635 = vmatmul.msk.f32.vlgmr.msra.gmra.mxu0 %vm353_vm4, %v5633_v17  ;;  %5637 = vmatmul.msk.f32.vlgmr.msra.gmra.mxu1 %vm353_vm4, %v5633_v17  ;;  %1409 = vst [vmem:[#allocation1 + $0x10] ss:$2 sm:$0xff] %v6302_v50 }
  0xa1   :  { %5644 = vmatpush.msk.msrb.mxu1 %vm215_vm0, %v106_v27  ;;  %5646 = vmatpush.msk.msrb.mxu2 %vm215_vm0, %v107_v28  ;;  %v93_v34 = vpop.permute.xlu0 %92  ;;  %8868 = vst [vmem:[#allocation14_spill] sm:$0xff] %v6472_v24  ;;  %v6479_v27 = vperm.slane %v6259_v36, 5 }
  0xa2   :  { %v97_v41 = vsel %vm96_vm3, %v6290_v46, %v93_v34  ;;  %v100_v47 = vsel %vm96_vm3, %v93_v34, %v6309_v53  ;;  %v5659_v34 = vld [vmem:[%s8862_s29 + $0x18] sm:$0xff]  ;;  %1397 = vrot.lane.b32.xlu0 %v1386_v23, %s6065_s0 }
  0xa3   :  { %5653 = vmatpush.msk.msra.mxu1 %vm215_vm0, %v170_v26  ;;  %v159_v49 = vpop.permute.xlu1 %158  ;;  %v105_v57 = vmul.f32 %v6393_v29, %v100_v47  ;;  %v108_v58 = vmul.f32 %v6396_v30, %v97_v41  ;;  %8869 = vst [vmem:[#allocation15_spill] sm:$0xff] %v6479_v27 }
  0xa4   :  { %v164_v46 = vsel %vm160_vm2, %v159_v49, %v6325_v62  ;;  %v1357_v62 = vld.sshfl [vmem:[#allocation1 + $0x8] sm:$0xff pattern:$0x75316420] }
  0xa5   :  { %5642 = vmatpush.msk.msrb.mxu0 %vm215_vm0, %v105_v57  ;;  %5648 = vmatpush.msk.msrb.mxu3 %vm215_vm0, %v108_v58  ;;  %v169_v53 = vmul.f32 %v6405_v39, %v164_v46  ;;  %1380 = vst [vmem:[#allocation1] ss:$2 sm:$0xff] %v6323_v61  ;;  %v6491_v41 = vpop.permute.xlu2 %269  ;;  %v6507_v46 = vperm.slane %v6282_v43, 3 }
  0xa6   :  { %5647 = vmatmul.msk.f32.vlgmr.msrb.gmra.mxu2 %vm353_vm4, %v350_v59  ;;  %5649 = vmatmul.msk.f32.vlgmr.msrb.gmra.mxu3 %vm353_vm4, %v350_v59 }
  0xa7   :  { %5651 = vmatpush.msk.msra.mxu0 %vm215_vm0, %v169_v53  ;;  %1366 = vrot.lane.b32.xlu2 %v1357_v62, %s6064_s23  ;;  %v1412_v57 = vld.sshfl [vmem:[#allocation1 + $0x10] sm:$0xff pattern:$0x75316420]  ;;  %v1413_v58 = vld.sshfl [vmem:[#allocation1 + $0x18] sm:$0xff pattern:$0x75316420] }
  0xa8   :  { %5643 = vmatmul.msk.f32.vlgmr.msrb.gmra.mxu0 %vm353_vm4, %v350_v59  ;;  %5645 = vmatmul.msk.f32.vlgmr.msrb.gmra.mxu1 %vm353_vm4, %v350_v59  ;;  %1438 = vst [vmem:[#allocation1 + $0x10] ss:$2 sm:$0xff] %v6302_v50  ;;  %v6504_v59 = vperm.slane %v6277_v42, 3  ;;  %v6513_v62 = vperm.slane %v6282_v43, 5 }
  0xa9   :  { %v157_v11 = vpop.permute.xlu0 %156  ;;  %8871 = vst [vmem:[#allocation17_spill] sm:$0xff] %v6507_v46 }
  0xaa   :  { %v161_v16 = vsel %vm160_vm2, %v157_v11, %v159_v49  ;;  %v162_v17 = vsel %vm160_vm2, %v6311_v54, %v157_v11  ;;  %8870 = vst [vmem:[#allocation16_spill] sm:$0xff] %v6504_v59  ;;  %1422 = vrot.lane.b32.xlu0 %v1412_v57, %s6066_s6 }
  0xab   :  { %v171_v18 = vmul.f32 %v6431_v4, %v162_v17  ;;  %v172_v19 = vmul.f32 %v6434_v6, %v161_v16  ;;  %v189_v20 = vpop.permute.xlu1 %188  ;;  %8872 = vst [vmem:[#allocation18_spill] sm:$0xff] %v6513_v62 }
  0xac   :  { %v193_v22 = vsel %vm192_vm5, %v189_v20, %v6398_v31  ;;  %v1384_v25 = vld.sshfl [vmem:[#allocation1 + $0x8] sm:$0xff pattern:$0x75316420]  ;;  %v1383_v47 = vld.sshfl [vmem:[#allocation1] sm:$0xff pattern:$0x75316420] }
  0xad   :  { %5655 = vmatpush.msk.msra.mxu2 %vm215_vm0, %v171_v18  ;;  %5657 = vmatpush.msk.msra.mxu3 %vm215_vm0, %v172_v19  ;;  %v204_v54 = vmul.f32 %v6441_v14, %v193_v22  ;;  %1407 = vst [vmem:[#allocation1] ss:$2 sm:$0xff] %v6323_v61  ;;  %v6544_v22 = vperm.slane %v6282_v43, 6 }
  0xae   :  { %5656 = vmatmul.msk.f32.vlgmr.msra.gmra.mxu2 %vm353_vm4, %v5650_v21  ;;  %5658 = vmatmul.msk.f32.vlgmr.msra.gmra.mxu3 %vm353_vm4, %v5650_v21 }
  0xaf   :  { %5666 = vmatpush.msk.msrb.mxu3 %vm215_vm0, %v204_v54  ;;  %1364 = vrot.lane.b32.xlu2 %v1356_v10, %s6064_s23  ;;  %8875 = vst [vmem:[#allocation21_spill] sm:$0xff] %v6544_v22  ;;  %v1442_v57 = vld.sshfl [vmem:[#allocation1 + $0x18] sm:$0xff pattern:$0x75316420] }
  0xb0   :  { %5652 = vmatmul.msk.f32.vlgmr.msra.gmra.mxu0 %vm353_vm4, %v5650_v21  ;;  %5654 = vmatmul.msk.f32.vlgmr.msra.gmra.mxu1 %vm353_vm4, %v5650_v21  ;;  %v6541_v21 = vperm.slane %v6254_v35, 5 }
  0xb1   :  { %v187_v26 = vpop.permute.xlu0 %186  ;;  %5675 = vmatpush.msk.msra.mxu3 %vm215_vm0, %v6306_v52  ;;  %1393 = vrot.lane.b32.xlu1 %v1384_v25, %s6065_s0 }
  0xb2   :  { %v194_v28 = vsel %vm192_vm5, %v187_v26, %v189_v20  ;;  %v6538_v20 = vperm.slane %v6277_v42, 5  ;;  %8874 = vst [vmem:[#allocation20_spill] sm:$0xff] %v6541_v21 }
  0xb3   :  { %v203_v32 = vmul.f32 %v6472_v24, %v194_v28  ;;  %v238_v33 = vpop.permute.xlu1 %237 }
  0xb4   :  { %v242_v52 = vsel %vm241_vm6, %v238_v33, %v6443_v15  ;;  %8873 = vst [vmem:[#allocation19_spill] sm:$0xff] %v6538_v20  ;;  %v1411_v54 = vld.sshfl [vmem:[#allocation1 + $0x8] sm:$0xff pattern:$0x75316420] }
  0xb5   :  { %5664 = vmatpush.msk.msrb.mxu2 %vm215_vm0, %v203_v32  ;;  %v252_v49 = vmul.f32 %v6479_v27, %v242_v52  ;;  %v6549_v23 = vld.sshfl [vmem:[#allocation1] sm:$0xff pattern:$0x75316420] }
  0xb6   :  { %5665 = vmatmul.msk.f32.vlgmr.msrb.gmra.mxu2 %vm353_vm4, %v5659_v34  ;;  %5667 = vmatmul.msk.f32.vlgmr.msrb.gmra.mxu3 %vm353_vm4, %v5659_v34  ;;  %1436 = vst [vmem:[#allocation1] ss:$2 sm:$0xff] %v6323_v61 }
  0xb7   :  { %5673 = vmatpush.msk.msra.mxu2 %vm215_vm0, %v6304_v51  ;;  %1343 = vrot.lane.b32.xlu2 %v6315_v56, %s6063_s2  ;;  %v5668_v56 = vld [vmem:[%s8862_s29 + $0x20] sm:$0xff] }
  0xb9   :  { %5682 = vmatpush.msk.msrb.mxu2 %vm215_vm0, %v252_v49  ;;  %v185_v53 = vpop.permute.xlu0 %184  ;;  %1391 = vrot.lane.b32.xlu1 %v1383_v47, %s6065_s0 }
  0xba   :  { %v195_v10 = vsel %vm192_vm5, %v185_v53, %v187_v26  ;;  %v196_v11 = vsel %vm192_vm5, %v6398_v31, %v185_v53  ;;  %v268_v31 = vpop.permute.xlu2 %267  ;;  %v1441_v26 = vld.sshfl [vmem:[#allocation1 + $0x10] sm:$0xff pattern:$0x75316420]  ;;  %v6588_v53 = vperm.slane %v6254_v35, 6 }
  0xbb   :  { %v201_v51 = vmul.f32 %v6504_v59, %v196_v11  ;;  %v202_v16 = vmul.f32 %v6507_v46, %v195_v10  ;;  %v236_v17 = vpop.permute.xlu1 %235  ;;  %v275_v25 = vsel %vm273_vm7, %v268_v31, %v6491_v41  ;;  %1451 = vrot.lane.b32.xlu0 %v1441_v26, %s6067_s24  ;;  %1465 = vst [vmem:[#allocation1 + $0x10] ss:$2 sm:$0xff] %v6302_v50 }
  0xbc   :  { %v243_v18 = vsel %vm241_vm6, %v236_v17, %v238_v33  ;;  %v283_v52 = vmul.f32 %v6544_v22, %v275_v25  ;;  %8878 = vst [vmem:[#allocation24_spill] sm:$0xff] %v6588_v53 }
  0xbd   :  { %v251_v19 = vmul.f32 %v6513_v62, %v243_v18  ;;  %5662 = vmatpush.msk.msrb.mxu1 %vm215_vm0, %v202_v16  ;;  %5660 = vmatpush.msk.msrb.mxu0 %vm215_vm0, %v201_v51  ;;  %v1440_v11 = vld.sshfl [vmem:[#allocation1 + $0x8] sm:$0xff pattern:$0x75316420]  ;;  %v1439_v51 = vld.sshfl [vmem:[#allocation1] sm:$0xff pattern:$0x75316420] }
  0xbe   :  { %5661 = vmatmul.msk.f32.vlgmr.msrb.gmra.mxu0 %vm353_vm4, %v5659_v34  ;;  %5663 = vmatmul.msk.f32.vlgmr.msrb.gmra.mxu1 %vm353_vm4, %v5659_v34  ;;  %1463 = vst [vmem:[#allocation1] ss:$2 sm:$0xff] %v6323_v61  ;;  %v8773_v18 = vmov 0  }
  0xbf   :  { %5671 = vmatpush.msk.msra.mxu1 %vm215_vm0, %v6336_v5  ;;  %5674 = vmatmul.msk.f32.vlgmr.msra.gmra.mxu2 %vm353_vm4, %v5668_v56  ;;  %v6560_v5 = vperm.slane %v6277_v42, 6 }
  0xc0   :  { %5676 = vmatmul.msk.f32.vlgmr.msra.gmra.mxu3 %vm353_vm4, %v5668_v56  ;;  %5669 = vmatpush.msk.msra.mxu0 %vm215_vm0, %v6334_v3 }
  0xc1   :  { %5680 = vmatpush.msk.msrb.mxu1 %vm215_vm0, %v251_v19  ;;  %v234_v28 = vpop.permute.xlu0 %233  ;;  %8876 = vst [vmem:[#allocation22_spill] sm:$0xff] %v6560_v5  ;;  %1395 = vrot.lane.b32.xlu2 %v6466_v55, %s6065_s0  ;;  %v5677_v55 = vld [vmem:[%s8862_s29 + $0x28] sm:$0xff] }
  0xc2   :  { %v244_v32 = vsel %vm241_vm6, %v234_v28, %v236_v17  ;;  %v245_v33 = vsel %vm241_vm6, %v6443_v15, %v234_v28  ;;  %1424 = vrot.lane.b32.xlu1 %v1413_v58, %s6066_s6  ;;  %v6585_v58 = vperm.slane %v6259_v36, 6  ;;  %v298_v10 = vpop.permute.xlu2 %297  ;;  %v6598_v17 = vperm.slane %v6254_v35, 7  ;;  %6014 = vset.pattern.permute.xlu0 %v8773_v18  ;;  %v1468_v28 = vld.sshfl [vmem:[#allocation1 + $0x10] sm:$0xff pattern:$0x75316420] }
  0xc3   :  { %v250_v34 = vmul.f32 %v6538_v20, %v244_v32  ;;  %v253_v47 = vmul.f32 %v6541_v21, %v245_v33  ;;  %v266_v3 = vpop.permute.xlu1 %265  ;;  %6008 = vset.pattern.permute.xlu2 %v8773_v18  ;;  %1449 = vrot.lane.b32.xlu0 %v1440_v11, %s6067_s24  ;;  %v1469_v32 = vld.sshfl [vmem:[#allocation1 + $0x18] sm:$0xff pattern:$0x75316420]  ;;  %v6625_v33 = vperm.slane %v6259_v36, 7  ;;  %v6653_v11 = vperm.slane %v6277_v42, 7 }
  0xc4   :  { %v276_v49 = vsel %vm273_vm7, %v266_v3, %v268_v31  ;;  %8877 = vst [vmem:[#allocation23_spill] sm:$0xff] %v6585_v58 }
  0xc5   :  { %5684 = vmatpush.msk.msrb.mxu3 %vm215_vm0, %v253_v47  ;;  %5678 = vmatpush.msk.msrb.mxu0 %vm215_vm0, %v250_v34  ;;  %v282_v15 = vmul.f32 %v6560_v5, %v276_v49  ;;  %8879 = vst [vmem:[#allocation25_spill] sm:$0xff] %v6598_v17  ;;  %v1466_v34 = vld.sshfl [vmem:[#allocation1] sm:$0xff pattern:$0x75316420] }
  0xc6   :  { %5670 = vmatmul.msk.f32.vlgmr.msra.gmra.mxu0 %vm353_vm4, %v5668_v56  ;;  %5672 = vmatmul.msk.f32.vlgmr.msra.gmra.mxu1 %vm353_vm4, %v5668_v56  ;;  %1492 = vst [vmem:[#allocation1 + $0x10] ss:$2 sm:$0xff] %v6302_v50 }
  0xc7   :  { %5683 = vmatmul.msk.f32.vlgmr.msrb.gmra.mxu2 %vm353_vm4, %v5677_v55  ;;  %5689 = vmatpush.msk.msra.mxu1 %vm215_vm0, %v283_v52  ;;  %8880 = vst [vmem:[#allocation26_spill] sm:$0xff] %v6625_v33  ;;  %v6633_v52 = vld [vmem:[%s8853_s4 + $0x30] ss:$0 sm:$0xff] }
  0xc8   :  { %5685 = vmatmul.msk.f32.vlgmr.msrb.gmra.mxu3 %vm353_vm4, %v5677_v55  ;;  %5687 = vmatpush.msk.msra.mxu0 %vm215_vm0, %v282_v15  ;;  %v5695_v15 = vld [vmem:[%s8862_s29 + $0x38] sm:$0xff]  ;;  %8881 = vst [vmem:[#allocation27_spill] sm:$0xff] %v6653_v11 }
  0xc9   :  { %v272_v16 = vpop.permute.xlu0 %271  ;;  %1420 = vrot.lane.b32.xlu2 %v1411_v54, %s6066_s6  ;;  %v5686_v54 = vld [vmem:[%s8862_s29 + $0x30] sm:$0xff] }
  0xca   :  { %v274_v56 = vsel %vm273_vm7, %v6491_v41, %v272_v16  ;;  %v277_v19 = vsel %vm273_vm7, %v272_v16, %v266_v3  ;;  %1453 = vrot.lane.b32.xlu1 %v1442_v57, %s6067_s24  ;;  %v336_v3 = vpop.permute.xlu2 %335  ;;  %v6656_v16 = vperm.slane %v6282_v43, 7 }
  0xcb   :  { %v284_v31 = vmul.f32 %v6585_v58, %v274_v56  ;;  %v285_v35 = vmul.f32 %v6588_v53, %v277_v19  ;;  %v304_v25 = vpop.permute.xlu1 %303  ;;  %1474 = vrot.lane.b32.xlu0 %v1466_v34, %s6068_s7  ;;  %v6663_v19 = vld [vmem:[%s8853_s4 + $0x28] ss:$0 sm:$0xff] }
  0xcc   :  { %v309_v41 = vsel %vm305_vm8, %v304_v25, %v298_v10  ;;  %8882 = vst [vmem:[#allocation28_spill] sm:$0xff] %v6656_v16 }
  0xcd   :  { %5691 = vmatpush.msk.msra.mxu2 %vm215_vm0, %v284_v31  ;;  %5693 = vmatpush.msk.msra.mxu3 %vm215_vm0, %v285_v35  ;;  %v317_v26 = vmul.f32 %v6598_v17, %v309_v41  ;;  %v5704_v41 = vld [vmem:[%s8862_s29 + $0x40] sm:$0xff] }
  0xce   :  { %5679 = vmatmul.msk.f32.vlgmr.msrb.gmra.mxu0 %vm353_vm4, %v5677_v55  ;;  %5681 = vmatmul.msk.f32.vlgmr.msrb.gmra.mxu1 %vm353_vm4, %v5677_v55 }
  0xcf   :  { %5692 = vmatmul.msk.f32.vlgmr.msra.gmra.mxu2 %vm353_vm4, %v5686_v54  ;;  %5702 = vmatpush.msk.msrb.mxu3 %vm215_vm0, %v317_v26  ;;  %v6692_v26 = vld [vmem:[%s8853_s4 + $0x38] ss:$0 sm:$0xff] }
  0xd0   :  { %5694 = vmatmul.msk.f32.vlgmr.msra.gmra.mxu3 %vm353_vm4, %v5686_v54 }
  0xd1   :  { %v302_v47 = vpop.permute.xlu0 %301  ;;  %1418 = vrot.lane.b32.xlu2 %v6549_v23, %s6066_s6 }
  0xd2   :  { %v306_v36 = vsel %vm305_vm8, %v302_v47, %v304_v25  ;;  %1478 = vrot.lane.b32.xlu1 %v1468_v28, %s6068_s7 }
  0xd3   :  { %v316_v55 = vmul.f32 %v6625_v33, %v306_v36  ;;  %v334_v49 = vpop.permute.xlu1 %333 }
  0xd4   :  { %v338_v57 = vsel %vm337_vm9, %v334_v49, %v336_v3 }
  0xd5   :  { %5700 = vmatpush.msk.msrb.mxu2 %vm215_vm0, %v316_v55  ;;  %v348_v23 = vmul.f32 %v6633_v52, %v338_v57  ;;  %v1496_v57 = vld.sshfl [vmem:[#allocation1 + $0x18] sm:$0xff pattern:$0x75316420] }
  0xd6   :  { %5688 = vmatmul.msk.f32.vlgmr.msra.gmra.mxu0 %vm353_vm4, %v5686_v54  ;;  %5690 = vmatmul.msk.f32.vlgmr.msra.gmra.mxu1 %vm353_vm4, %v5686_v54 }
  0xd7   :  { %5701 = vmatmul.msk.f32.vlgmr.msrb.gmra.mxu2 %vm353_vm4, %v5695_v15 }
  0xd8   :  { %5703 = vmatmul.msk.f32.vlgmr.msrb.gmra.mxu3 %vm353_vm4, %v5695_v15  ;;  %5709 = vmatpush.msk.msra.mxu2 %vm215_vm0, %v348_v23 }
  0xd9   :  { %v300_v56 = vpop.permute.xlu0 %299  ;;  %1447 = vrot.lane.b32.xlu2 %v1439_v51, %s6067_s24 }
  0xda   :  { %v307_v31 = vsel %vm305_vm8, %v300_v56, %v302_v47  ;;  %v308_v42 = vsel %vm305_vm8, %v298_v10, %v300_v56  ;;  %v6687_v10 = vld [vmem:[%s8853_s4 + $0x20] ss:$0 sm:$0xff] }
  0xdb   :  { %v314_v43 = vmul.f32 %v6653_v11, %v308_v42  ;;  %v315_v35 = vmul.f32 %v6656_v16, %v307_v31  ;;  %v332_v25 = vpop.permute.xlu1 %331 }
  0xdc   :  { %v339_v54 = vsel %vm337_vm9, %v332_v25, %v334_v49  ;;  %v1495_v49 = vld.sshfl [vmem:[#allocation1 + $0x10] sm:$0xff pattern:$0x75316420] }
  0xdd   :  { %v347_v51 = vmul.f32 %v6663_v19, %v339_v54  ;;  %5698 = vmatpush.msk.msrb.mxu1 %vm215_vm0, %v315_v35  ;;  %5696 = vmatpush.msk.msrb.mxu0 %vm215_vm0, %v314_v43  ;;  %1519 = vst [vmem:[#allocation1 + $0x10] ss:$2 sm:$0xff] %v6302_v50  ;;  %v1434_v35 = vmul.f32 %v6295_v48, %v6323_v61 }
  0xde   :  { %5697 = vmatmul.msk.f32.vlgmr.msrb.gmra.mxu0 %vm353_vm4, %v5695_v15  ;;  %5699 = vmatmul.msk.f32.vlgmr.msrb.gmra.mxu1 %vm353_vm4, %v5695_v15 }
  0xdf   :  { %5710 = vmatmul.msk.f32.vlgmr.msra.gmra.mxu2 %vm353_vm4, %v5704_v41  ;;  %5707 = vmatpush.msk.msra.mxu1 %vm215_vm0, %v347_v51 }
  0xe0   :  { %1505 = vrot.lane.b32.xlu0 %v1495_v49, %s6069_s25 }
  0xe1   :  { %v330_v28 = vpop.permute.xlu0 %329  ;;  %1480 = vrot.lane.b32.xlu2 %v1469_v32, %s6068_s7  ;;  %v6708_v32 = vld [vmem:[%s8883_s30] sm:$0xff] }
  0xe2   :  { %v340_v34 = vsel %vm337_vm9, %v330_v28, %v332_v25  ;;  %v341_v47 = vsel %vm337_vm9, %v336_v3, %v330_v28  ;;  %v1467_v3 = vld.sshfl [vmem:[#allocation1 + $0x8] sm:$0xff pattern:$0x75316420] }
  0xe3   :  { %v346_v36 = vmul.f32 %v6687_v10, %v340_v34  ;;  %v349_v55 = vmul.f32 %v6692_v26, %v341_v47  ;;  %1476 = vrot.lane.b32.xlu1 %v1467_v3, %s6068_s7  ;;  %1490 = vst [vmem:[#allocation1] ss:$2 sm:$0xff] %v6323_v61  ;;  %v1371_v47 = vpop.permute.xlu1 %1370 }
  0xe4   :  { %v1522_v51 = vld.sshfl [vmem:[#allocation1 + $0x10] sm:$0xff pattern:$0x75316420] }
  0xe5   :  { %5711 = vmatpush.msk.msra.mxu3 %vm215_vm0, %v349_v55  ;;  %5705 = vmatpush.msk.msra.mxu0 %vm215_vm0, %v346_v36 }
  0xe6   :  { %5706 = vmatmul.msk.f32.vlgmr.msra.gmra.mxu0 %vm353_vm4, %v5704_v41  ;;  %5708 = vmatmul.msk.f32.vlgmr.msra.gmra.mxu1 %vm353_vm4, %v5704_v41 }
  0xe7   :  { %5712 = vmatmul.msk.f32.vlgmr.msra.gmra.mxu3 %vm353_vm4, %v5704_v41 }
  0xe9   :  { %1259 = vperm.xlu2 %6008, %v6708_v32   ;;  %v1369_v31 = vpop.permute.xlu0 %1368 }
  0xea   :  { %v1494_v23 = vld.sshfl [vmem:[#allocation1 + $0x8] sm:$0xff pattern:$0x75316420]  ;;  %v1493_v56 = vld.sshfl [vmem:[#allocation1] sm:$0xff pattern:$0x75316420]  ;;  %v1372_v36 = vsel %vm128_vm1, %v1369_v31, %v1371_v47 }
  0xeb   :  { %1507 = vrot.lane.b32.xlu1 %v1496_v57, %s6069_s25  ;;  %1503 = vrot.lane.b32.xlu0 %v1494_v23, %s6069_s25  ;;  %1517 = vst [vmem:[#allocation1] ss:$2 sm:$0xff] %v6323_v61  ;;  %v1342_v23 = vpop.permute.xlu1 %1341 }
  0xf1   :  { %1501 = vrot.lane.b32.xlu2 %v1493_v56, %s6069_s25  ;;  %v1340_v3 = vpop.permute.xlu0 %1339 }
  0xf2   :  { %v1520_v28 = vld.sshfl [vmem:[#allocation1] sm:$0xff pattern:$0x75316420]  ;;  %v1521_v34 = vld.sshfl [vmem:[#allocation1 + $0x8] sm:$0xff pattern:$0x75316420] }
  0xf3   :  { %1532 = vrot.lane.b32.xlu1 %v1522_v51, %s6070_s26  ;;  %1528 = vrot.lane.b32.xlu0 %v1520_v28, %s6070_s26  ;;  %1943 = vst [vmem:[#allocation1] ss:$2 sm:$0xff] %v1434_v35 }
  0xfb   :  { %1530 = vrot.lane.b32.xlu1 %v1521_v34, %s6070_s26 }
 0x101   :  { %v1367_v15 = vpop.permute.xlu2 %1366 }
 0x102   :  { %v1373_v42 = vsel %vm128_vm1, %v1367_v15, %v1369_v31 }
 0x103   :  { %v1378_v25 = vmul.f32 %v1373_v42, %v6329_v63  ;;  %v1346_v42 = vsel %vm96_vm3, %v1340_v3, %v1342_v23 }
 0x104   :  { %v1351_v35 = vmul.f32 %v1346_v42, %v6356_v12 }
 0x105   :  { %5718 = vmatpush.msk.msrb.mxu2 %vm215_vm0, %v1378_v25 }
 0x107   :  { %5726 = vmatpush.msk.msra.mxu2 %vm215_vm0, %v1351_v35 }
 0x109   :  { %v1365_v43 = vpop.permute.xlu2 %1364 }
 0x10a   :  { %v1374_v54 = vsel %vm128_vm1, %v1365_v43, %v1367_v15  ;;  %v1375_v55 = vsel %vm128_vm1, %v1371_v47, %v1365_v43  ;;  %v1379_v15 = vmul.f32 %v1372_v36, %v6332_v2 }
 0x10b   :  { %v1377_v41 = vmul.f32 %v1374_v54, %v6346_v8  ;;  %v1376_v49 = vmul.f32 %v1375_v55, %v6343_v7  ;;  %v1338_v54 = vpop.permute.xlu0 %1337  ;;  %v1435_v55 = vmul.f32 %v6270_v40, %v6302_v50  ;;  %v1946_v50 = vld.sshfl [vmem:[#allocation1] sm:$0xff pattern:$0x75316420] }
 0x10c   :  { %5720 = vmatpush.msk.msrb.mxu3 %vm215_vm0, %v1379_v15  ;;  %v5713_v15 = vld [vmem:[%s8884_s3 + $0x8] sm:$0xff] }
 0x10d   :  { %5716 = vmatpush.msk.msrb.mxu1 %vm215_vm0, %v1377_v41  ;;  %5714 = vmatpush.msk.msrb.mxu0 %vm215_vm0, %v1376_v49  ;;  %v1347_v41 = vsel %vm96_vm3, %v1338_v54, %v1340_v3 }
 0x10e   :  { %v1350_v34 = vmul.f32 %v1347_v41, %v6349_v9  ;;  %5715 = vmatmul.msk.f32.vlgmr.msrb.gmra.mxu0 %vm353_vm4, %v5713_v15  ;;  %5717 = vmatmul.msk.f32.vlgmr.msrb.gmra.mxu1 %vm353_vm4, %v5713_v15 }
 0x10f   :  { %5719 = vmatmul.msk.f32.vlgmr.msrb.gmra.mxu2 %vm353_vm4, %v5713_v15  ;;  %5721 = vmatmul.msk.f32.vlgmr.msrb.gmra.mxu3 %vm353_vm4, %v5713_v15 }
 0x110   :  { %5724 = vmatpush.msk.msra.mxu1 %vm215_vm0, %v1350_v34 }
 0x111   :  { %v1344_v48 = vpop.permute.xlu2 %1343 }
 0x112   :  { %v1345_v31 = vsel %vm96_vm3, %v1342_v23, %v1344_v48  ;;  %v1348_v51 = vsel %vm96_vm3, %v1344_v48, %v1338_v54  ;;  %v1523_v23 = vld.sshfl [vmem:[#allocation1 + $0x18] sm:$0xff pattern:$0x75316420] }
 0x113   :  { %v1352_v25 = vmul.f32 %v1345_v31, %v6396_v30  ;;  %v1349_v28 = vmul.f32 %v1348_v51, %v6393_v29  ;;  %1945 = vst [vmem:[#allocation1 + $0x10] ss:$2 sm:$0xff] %v1435_v55  ;;  %1534 = vrot.lane.b32.xlu2 %v1523_v23, %s6070_s26  ;;  %v1544_v23 = vld [vmem:[%s8884_s3] sm:$0xff] }
 0x114   :  { %v1398_v42 = vpop.permute.xlu0 %1397 }
 0x115   :  { %5728 = vmatpush.msk.msra.mxu3 %vm215_vm0, %v1352_v25  ;;  %5722 = vmatpush.msk.msra.mxu0 %vm215_vm0, %v1349_v28 }
 0x116   :  { %5723 = vmatmul.msk.f32.vlgmr.msra.gmra.mxu0 %vm353_vm4, %v1544_v23  ;;  %5725 = vmatmul.msk.f32.vlgmr.msra.gmra.mxu1 %vm353_vm4, %v1544_v23 }
 0x117   :  { %5727 = vmatmul.msk.f32.vlgmr.msra.gmra.mxu2 %vm353_vm4, %v1544_v23  ;;  %5729 = vmatmul.msk.f32.vlgmr.msra.gmra.mxu3 %vm353_vm4, %v1544_v23  ;;  %v5730_v23 = vld [vmem:[%s8884_s3 + $0x10] sm:$0xff] }
 0x11a   :  { %v1949_v61 = vld.sshfl [vmem:[#allocation1 + $0x18] sm:$0xff pattern:$0x75316420]  ;;  %v1948_v38 = vld.sshfl [vmem:[#allocation1 + $0x10] sm:$0xff pattern:$0x75316420] }
 0x11b   :  { %v1396_v57 = vpop.permute.xlu2 %1395  ;;  %4965 = vst [vmem:[#allocation1 + $0x10] ss:$2 sm:$0xff] %v6201_v1 }
 0x11c   :  { %v1399_v40 = vsel %vm160_vm2, %v1396_v57, %v1398_v42 }
 0x11d   :  { %v6741_v56 = vpop.f32.mrf.mxu0  ;;  %v6747_v43 = vpop.f32.mrf.mxu1  ;;  %v1406_v54 = vmul.f32 %v1399_v40, %v6434_v6 }
 0x11f   :  { %5737 = vmatpush.msk.msrb.mxu3 %vm215_vm0, %v1406_v54  ;;  %v1423_v54 = vpop.permute.xlu0 %1422 }
 0x120   :  { %5738 = vmatmul.msk.f32.vlgmr.msrb.gmra.mxu3 %vm353_vm4, %v5730_v23 }
 0x121   :  { %v6759_v47 = vpop.f32.mrf.mxu2  ;;  %v6761_v36 = vpop.f32.mrf.mxu3 }
 0x123   :  { %v1421_v48 = vpop.permute.xlu2 %1420  ;;  %v1394_v3 = vpop.permute.xlu1 %1393 }
 0x124   :  { %v1400_v49 = vsel %vm160_vm2, %v1394_v3, %v1396_v57  ;;  %v1427_v18 = vsel %vm192_vm5, %v1421_v48, %v1423_v54 }
 0x125   :  { %v1405_v31 = vmul.f32 %v1400_v49, %v6431_v4  ;;  %v6779_v35 = vpop.f32.mrf.mxu0  ;;  %v6781_v25 = vpop.f32.mrf.mxu1 }
 0x127   :  { %5735 = vmatpush.msk.msrb.mxu2 %vm215_vm0, %v1405_v31 }
 0x128   :  { %5736 = vmatmul.msk.f32.vlgmr.msrb.gmra.mxu2 %vm353_vm4, %v5730_v23 }
 0x129   :  { %v6786_v41 = vpop.f32.mrf.mxu2  ;;  %v6788_v51 = vpop.f32.mrf.mxu3 }
 0x12b   :  { %v1419_v57 = vpop.permute.xlu2 %1418  ;;  %v1392_v28 = vpop.permute.xlu1 %1391 }
 0x12c   :  { %v1428_v34 = vsel %vm192_vm5, %v1419_v57, %v1421_v48  ;;  %v1401_v55 = vsel %vm160_vm2, %v1392_v28, %v1394_v3  ;;  %v1402_v49 = vsel %vm160_vm2, %v1398_v42, %v1392_v28  ;;  %v1432_v3 = vmul.f32 %v1427_v18, %v6472_v24 }
 0x12d   :  { %v1431_v15 = vmul.f32 %v1428_v34, %v6507_v46  ;;  %v1403_v31 = vmul.f32 %v1402_v49, %v6405_v39  ;;  %v1404_v40 = vmul.f32 %v1401_v55, %v6359_v13  ;;  %v6818_v48 = vpop.f32.mrf.mxu0  ;;  %v6820_v34 = vpop.f32.mrf.mxu1 }
 0x12e   :  { %5744 = vmatpush.msk.msra.mxu2 %vm215_vm0, %v1432_v3 }
 0x12f   :  { %5733 = vmatpush.msk.msrb.mxu1 %vm215_vm0, %v1404_v40  ;;  %5731 = vmatpush.msk.msrb.mxu0 %vm215_vm0, %v1403_v31 }
 0x130   :  { %5732 = vmatmul.msk.f32.vlgmr.msrb.gmra.mxu0 %vm353_vm4, %v5730_v23  ;;  %5734 = vmatmul.msk.f32.vlgmr.msrb.gmra.mxu1 %vm353_vm4, %v5730_v23  ;;  %v5739_v23 = vld [vmem:[%s8884_s3 + $0x18] sm:$0xff] }
 0x131   :  { %v6811_v42 = vpop.f32.mrf.mxu2  ;;  %v6813_v28 = vpop.f32.mrf.mxu3  ;;  %5742 = vmatpush.msk.msra.mxu1 %vm215_vm0, %v1431_v15  ;;  %5745 = vmatmul.msk.f32.vlgmr.msra.gmra.mxu2 %vm353_vm4, %v5739_v23 }
 0x132   :  { %v6829_v15 = vpop.permute.xlu0 %1451  ;;  %5753 = vmatpush.msk.msrb.mxu2 %vm215_vm0, %v1948_v38 }
 0x134   :  { %v1425_v55 = vpop.permute.xlu1 %1424 }
 0x135   :  { %v1426_v18 = vsel %vm192_vm5, %v1423_v54, %v1425_v55  ;;  %v1429_v49 = vsel %vm192_vm5, %v1425_v55, %v1419_v57  ;;  %v1448_v54 = vpop.permute.xlu2 %1447 }
 0x136   :  { %v1430_v31 = vmul.f32 %v1429_v49, %v6504_v59  ;;  %v1433_v40 = vmul.f32 %v1426_v18, %v6441_v14 }
 0x138   :  { %5740 = vmatpush.msk.msra.mxu0 %vm215_vm0, %v1430_v31  ;;  %5746 = vmatpush.msk.msra.mxu3 %vm215_vm0, %v1433_v40 }
 0x139   :  { %v6838_v57 = vpop.f32.mrf.mxu2  ;;  %v6840_v3 = vpop.f32.mrf.mxu3  ;;  %5741 = vmatmul.msk.f32.vlgmr.msra.gmra.mxu0 %vm353_vm4, %v5739_v23  ;;  %5743 = vmatmul.msk.f32.vlgmr.msra.gmra.mxu1 %vm353_vm4, %v5739_v23 }
 0x13a   :  { %5749 = vmatpush.msk.msrb.mxu0 %vm215_vm0, %v1946_v50  ;;  %5755 = vmatpush.msk.msrb.mxu3 %vm215_vm0, %v1949_v61  ;;  %v6854_v44 = vpop.permute.xlu0 %1449 }
 0x13b   :  { %v679_v55 = vpop.f32.mrf.mxu0  ;;  %v699_v49 = vpop.f32.mrf.mxu1  ;;  %v1457_v50 = vsel %vm241_vm6, %v1448_v54, %v6854_v44  ;;  %5747 = vmatmul.msk.f32.vlgmr.msra.gmra.mxu3 %vm353_vm4, %v5739_v23 }
 0x13c   :  { %v1454_v18 = vpop.permute.xlu1 %1453  ;;  %v1459_v61 = vmul.f32 %v1457_v50, %v6538_v20 }
 0x13d   :  { %v1458_v37 = vsel %vm241_vm6, %v1454_v18, %v1448_v54  ;;  %v1455_v31 = vsel %vm241_vm6, %v6829_v15, %v1454_v18 }
 0x13e   :  { %v1462_v40 = vmul.f32 %v1458_v37, %v6541_v21  ;;  %v1461_v18 = vmul.f32 %v1455_v31, %v6479_v27  ;;  %v1481_v21 = vpop.permute.xlu2 %1480  ;;  %5758 = vmatpush.msk.msra.mxu0 %vm215_vm0, %v1459_v61  ;;  %v6878_v31 = vld [vmem:[%s8884_s3 + $0x20] sm:$0xff] }
 0x13f   :  { %5754 = vmatmul.msk.f32.vlgmr.msrb.gmra.mxu2 %vm353_vm4, %v6878_v31 }
 0x140   :  { %5764 = vmatpush.msk.msra.mxu3 %vm215_vm0, %v1462_v40  ;;  %5762 = vmatpush.msk.msra.mxu2 %vm215_vm0, %v1461_v18 }
 0x141   :  { %5750 = vmatmul.msk.f32.vlgmr.msrb.gmra.mxu0 %vm353_vm4, %v6878_v31 }
 0x142   :  { %v825_v37 = vpop.f32.mrf.mxu2  ;;  %v6881_v50 = vpop.permute.xlu0 %1474 }
 0x143   :  { %v845_v14 = vpop.f32.mrf.mxu3  ;;  %v785_v59 = vpop.f32.mrf.mxu0  ;;  %v1485_v1 = vsel %vm273_vm7, %v1481_v21, %v6881_v50  ;;  %5756 = vmatmul.msk.f32.vlgmr.msrb.gmra.mxu3 %vm353_vm4, %v6878_v31 }
 0x144   :  { %v805_v54 = vpop.f32.mrf.mxu1  ;;  %v6867_v45 = vpop.permute.xlu1 %1478  ;;  %v1489_v38 = vmul.f32 %v1485_v1, %v6588_v53  ;;  %v502_v1 = vadd.f32 %v6781_v25, %v6747_v43 }
 0x145   :  { %v1482_v23 = vsel %vm273_vm7, %v6867_v45, %v1481_v21  ;;  %v482_v21 = vadd.f32 %v6779_v35, %v6741_v56  ;;  %v5757_v56 = vld [vmem:[%s8884_s3 + $0x28] sm:$0xff] }
 0x146   :  { %v1488_v40 = vmul.f32 %v1482_v23, %v6585_v58  ;;  %5773 = vmatpush.msk.msrb.mxu3 %vm215_vm0, %v1489_v38  ;;  %v642_v38 = vadd.f32 %v6820_v34, %v502_v1  ;;  %v1260_v1 = vpop.permute.xlu2 %1259 }
 0x147   :  { %v641_v53 = vadd.f32 %v6818_v48, %v482_v21  ;;  %5763 = vmatmul.msk.f32.vlgmr.msra.gmra.mxu2 %vm353_vm4, %v5757_v56 }
 0x148   :  { %5771 = vmatpush.msk.msrb.mxu2 %vm215_vm0, %v1488_v40  ;;  %v522_v40 = vadd.f32 %v6786_v41, %v6759_v47  ;;  %v743_v13 = vadd.f32 %v699_v49, %v642_v38  ;;  %v542_v47 = vadd.f32 %v6788_v51, %v6761_v36  ;;  %v1456_v36 = vsel %vm241_vm6, %v6854_v44, %v6829_v15 }
 0x149   :  { %v742_v6 = vadd.f32 %v679_v55, %v641_v53  ;;  %5759 = vmatmul.msk.f32.vlgmr.msra.gmra.mxu0 %vm353_vm4, %v5757_v56 }
 0x14a   :  { %v926_v61 = vpop.f32.mrf.mxu2  ;;  %v643_v4 = vadd.f32 %v6811_v42, %v522_v40  ;;  %v849_v25 = vadd.f32 %v805_v54, %v743_v13  ;;  %v644_v42 = vadd.f32 %v6813_v28, %v542_v47  ;;  %v1460_v28 = vmul.f32 %v1456_v36, %v6513_v62 }
 0x14b   :  { %v886_v18 = vpop.f32.mrf.mxu0  ;;  %v946_v58 = vpop.f32.mrf.mxu3  ;;  %v848_v35 = vadd.f32 %v785_v59, %v742_v6  ;;  %5765 = vmatmul.msk.f32.vlgmr.msra.gmra.mxu3 %vm353_vm4, %v5757_v56 }
 0x14c   :  { %v906_v23 = vpop.f32.mrf.mxu1  ;;  %v744_v53 = vadd.f32 %v6838_v57, %v643_v4  ;;  %v745_v6 = vadd.f32 %v6840_v3, %v644_v42 }
 0x14d   :  { %v949_v41 = vadd.f32 %v886_v18, %v848_v35  ;;  %v950_v34 = vadd.f32 %v906_v23, %v849_v25 }
 0x14e   :  { %v850_v48 = vadd.f32 %v825_v37, %v744_v53  ;;  %v851_v13 = vadd.f32 %v845_v14, %v745_v6 }
 0x150   :  { %v951_v59 = vadd.f32 %v926_v61, %v850_v48  ;;  %v952_v3 = vadd.f32 %v946_v58, %v851_v13 }
 0x152   :  { %v1027_v20 = vpop.f32.mrf.mxu2  ;;  %v1506_v53 = vpop.permute.xlu0 %1505 }
 0x153   :  { %v987_v27 = vpop.f32.mrf.mxu0  ;;  %v1047_v46 = vpop.f32.mrf.mxu3  ;;  %v1052_v57 = vadd.f32 %v1027_v20, %v951_v59 }
 0x154   :  { %v1007_v24 = vpop.f32.mrf.mxu1  ;;  %v1050_v55 = vadd.f32 %v987_v27, %v949_v41  ;;  %v1053_v14 = vadd.f32 %v1047_v46, %v952_v3 }
 0x155   :  { %v1051_v49 = vadd.f32 %v1007_v24, %v950_v34  ;;  %v5766_v24 = vld [vmem:[%s8884_s3 + $0x30] sm:$0xff] }
 0x156   :  { %5772 = vmatmul.msk.f32.vlgmr.msrb.gmra.mxu2 %vm353_vm4, %v5766_v24  ;;  %5774 = vmatmul.msk.f32.vlgmr.msrb.gmra.mxu3 %vm353_vm4, %v5766_v24 }
 0x15a   :  { %v1128_v39 = vpop.f32.mrf.mxu2 }
 0x15b   :  { %v1088_v30 = vpop.f32.mrf.mxu0  ;;  %v1148_v51 = vpop.f32.mrf.mxu3  ;;  %v1153_v61 = vadd.f32 %v1128_v39, %v1052_v57 }
 0x15c   :  { %v1108_v43 = vpop.f32.mrf.mxu1  ;;  %v1151_v4 = vadd.f32 %v1088_v30, %v1050_v55  ;;  %v1947_v30 = vld.sshfl [vmem:[#allocation1 + $0x8] sm:$0xff pattern:$0x75316420]  ;;  %v1154_v39 = vadd.f32 %v1148_v51, %v1053_v14 }
 0x15d   :  { %v1152_v54 = vadd.f32 %v1108_v43, %v1051_v49  ;;  %5751 = vmatpush.msk.msrb.mxu1 %vm215_vm0, %v1947_v30  ;;  %4963 = vst [vmem:[#allocation1] ss:$2 sm:$0xff] %v6196_v0  ;;  %v1477_v0 = vpop.permute.xlu1 %1476  ;;  %v1504_v34 = vpop.permute.xlu0 %1503  ;;  %v8815_v30 = vmov 2  }
 0x15e   :  { %5752 = vmatmul.msk.f32.vlgmr.msrb.gmra.mxu1 %vm353_vm4, %v6878_v31  ;;  %v1483_v31 = vsel %vm273_vm7, %v1477_v0, %v6867_v45  ;;  %v1484_v25 = vsel %vm273_vm7, %v6881_v50, %v1477_v0  ;;  %v1510_v50 = vsel %vm305_vm8, %v1504_v34, %v1506_v53 }
 0x15f   :  { %5760 = vmatpush.msk.msra.mxu1 %vm215_vm0, %v1460_v28  ;;  %v1486_v41 = vmul.f32 %v1484_v25, %v6560_v5  ;;  %v1487_v42 = vmul.f32 %v1483_v31, %v6544_v22  ;;  %v1514_v49 = vmul.f32 %v1510_v50, %v6656_v16 }
 0x161   :  { %5767 = vmatpush.msk.msrb.mxu0 %vm215_vm0, %v1486_v41  ;;  %5769 = vmatpush.msk.msrb.mxu1 %vm215_vm0, %v1487_v42 }
 0x162   :  { %v1229_v37 = vpop.f32.mrf.mxu2  ;;  %5768 = vmatmul.msk.f32.vlgmr.msrb.gmra.mxu0 %vm353_vm4, %v5766_v24 }
 0x163   :  { %v1189_v18 = vpop.f32.mrf.mxu0  ;;  %v1254_v20 = vadd.f32 %v1229_v37, %v1153_v61  ;;  %v8813_v61 = vmov 1  }
 0x164   :  { %v1209_v23 = vpop.f32.mrf.mxu1  ;;  %v1252_v27 = vadd.f32 %v1189_v18, %v1151_v4  ;;  %6009 = vset.pattern.permute.xlu1 %v8813_v61  ;;  %6012 = vset.pattern.permute.xlu2 %v8813_v61 }
 0x165   :  { %v1253_v21 = vadd.f32 %v1209_v23, %v1152_v54  ;;  %v6936_v35 = vadd.f32 %v1260_v1, %v1254_v20  ;;  %v1508_v48 = vpop.permute.xlu1 %1507  ;;  %v1529_v57 = vpop.permute.xlu0 %1528  ;;  %v5775_v23 = vld [vmem:[%s8884_s3 + $0x38] sm:$0xff]  ;;  %1309 = vperm.xlu1 %6009, %v6708_v32   ;;  %v7009_v20 = vld [vmem:[%s8885_s5] sm:$0xff] }
 0x166   :  { %v6925_v44 = vadd.f32 %v1260_v1, %v1252_v27  ;;  %5761 = vmatmul.msk.f32.vlgmr.msra.gmra.mxu1 %vm353_vm4, %v5757_v56  ;;  %v1502_v56 = vpop.permute.xlu2 %1501  ;;  %v1509_v45 = vsel %vm305_vm8, %v1506_v53, %v1508_v48 }
 0x167   :  { %v6927_v15 = vadd.f32 %v1260_v1, %v1253_v21  ;;  %v1511_v55 = vsel %vm305_vm8, %v1502_v56, %v1504_v34  ;;  %v1512_v6 = vsel %vm305_vm8, %v1508_v48, %v1502_v56  ;;  %v1515_v59 = vmul.f32 %v1509_v45, %v6625_v33  ;;  %5778 = vmatpush.msk.msra.mxu1 %vm215_vm0, %v1514_v49 }
 0x168   :  { %v1513_v36 = vmul.f32 %v1511_v55, %v6653_v11  ;;  %v1516_v51 = vmul.f32 %v1512_v6, %v6598_v17  ;;  %v6073_v21 = vmov 512.0  }
 0x169   :  { %v1266_v58 = vadd.f32 %v6927_v15, %v6925_v44  ;;  %5780 = vmatpush.msk.msra.mxu2 %vm215_vm0, %v1515_v59  ;;  %6032 = vrcp.f32 %v6073_v21 }
 0x16a   :  { %v1249_v40 = vpop.f32.mrf.mxu3  ;;  %5776 = vmatpush.msk.msra.mxu0 %vm215_vm0, %v1513_v36  ;;  %5782 = vmatpush.msk.msra.mxu3 %vm215_vm0, %v1516_v51 }
 0x16b   :  { %v1255_v38 = vadd.f32 %v1249_v40, %v1154_v39  ;;  %v1267_v43 = vadd.f32 %v1266_v58, %v6936_v35  ;;  %5781 = vmatmul.msk.f32.vlgmr.msra.gmra.mxu2 %vm353_vm4, %v5775_v23  ;;  %5783 = vmatmul.msk.f32.vlgmr.msra.gmra.mxu3 %vm353_vm4, %v5775_v23  ;;  %v8886_v58 = vmov 0  }
 0x16c   :  { %5777 = vmatmul.msk.f32.vlgmr.msra.gmra.mxu0 %vm353_vm4, %v5775_v23 }
 0x16d   :  { %v6938_v46 = vadd.f32 %v1260_v1, %v1255_v38  ;;  %v1533_v4 = vpop.permute.xlu1 %1532  ;;  %v5784_v1 = vld [vmem:[%s8884_s3 + $0x40] sm:$0xff]  ;;  %6010 = vset.pattern.permute.xlu1 %v8815_v30 }
 0x16e   :  { %5770 = vmatmul.msk.f32.vlgmr.msrb.gmra.mxu1 %vm353_vm4, %v5766_v24  ;;  %v1535_v13 = vpop.permute.xlu2 %1534  ;;  %1317 = vperm.xlu1 %6010, %v6708_v32  }
 0x16f   :  { %v1268_v47 = vadd.f32 %v1267_v43, %v6938_v46  ;;  %v1536_v54 = vsel %vm337_vm9, %v1533_v4, %v1535_v13  ;;  %v1539_v18 = vsel %vm337_vm9, %v1535_v13, %v1529_v57 }
 0x170   :  { %v1542_v28 = vmul.f32 %v6633_v52, %v1536_v54  ;;  %v1543_v37 = vmul.f32 %v6692_v26, %v1539_v18 }
 0x171   :  { %1269 = vadd.xlane.f32.xlu2 %v1268_v47 }
 0x172   :  { %5789 = vmatpush.msk.msrb.mxu2 %vm215_vm0, %v1542_v28  ;;  %5791 = vmatpush.msk.msrb.mxu3 %vm215_vm0, %v1543_v37 }
 0x173   :  { %5790 = vmatmul.msk.f32.vlgmr.msrb.gmra.mxu2 %vm353_vm4, %v5784_v1  ;;  %5792 = vmatmul.msk.f32.vlgmr.msrb.gmra.mxu3 %vm353_vm4, %v5784_v1 }
 0x175   :  { %v1531_v27 = vpop.permute.xlu1 %1530 }
 0x176   :  { %v1537_v24 = vsel %vm337_vm9, %v1531_v27, %v1533_v4  ;;  %v1538_v52 = vsel %vm337_vm9, %v1529_v57, %v1531_v27  ;;  %5779 = vmatmul.msk.f32.vlgmr.msra.gmra.mxu1 %vm353_vm4, %v5775_v23  ;;  %6011 = vset.pattern.permute.xlu1 %v8886_v58 }
 0x177   :  { %v1540_v26 = vmul.f32 %v6687_v10, %v1538_v52  ;;  %v1541_v3 = vmul.f32 %v6663_v19, %v1537_v24  ;;  %v6033_v19 = vpop.eup %6032  ;;  %2452 = vperm.xlu1 %6011, %v7009_v20  }
 0x178   :  { %v1272_v10 = vmul.f32 512.0, %v6033_v19  ;;  %vm1276_vm10 = vweird.f32 %v6033_v19 }
 0x179   :  { %5785 = vmatpush.msk.msrb.mxu0 %vm215_vm0, %v1540_v26  ;;  %5787 = vmatpush.msk.msrb.mxu1 %vm215_vm0, %v1541_v3 }
 0x17a   :  { %5786 = vmatmul.msk.f32.vlgmr.msrb.gmra.mxu0 %vm353_vm4, %v5784_v1  ;;  %v1273_v14 = vsub.f32 1.0, %v1272_v10 }
 0x17c   :  { %v1274_v39 = vmul.f32 %v6033_v19, %v1273_v14 }
 0x17e   :  { %5788 = vmatmul.msk.f32.vlgmr.msrb.gmra.mxu1 %vm353_vm4, %v5784_v1  ;;  %v1275_v40 = vadd.f32 %v6033_v19, %v1274_v39 }
 0x17f   :  { %6013 = vset.pattern.permute.xlu1 %v8815_v30 }
 0x180   :  { %v7013_v38 = vsel %vm1276_vm10, %v6033_v19, %v1275_v40 }
 0x181   :  { %8887 = vst [vmem:[#allocation29_spill] sm:$0xff] %v7013_v38 }
 0x18b   :  { %v1579_v50 = vpop.f32.mrf.mxu0  ;;  %v1599_v55 = vpop.f32.mrf.mxu1 }
 0x192   :  { %v1619_v6 = vpop.f32.mrf.mxu2  ;;  %v1639_v59 = vpop.f32.mrf.mxu3 }
 0x193   :  { %v1674_v49 = vpop.f32.mrf.mxu0 }
 0x19a   :  { %v1714_v36 = vpop.f32.mrf.mxu2 }
 0x19b   :  { %v1715_v30 = vadd.f32 %v1714_v36, %v1619_v6 }
 0x1ab   :  { %v1811_v4 = vpop.f32.mrf.mxu2 }
 0x1ad   :  { %v1771_v51 = vpop.f32.mrf.mxu0 }
 0x1b4   :  { %v1912_v37 = vpop.f32.mrf.mxu2 }
 0x1b6   :  { %v1872_v13 = vpop.f32.mrf.mxu0 }
 0x1be   :  { %v1978_v27 = vpop.f32.mrf.mxu0 }
 0x1c2   :  { %v2018_v3 = vpop.f32.mrf.mxu2 }
 0x1c6   :  { %v2079_v39 = vpop.f32.mrf.mxu0 }
 0x1d7   :  { %v1310_v1 = vpop.permute.xlu1 %1309 }
 0x1e4   :  { %v1270_v43 = vpop.xlane.xlu2 %1269 }
 0x1e5   :  { %v1278_v32 = vmul.f32 %v7013_v38, %v1270_v43 }
 0x1e7   :  { %v1279_v47 = vsub.f32 %v6925_v44, %v1278_v32  ;;  %v1280_v0 = vsub.f32 %v6927_v15, %v1278_v32  ;;  %v1281_v53 = vsub.f32 %v6936_v35, %v1278_v32  ;;  %v1282_v31 = vsub.f32 %v6938_v46, %v1278_v32  ;;  %v1694_v44 = vpop.f32.mrf.mxu1  ;;  %v1734_v15 = vpop.f32.mrf.mxu3 }
 0x1e9   :  { %v1283_v25 = vmul.f32 %v1279_v47, %v1279_v47  ;;  %v1284_v41 = vmul.f32 %v1280_v0, %v1280_v0  ;;  %v1285_v42 = vmul.f32 %v1281_v53, %v1281_v53  ;;  %v1286_v48 = vmul.f32 %v1282_v31, %v1282_v31 }
 0x1eb   :  { %v1287_v56 = vadd.f32 %v1284_v41, %v1283_v25 }
 0x1ed   :  { %v1288_v34 = vadd.f32 %v1287_v56, %v1285_v42  ;;  %v2119_v42 = vpop.f32.mrf.mxu2  ;;  %v1675_v56 = vadd.f32 %v1674_v49, %v1579_v50  ;;  %v1836_v49 = vadd.f32 %v1811_v4, %v1715_v30 }
 0x1ef   :  { %v1289_v45 = vadd.f32 %v1288_v34, %v1286_v48  ;;  %v1791_v35 = vpop.f32.mrf.mxu1  ;;  %v1831_v46 = vpop.f32.mrf.mxu3  ;;  %v1695_v48 = vadd.f32 %v1694_v44, %v1599_v55  ;;  %v1735_v55 = vadd.f32 %v1734_v15, %v1639_v59 }
 0x1f1   :  { %1290 = vadd.xlane.f32.xlu0 %v1289_v45 }
 0x1f5   :  { %v2220_v6 = vpop.f32.mrf.mxu2 }
 0x1f7   :  { %v1892_v57 = vpop.f32.mrf.mxu1  ;;  %v1932_v23 = vpop.f32.mrf.mxu3 }
 0x1ff   :  { %v1998_v24 = vpop.f32.mrf.mxu1  ;;  %v2038_v10 = vpop.f32.mrf.mxu3 }
 0x207   :  { %v2099_v40 = vpop.f32.mrf.mxu1 }
 0x264   :  { %v1291_v54 = vpop.xlane.xlu0 %1290 }
 0x265   :  { %v1292_v18 = vmul.f32 %v1291_v54, %v7013_v38  ;;  %v1318_v54 = vpop.permute.xlu1 %1317 }
 0x267   :  { %v1293_v28 = vadd.f32 1e-05, %v1292_v18 }
 0x269   :  { %6034 = vrsqrt.f32 %v1293_v28  ;;  %vm1300_vm12 = vweird.f32 %v1293_v28 }
 0x26f   :  { %v6035_v52 = vpop.eup %6034 }
 0x270   :  { %v1295_v26 = vmul.f32 %v6035_v52, %v1293_v28  ;;  %vm1301_vm11 = vweird.f32 %v6035_v52  ;;  %v1835_v28 = vadd.f32 %v1791_v35, %v1695_v48  ;;  %v1837_v35 = vadd.f32 %v1831_v46, %v1735_v55 }
 0x271   :  { %vm1302_vm13 = vmor %vm1300_vm12, %vm1301_vm11 }
 0x272   :  { %v1296_v21 = vmul.f32 %v6035_v52, %v1295_v26  ;;  %v1938_v59 = vadd.f32 %v1932_v23, %v1837_v35 }
 0x274   :  { %v1297_v19 = vmul.f32 0.5, %v1296_v21 }
 0x276   :  { %v1298_v14 = vsub.f32 1.5, %v1297_v19  ;;  %v2139_v19 = vpop.f32.mrf.mxu3 }
 0x278   :  { %v1299_v43 = vmul.f32 %v6035_v52, %v1298_v14  ;;  %v1834_v14 = vadd.f32 %v1771_v51, %v1675_v56 }
 0x27a   :  { %v1303_v32 = vsel %vm1302_vm13, %v6035_v52, %v1299_v43  ;;  %v1935_v44 = vadd.f32 %v1872_v13, %v1834_v14  ;;  %v1937_v52 = vadd.f32 %v1912_v37, %v1836_v49 }
 0x27b   :  { %v1305_v25 = vmul.f32 %v1303_v32, %v1280_v0  ;;  %v1307_v41 = vmul.f32 %v1303_v32, %v1282_v31  ;;  %v1304_v18 = vmul.f32 %v1303_v32, %v1279_v47  ;;  %v1306_v61 = vmul.f32 %v1303_v32, %v1281_v53  ;;  %v2180_v0 = vpop.f32.mrf.mxu0  ;;  %v2200_v31 = vpop.f32.mrf.mxu1 }
 0x27c   :  { %v1936_v53 = vadd.f32 %v1892_v57, %v1835_v28  ;;  %v2041_v43 = vadd.f32 %v1978_v27, %v1935_v44  ;;  %v2043_v15 = vadd.f32 %v2018_v3, %v1937_v52  ;;  %v2321_v57 = vpop.f32.mrf.mxu2 }
 0x27d   :  { %v1313_v34 = vmul.f32 %v1310_v1, %v1305_v25  ;;  %v1315_v45 = vmul.f32 %v1310_v1, %v1307_v41  ;;  %v1312_v47 = vmul.f32 %v1310_v1, %v1304_v18  ;;  %v1314_v50 = vmul.f32 %v1310_v1, %v1306_v61 }
 0x27e   :  { %v2042_v32 = vadd.f32 %v1998_v24, %v1936_v53  ;;  %v2240_v25 = vpop.f32.mrf.mxu3  ;;  %v2142_v4 = vadd.f32 %v2079_v39, %v2041_v43  ;;  %v2044_v1 = vadd.f32 %v2038_v10, %v1938_v59  ;;  %v2144_v41 = vadd.f32 %v2119_v42, %v2043_v15 }
 0x27f   :  { %v7022_v26 = vadd.f32 %v1318_v54, %v1313_v34  ;;  %v7024_v21 = vadd.f32 %v1318_v54, %v1315_v45  ;;  %v7032_v36 = vadd.f32 %v1318_v54, %v1312_v47  ;;  %v7034_v51 = vadd.f32 %v1318_v54, %v1314_v50  ;;  %v2453_v54 = vpop.permute.xlu1 %2452 }
 0x280   :  { %v2143_v13 = vadd.f32 %v2099_v40, %v2042_v32  ;;  %v2243_v46 = vadd.f32 %v2180_v0, %v2142_v4  ;;  %v2145_v24 = vadd.f32 %v2139_v19, %v2044_v1  ;;  %v2245_v56 = vadd.f32 %v2220_v6, %v2144_v41  ;;  %v5793_v4 = vld [vmem:[%s8752_s8 + $0x10] sm:$0xff] }
 0x281   :  { %2532 = vrot.lane.b32.xlu2 %v7024_v21, %s6064_s23  ;;  %2512 = vrot.lane.b32.xlu0 %v7022_v26, %s6063_s2 }
 0x282   :  { %2528 = vrot.lane.b32.xlu1 %v7022_v26, %s6064_s23  ;;  %v2244_v37 = vadd.f32 %v2200_v31, %v2143_v13  ;;  %v2246_v39 = vadd.f32 %v2240_v25, %v2145_v24  ;;  %v2346_v40 = vadd.f32 %v2321_v57, %v2245_v56  ;;  %v5794_v56 = vld [vmem:[%s8752_s8 + $0x18] sm:$0xff] }
 0x283   :  { %v2281_v61 = vpop.f32.mrf.mxu0  ;;  %v2301_v30 = vpop.f32.mrf.mxu1 }
 0x284   :  { %v2344_v48 = vadd.f32 %v2281_v61, %v2243_v46  ;;  %v2345_v34 = vadd.f32 %v2301_v30, %v2244_v37  ;;  %v2422_v42 = vpop.f32.mrf.mxu2 }
 0x285   :  { %v2447_v14 = vadd.f32 %v2422_v42, %v2346_v40  ;;  %v2642_v40 = vld [vmem:[%s8752_s8] sm:$0xff] }
 0x286   :  { %v2341_v27 = vpop.f32.mrf.mxu3 }
 0x287   :  { %v2347_v18 = vadd.f32 %v2341_v27, %v2246_v39  ;;  %v7054_v47 = vadd.f32 %v2453_v54, %v2447_v14 }
 0x289   :  { %2510 = vrot.lane.b32.xlu2 %v7032_v36, %s6063_s2 }
 0x28a   :  { %2530 = vrot.lane.b32.xlu1 %v7034_v51, %s6064_s23 }
 0x28b   :  { %v2382_v23 = vpop.f32.mrf.mxu0  ;;  %v2402_v3 = vpop.f32.mrf.mxu1 }
 0x28c   :  { %v2445_v45 = vadd.f32 %v2382_v23, %v2344_v48  ;;  %v2446_v10 = vadd.f32 %v2402_v3, %v2345_v34 }
 0x28e   :  { %v7048_v19 = vadd.f32 %v2453_v54, %v2445_v45  ;;  %v7050_v28 = vadd.f32 %v2453_v54, %v2446_v10  ;;  %v2442_v0 = vpop.f32.mrf.mxu3 }
 0x28f   :  { %v2448_v31 = vadd.f32 %v2442_v0, %v2347_v18  ;;  %v8888_v18 = vld [vmem:[#allocation9_spill] sm:$0xff] }
 0x290   :  { %v2459_v50 = vadd.f32 %v7050_v28, %v7048_v19 }
 0x291   :  { %2546 = vrot.lane.b32.xlu2 %v7034_v51, %s6065_s0  ;;  %v7060_v55 = vadd.f32 %v2453_v54, %v2448_v31  ;;  %v2643_v31 = vld [vmem:[%s8752_s8 + $0x8] sm:$0xff] }
 0x292   :  { %2526 = vrot.lane.b32.xlu1 %v7032_v36, %s6064_s23  ;;  %v2460_v49 = vadd.f32 %v2459_v50, %v7054_v47 }
 0x294   :  { %v2461_v44 = vadd.f32 %v2460_v49, %v7060_v55 }
 0x299   :  { %2542 = vrot.lane.b32.xlu2 %v7032_v36, %s6065_s0 }
 0x29a   :  { %2514 = vrot.lane.b32.xlu1 %v7034_v51, %s6063_s2 }
 0x2a1   :  { %2562 = vrot.lane.b32.xlu2 %v7034_v51, %s6066_s6 }
 0x2a2   :  { %2516 = vrot.lane.b32.xlu1 %v7024_v21, %s6063_s2 }
 0x2a9   :  { %2558 = vrot.lane.b32.xlu2 %v7032_v36, %s6066_s6 }
 0x2aa   :  { %2544 = vrot.lane.b32.xlu1 %v7022_v26, %s6065_s0 }
 0x2ab   :  { %2462 = vadd.xlane.f32.xlu0 %v2461_v44 }
 0x2b1   :  { %2582 = vrot.lane.b32.xlu2 %v7034_v51, %s6067_s24 }
 0x2b2   :  { %2548 = vrot.lane.b32.xlu1 %v7024_v21, %s6065_s0 }
 0x2b9   :  { %2578 = vrot.lane.b32.xlu2 %v7032_v36, %s6067_s24 }
 0x2ba   :  { %2560 = vrot.lane.b32.xlu1 %v7022_v26, %s6066_s6 }
 0x2bf   :  { %2584 = vrot.lane.b32.xlu0 %v7024_v21, %s6067_s24 }
 0x2c1   :  { %2580 = vrot.lane.b32.xlu2 %v7022_v26, %s6067_s24 }
 0x2c2   :  { %2564 = vrot.lane.b32.xlu1 %v7024_v21, %s6066_s6 }
 0x2c7   :  { %2600 = vrot.lane.b32.xlu0 %v7024_v21, %s6068_s7 }
 0x2c9   :  { %2598 = vrot.lane.b32.xlu2 %v7034_v51, %s6068_s7 }
 0x2cf   :  { %2596 = vrot.lane.b32.xlu0 %v7022_v26, %s6068_s7 }
 0x2d1   :  { %2594 = vrot.lane.b32.xlu2 %v7032_v36, %s6068_s7 }
 0x2d7   :  { %2614 = vrot.lane.b32.xlu0 %v7034_v51, %s6069_s25 }
 0x2d9   :  { %2495 = vperm.xlu2 %6012, %v7009_v20  }
 0x2db   :  { %v2533_v53 = vpop.permute.xlu2 %2532 }
 0x2df   :  { %2610 = vrot.lane.b32.xlu0 %v7032_v36, %s6069_s25 }
 0x2e1   :  { %2616 = vrot.lane.b32.xlu2 %v7024_v21, %s6069_s25 }
 0x2e2   :  { %6015 = vset.pattern.permute.xlu2 %v8886_v58 }
 0x2e3   :  { %v2511_v6 = vpop.permute.xlu2 %2510 }
 0x2e7   :  { %2630 = vrot.lane.b32.xlu0 %v7034_v51, %s6070_s26 }
 0x2e9   :  { %2612 = vrot.lane.b32.xlu2 %v7022_v26, %s6069_s25 }
 0x2eb   :  { %v7102_v35 = vpop.permute.xlu2 %2546 }
 0x2ef   :  { %2628 = vrot.lane.b32.xlu0 %v7022_v26, %s6070_s26 }
 0x2f1   :  { %2632 = vrot.lane.b32.xlu2 %v7024_v21, %s6070_s26 }
 0x2f3   :  { %v7108_v52 = vpop.permute.xlu2 %2542  ;;  %v2513_v13 = vpop.permute.xlu0 %2512 }
 0x2f4   :  { %v2529_v43 = vpop.permute.xlu1 %2528  ;;  %v2520_v41 = vsel %vm96_vm3, %v2511_v6, %v2513_v13 }
 0x2f5   :  { %v2523_v48 = vmul.f32 %v2520_v41, %v6349_v9 }
 0x2fb   :  { %v7110_v32 = vpop.permute.xlu2 %2562 }
 0x2fc   :  { %v2531_v25 = vpop.permute.xlu1 %2530 }
 0x2fd   :  { %v2534_v61 = vsel %vm128_vm1, %v2531_v25, %v2533_v53  ;;  %v2535_v30 = vsel %vm128_vm1, %v2529_v43, %v2531_v25 }
 0x2fe   :  { %v2540_v59 = vmul.f32 %v2535_v30, %v6329_v63  ;;  %v2541_v15 = vmul.f32 %v2534_v61, %v6332_v2 }
 0x300   :  { %2715 = vmatpush.msra.mxu2 %v2540_v59  ;;  %2738 = vmatpush.msra.mxu3 %v2541_v15  ;;  %v5811_v59 = vld [vmem:[%s8752_s8 + $0x20] sm:$0xff] }
 0x301   :  { %5799 = vmatmul.msk.f32.vlgmr.msra.gmra.mxu2 %vm2647_vm14, %v5793_v4  ;;  %5801 = vmatmul.msk.f32.vlgmr.msra.gmra.mxu3 %vm2647_vm14, %v5793_v4 }
 0x303   :  { %v7123_v57 = vpop.permute.xlu2 %2558 }
 0x304   :  { %v2527_v1 = vpop.permute.xlu1 %2526 }
 0x305   :  { %v2536_v46 = vsel %vm128_vm1, %v2527_v1, %v2529_v43  ;;  %v2537_v37 = vsel %vm128_vm1, %v2533_v53, %v2527_v1  ;;  %v8889_v53 = vld [vmem:[#allocation8_spill] sm:$0xff]  ;;  %v8890_v43 = vld [vmem:[#allocation11_spill] sm:$0xff] }
 0x306   :  { %v2538_v27 = vmul.f32 %v2537_v37, %v6343_v7  ;;  %v2539_v24 = vmul.f32 %v2536_v46, %v6346_v8 }
 0x308   :  { %2669 = vmatpush.msra.mxu0 %v2538_v27  ;;  %2692 = vmatpush.msra.mxu1 %v2539_v24  ;;  %v8891_v24 = vld [vmem:[#allocation10_spill] sm:$0xff] }
 0x309   :  { %5795 = vmatmul.msk.f32.vlgmr.msra.gmra.mxu0 %vm2647_vm14, %v5793_v4  ;;  %5797 = vmatmul.msk.f32.vlgmr.msra.gmra.mxu1 %vm2647_vm14, %v5793_v4 }
 0x30a   :  { %5800 = vmatmul.msk.f32.gmra.mxu2 %vm2647_vm14, %v5794_v56  ;;  %2790 = vmatpush.msrb.mxu1 %v2523_v48  ;;  %v8892_v48 = vld [vmem:[#allocation12_spill] sm:$0xff] }
 0x30b   :  { %5802 = vmatmul.msk.f32.gmra.mxu3 %vm2647_vm14, %v5794_v56  ;;  %v7141_v23 = vpop.permute.xlu2 %2582 }
 0x30c   :  { %v2515_v34 = vpop.permute.xlu1 %2514 }
 0x30d   :  { %v2519_v3 = vsel %vm96_vm3, %v2513_v13, %v2515_v34 }
 0x30e   :  { %v2524_v39 = vmul.f32 %v2519_v3, %v6356_v12  ;;  %v5812_v3 = vld [vmem:[%s8752_s8 + $0x28] sm:$0xff] }
 0x310   :  { %2813 = vmatpush.msrb.mxu2 %v2524_v39 }
 0x311   :  { %5796 = vmatmul.msk.f32.gmra.mxu0 %vm2647_vm14, %v5794_v56  ;;  %5798 = vmatmul.msk.f32.gmra.mxu1 %vm2647_vm14, %v5794_v56 }
 0x312   :  { %5807 = vmatmul.msk.f32.vlgmr.msrb.gmra.mxu2 %vm2647_vm14, %v2642_v40 }
 0x313   :  { %v7158_v0 = vpop.permute.xlu2 %2578 }
 0x314   :  { %v2517_v45 = vpop.permute.xlu1 %2516 }
 0x315   :  { %v2518_v10 = vsel %vm96_vm3, %v2515_v34, %v2517_v45  ;;  %v2521_v42 = vsel %vm96_vm3, %v2517_v45, %v2511_v6 }
 0x316   :  { %v2522_v54 = vmul.f32 %v2521_v42, %v6393_v29  ;;  %v2525_v14 = vmul.f32 %v2518_v10, %v8888_v18 }
 0x318   :  { %2767 = vmatpush.msrb.mxu0 %v2522_v54  ;;  %2836 = vmatpush.msrb.mxu3 %v2525_v14  ;;  %v8893_v54 = vld [vmem:[#allocation17_spill] sm:$0xff] }
 0x319   :  { %5803 = vmatmul.msk.f32.vlgmr.msrb.gmra.mxu0 %vm2647_vm14, %v2642_v40  ;;  %5805 = vmatmul.msk.f32.vlgmr.msrb.gmra.mxu1 %vm2647_vm14, %v2642_v40 }
 0x31a   :  { %5808 = vmatmul.msk.f32.gmra.mxu2 %vm2647_vm14, %v2643_v31  ;;  %5809 = vmatmul.msk.f32.vlgmr.msrb.gmra.mxu3 %vm2647_vm14, %v2642_v40 }
 0x31b   :  { %v2581_v15 = vpop.permute.xlu2 %2580 }
 0x31c   :  { %v2545_v50 = vpop.permute.xlu1 %2544 }
 0x31d   :  { %v2551_v49 = vsel %vm160_vm2, %v2545_v50, %v7102_v35  ;;  %v2552_v44 = vsel %vm160_vm2, %v7108_v52, %v2545_v50 }
 0x31e   :  { %v2555_v6 = vmul.f32 %v2552_v44, %v8889_v53  ;;  %v2556_v25 = vmul.f32 %v2551_v49, %v8890_v43  ;;  %v2463_v61 = vpop.xlane.xlu0 %2462  ;;  %v5821_v49 = vld [vmem:[%s8752_s8 + $0x30] sm:$0xff]  ;;  %v8895_v44 = vld [vmem:[#allocation5_spill] sm:$0xff] }
 0x31f   :  { %v2464_v30 = vmul.f32 %v2463_v61, %v7013_v38 }
 0x320   :  { %2891 = vmatpush.msra.mxu1 %v2555_v6  ;;  %2914 = vmatpush.msra.mxu2 %v2556_v25  ;;  %v2575_v6 = vmul.f32 %v7022_v26, %v8895_v44  ;;  %v8896_v25 = vld [vmem:[#allocation3_spill] sm:$0xff] }
 0x321   :  { %v7180_v4 = vsub.f32 %v7048_v19, %v2464_v30  ;;  %v7183_v13 = vsub.f32 %v7050_v28, %v2464_v30  ;;  %5804 = vmatmul.msk.f32.gmra.mxu0 %vm2647_vm14, %v2643_v31  ;;  %5806 = vmatmul.msk.f32.gmra.mxu1 %vm2647_vm14, %v2643_v31  ;;  %v7188_v1 = vsub.f32 %v7054_v47, %v2464_v30 }
 0x322   :  { %5810 = vmatmul.msk.f32.gmra.mxu3 %vm2647_vm14, %v2643_v31  ;;  %5817 = vmatmul.msk.f32.vlgmr.msra.gmra.mxu2 %vm2647_vm14, %v5811_v59  ;;  %v7193_v41 = vsub.f32 %v7060_v55, %v2464_v30  ;;  %v8894_v31 = vld [vmem:[#allocation14_spill] sm:$0xff]  ;;  %v2576_v61 = vmul.f32 %v7034_v51, %v8896_v25 }
 0x323   :  { %v2469_v19 = vmul.f32 %v7180_v4, %v7180_v4  ;;  %v2470_v28 = vmul.f32 %v7183_v13, %v7183_v13  ;;  %v2471_v27 = vmul.f32 %v7188_v1, %v7188_v1  ;;  %v2599_v40 = vpop.permute.xlu2 %2598 }
 0x324   :  { %v2549_v46 = vpop.permute.xlu1 %2548  ;;  %v2472_v39 = vmul.f32 %v7193_v41, %v7193_v41 }
 0x325   :  { %v2550_v37 = vsel %vm160_vm2, %v7102_v35, %v2549_v46  ;;  %v2553_v47 = vsel %vm160_vm2, %v2549_v46, %v7108_v52  ;;  %v2473_v55 = vadd.f32 %v2470_v28, %v2469_v19  ;;  %v8897_v19 = vld [vmem:[#allocation15_spill] sm:$0xff] }
 0x326   :  { %v2554_v56 = vmul.f32 %v2553_v47, %v8891_v24  ;;  %v2557_v34 = vmul.f32 %v2550_v37, %v8892_v48  ;;  %v8898_v47 = vld [vmem:[#allocation16_spill] sm:$0xff] }
 0x327   :  { %v2474_v35 = vadd.f32 %v2473_v55, %v2471_v27  ;;  %v8899_v55 = vld [vmem:[#allocation13_spill] sm:$0xff] }
 0x328   :  { %2868 = vmatpush.msra.mxu0 %v2554_v56  ;;  %2937 = vmatpush.msra.mxu3 %v2557_v34  ;;  %v2587_v34 = vsel %vm241_vm6, %v2581_v15, %v7141_v23 }
 0x329   :  { %5813 = vmatmul.msk.f32.vlgmr.msra.gmra.mxu0 %vm2647_vm14, %v5811_v59  ;;  %5815 = vmatmul.msk.f32.vlgmr.msra.gmra.mxu1 %vm2647_vm14, %v5811_v59  ;;  %v2475_v52 = vadd.f32 %v2474_v35, %v2472_v39  ;;  %v8900_v39 = vld [vmem:[#allocation4_spill] sm:$0xff]  ;;  %v8901_v35 = vld [vmem:[#allocation2_spill] sm:$0xff] }
 0x32a   :  { %5818 = vmatmul.msk.f32.gmra.mxu2 %vm2647_vm14, %v5812_v3  ;;  %5819 = vmatmul.msk.f32.vlgmr.msra.gmra.mxu3 %vm2647_vm14, %v5811_v59 }
 0x32b   :  { %2476 = vadd.xlane.f32.xlu1 %v2475_v52  ;;  %v2595_v37 = vpop.permute.xlu2 %2594 }
 0x32c   :  { %v2561_v45 = vpop.permute.xlu1 %2560 }
 0x32d   :  { %v2567_v10 = vsel %vm192_vm5, %v2561_v45, %v7110_v32  ;;  %v2568_v42 = vsel %vm192_vm5, %v7123_v57, %v2561_v45  ;;  %v8902_v45 = vld [vmem:[#allocation19_spill] sm:$0xff] }
 0x32e   :  { %v2571_v14 = vmul.f32 %v2568_v42, %v8893_v54  ;;  %v2572_v50 = vmul.f32 %v2567_v10, %v8894_v31  ;;  %v2591_v42 = vmul.f32 %v2587_v34, %v6513_v62 }
 0x330   :  { %3000 = vmatpush.msrb.mxu1 %v2571_v14  ;;  %3023 = vmatpush.msrb.mxu2 %v2572_v50 }
 0x331   :  { %5814 = vmatmul.msk.f32.gmra.mxu0 %vm2647_vm14, %v5812_v3  ;;  %5816 = vmatmul.msk.f32.gmra.mxu1 %vm2647_vm14, %v5812_v3  ;;  %v2585_v30 = vpop.permute.xlu0 %2584 }
 0x332   :  { %5820 = vmatmul.msk.f32.gmra.mxu3 %vm2647_vm14, %v5812_v3  ;;  %5827 = vmatmul.msk.f32.vlgmr.msrb.gmra.mxu2 %vm2647_vm14, %v5821_v49  ;;  %v2586_v59 = vsel %vm241_vm6, %v7141_v23, %v2585_v30  ;;  %v2588_v3 = vsel %vm241_vm6, %v7158_v0, %v2581_v15  ;;  %v2574_v23 = vmul.f32 %v7032_v36, %v8900_v39 }
 0x333   :  { %3109 = vmatpush.msra.mxu1 %v2575_v6  ;;  %3132 = vmatpush.msra.mxu2 %v2576_v61  ;;  %v2592_v28 = vmul.f32 %v2586_v59, %v8897_v19  ;;  %v2577_v15 = vmul.f32 %v7024_v21, %v8901_v35  ;;  %v2590_v10 = vmul.f32 %v2588_v3, %v8902_v45  ;;  %v7274_v21 = vpop.permute.xlu2 %2495  ;;  %v5831_v6 = vld [vmem:[%s8752_s8 + $0x40] sm:$0xff]  ;;  %v8904_v61 = vld [vmem:[#allocation23_spill] sm:$0xff] }
 0x334   :  { %v2565_v46 = vpop.permute.xlu1 %2564  ;;  %v5841_v3 = vld [vmem:[%s8752_s8 + $0x50] sm:$0xff] }
 0x335   :  { %v2566_v26 = vsel %vm192_vm5, %v7110_v32, %v2565_v46  ;;  %v2569_v51 = vsel %vm192_vm5, %v2565_v46, %v7123_v57  ;;  %3241 = vmatpush.msrb.mxu2 %v2592_v28  ;;  %v5822_v32 = vld [vmem:[%s8752_s8 + $0x38] sm:$0xff]  ;;  %v2589_v57 = vsel %vm241_vm6, %v2585_v30, %v7158_v0 }
 0x336   :  { %v2570_v27 = vmul.f32 %v2569_v51, %v8898_v47  ;;  %v2573_v56 = vmul.f32 %v2566_v26, %v8899_v55  ;;  %v8903_v0 = vld [vmem:[#allocation20_spill] sm:$0xff]  ;;  %v5832_v26 = vld [vmem:[%s8752_s8 + $0x48] sm:$0xff] }
 0x337   :  { %v2593_v14 = vmul.f32 %v2589_v57, %v8903_v0 }
 0x338   :  { %2977 = vmatpush.msrb.mxu0 %v2570_v27  ;;  %3046 = vmatpush.msrb.mxu3 %v2573_v56 }
 0x339   :  { %5823 = vmatmul.msk.f32.vlgmr.msrb.gmra.mxu0 %vm2647_vm14, %v5821_v49  ;;  %5825 = vmatmul.msk.f32.vlgmr.msrb.gmra.mxu1 %vm2647_vm14, %v5821_v49  ;;  %v2601_v52 = vpop.permute.xlu0 %2600 }
 0x33a   :  { %5828 = vmatmul.msk.f32.gmra.mxu2 %vm2647_vm14, %v5822_v32  ;;  %5829 = vmatmul.msk.f32.vlgmr.msrb.gmra.mxu3 %vm2647_vm14, %v5821_v49  ;;  %v2602_v50 = vsel %vm273_vm7, %v2599_v40, %v2601_v52  ;;  %v2605_v46 = vsel %vm273_vm7, %v2601_v52, %v2595_v37 }
 0x33b   :  { %3086 = vmatpush.msra.mxu0 %v2574_v23  ;;  %3155 = vmatpush.msra.mxu3 %v2577_v15  ;;  %v2608_v30 = vmul.f32 %v2602_v50, %v8904_v61  ;;  %v2617_v51 = vpop.permute.xlu2 %2616 }
 0x33c   :  { %3218 = vmatpush.msrb.mxu1 %v2591_v42 }
 0x33d   :  { %3195 = vmatpush.msrb.mxu0 %v2590_v10  ;;  %3264 = vmatpush.msrb.mxu3 %v2593_v14  ;;  %v5842_v10 = vld [vmem:[%s8752_s8 + $0x58] sm:$0xff] }
 0x341   :  { %5824 = vmatmul.msk.f32.gmra.mxu0 %vm2647_vm14, %v5822_v32  ;;  %5826 = vmatmul.msk.f32.gmra.mxu1 %vm2647_vm14, %v5822_v32  ;;  %v2597_v49 = vpop.permute.xlu0 %2596 }
 0x342   :  { %5830 = vmatmul.msk.f32.gmra.mxu3 %vm2647_vm14, %v5822_v32  ;;  %5837 = vmatmul.msk.f32.vlgmr.msra.gmra.mxu2 %vm2647_vm14, %v5831_v6  ;;  %v2603_v59 = vsel %vm273_vm7, %v2597_v49, %v2599_v40  ;;  %v2604_v28 = vsel %vm273_vm7, %v2595_v37, %v2597_v49  ;;  %v8905_v40 = vld [vmem:[#allocation24_spill] sm:$0xff] }
 0x343   :  { %3350 = vmatpush.msra.mxu2 %v2608_v30  ;;  %v2606_v27 = vmul.f32 %v2604_v28, %v6560_v5  ;;  %v2607_v56 = vmul.f32 %v2603_v59, %v6544_v22  ;;  %v2609_v34 = vmul.f32 %v2605_v46, %v8905_v40  ;;  %v5851_v59 = vld [vmem:[%s8752_s8 + $0x60] sm:$0xff]  ;;  %v7341_v28 = vld [vmem:[%s8853_s4 + $0x30] ss:$0 sm:$0xff] }
 0x344   :  { %2503 = vperm.xlu1 %6013, %v7009_v20   ;;  %8906 = vst [vmem:[#allocation9_spill] sm:$0xff] %v7341_v28  ;;  %v3607_v22 = vld [vmem:[%s8753_s9] sm:$0xff] }
 0x349   :  { %5833 = vmatmul.msk.f32.vlgmr.msra.gmra.mxu0 %vm2647_vm14, %v5831_v6  ;;  %5835 = vmatmul.msk.f32.vlgmr.msra.gmra.mxu1 %vm2647_vm14, %v5831_v6  ;;  %v2615_v20 = vpop.permute.xlu0 %2614 }
 0x34a   :  { %5838 = vmatmul.msk.f32.gmra.mxu2 %vm2647_vm14, %v5832_v26  ;;  %5839 = vmatmul.msk.f32.vlgmr.msra.gmra.mxu3 %vm2647_vm14, %v5831_v6  ;;  %v2618_v37 = vsel %vm305_vm8, %v2615_v20, %v2617_v51 }
 0x34b   :  { %3304 = vmatpush.msra.mxu0 %v2606_v27  ;;  %3327 = vmatpush.msra.mxu1 %v2607_v56  ;;  %v2624_v32 = vmul.f32 %v2618_v37, %v6625_v33  ;;  %v7356_v27 = vld [vmem:[%s8853_s4 + $0x28] ss:$0 sm:$0xff]  ;;  %v5862_v37 = vld [vmem:[%s8752_s8 + $0x78] sm:$0xff] }
 0x34c   :  { %3373 = vmatpush.msra.mxu3 %v2609_v34  ;;  %2626 = vrot.lane.b32.xlu1 %v7032_v36, %s6070_s26  ;;  %v2613_v36 = vpop.permute.xlu2 %2612  ;;  %8907 = vst [vmem:[#allocation8_spill] sm:$0xff] %v7356_v27  ;;  %v5861_v34 = vld [vmem:[%s8752_s8 + $0x70] sm:$0xff] }
 0x34d   :  { %6016 = vset.pattern.permute.xlu1 %v8886_v58  ;;  %v2619_v23 = vsel %vm305_vm8, %v2613_v36, %v2615_v20  ;;  %v5852_v20 = vld [vmem:[%s8752_s8 + $0x68] sm:$0xff] }
 0x34e   :  { %v2623_v42 = vmul.f32 %v2619_v23, %v6656_v16 }
 0x351   :  { %5834 = vmatmul.msk.f32.gmra.mxu0 %vm2647_vm14, %v5832_v26  ;;  %5836 = vmatmul.msk.f32.gmra.mxu1 %vm2647_vm14, %v5832_v26  ;;  %v2611_v57 = vpop.permute.xlu0 %2610 }
 0x352   :  { %5840 = vmatmul.msk.f32.gmra.mxu3 %vm2647_vm14, %v5832_v26  ;;  %5847 = vmatmul.msk.f32.vlgmr.msrb.gmra.mxu2 %vm2647_vm14, %v5841_v3  ;;  %v2620_v15 = vsel %vm305_vm8, %v2611_v57, %v2613_v36  ;;  %v2621_v52 = vsel %vm305_vm8, %v2617_v51, %v2611_v57 }
 0x353   :  { %3459 = vmatpush.msrb.mxu2 %v2624_v32  ;;  %v2622_v14 = vmul.f32 %v2620_v15, %v6653_v11  ;;  %v2625_v6 = vmul.f32 %v2621_v52, %v6598_v17  ;;  %v5872_v32 = vld [vmem:[%s8752_s8 + $0x88] sm:$0xff] }
 0x354   :  { %v7330_v30 = vpop.permute.xlu2 %2632 }
 0x359   :  { %5843 = vmatmul.msk.f32.vlgmr.msrb.gmra.mxu0 %vm2647_vm14, %v5841_v3  ;;  %5845 = vmatmul.msk.f32.vlgmr.msrb.gmra.mxu1 %vm2647_vm14, %v5841_v3  ;;  %v2631_v50 = vpop.permute.xlu0 %2630 }
 0x35a   :  { %5848 = vmatmul.msk.f32.gmra.mxu2 %vm2647_vm14, %v5842_v10  ;;  %5849 = vmatmul.msk.f32.vlgmr.msrb.gmra.mxu3 %vm2647_vm14, %v5841_v3  ;;  %v2634_v49 = vsel %vm337_vm9, %v2631_v50, %v7330_v30  ;;  %v5871_v3 = vld [vmem:[%s8752_s8 + $0x80] sm:$0xff] }
 0x35b   :  { %3413 = vmatpush.msrb.mxu0 %v2622_v14  ;;  %3436 = vmatpush.msrb.mxu1 %v2623_v42  ;;  %v2640_v46 = vmul.f32 %v7341_v28, %v2634_v49 }
 0x35c   :  { %3482 = vmatpush.msrb.mxu3 %v2625_v6 }
 0x361   :  { %5846 = vmatmul.msk.f32.gmra.mxu1 %vm2647_vm14, %v5842_v10  ;;  %5844 = vmatmul.msk.f32.gmra.mxu0 %vm2647_vm14, %v5842_v10  ;;  %v7347_v26 = vpop.permute.xlu0 %2628 }
 0x362   :  { %5857 = vmatmul.msk.f32.vlgmr.msra.gmra.mxu2 %vm2647_vm14, %v5851_v59  ;;  %5850 = vmatmul.msk.f32.gmra.mxu3 %vm2647_vm14, %v5842_v10  ;;  %v2635_v51 = vsel %vm337_vm9, %v7347_v26, %v2631_v50 }
 0x363   :  { %3568 = vmatpush.msra.mxu2 %v2640_v46  ;;  %v2639_v56 = vmul.f32 %v7356_v27, %v2635_v51 }
 0x369   :  { %5855 = vmatmul.msk.f32.vlgmr.msra.gmra.mxu1 %vm2647_vm14, %v5851_v59  ;;  %5853 = vmatmul.msk.f32.vlgmr.msra.gmra.mxu0 %vm2647_vm14, %v5851_v59 }
 0x36a   :  { %3545 = vmatpush.msra.mxu1 %v2639_v56  ;;  %5859 = vmatmul.msk.f32.vlgmr.msra.gmra.mxu3 %vm2647_vm14, %v5851_v59 }
 0x36b   :  { %5858 = vmatmul.msk.f32.gmra.mxu2 %vm2647_vm14, %v5852_v20 }
 0x371   :  { %5854 = vmatmul.msk.f32.gmra.mxu0 %vm2647_vm14, %v5852_v20  ;;  %5856 = vmatmul.msk.f32.gmra.mxu1 %vm2647_vm14, %v5852_v20 }
 0x372   :  { %5860 = vmatmul.msk.f32.gmra.mxu3 %vm2647_vm14, %v5852_v20 }
 0x373   :  { %5867 = vmatmul.msk.f32.vlgmr.msrb.gmra.mxu2 %vm2647_vm14, %v5861_v34 }
 0x379   :  { %5863 = vmatmul.msk.f32.vlgmr.msrb.gmra.mxu0 %vm2647_vm14, %v5861_v34  ;;  %5865 = vmatmul.msk.f32.vlgmr.msrb.gmra.mxu1 %vm2647_vm14, %v5861_v34 }
 0x37a   :  { %5869 = vmatmul.msk.f32.vlgmr.msrb.gmra.mxu3 %vm2647_vm14, %v5861_v34 }
 0x37b   :  { %5868 = vmatmul.msk.f32.gmra.mxu2 %vm2647_vm14, %v5862_v37 }
 0x381   :  { %5864 = vmatmul.msk.f32.gmra.mxu0 %vm2647_vm14, %v5862_v37  ;;  %5866 = vmatmul.msk.f32.gmra.mxu1 %vm2647_vm14, %v5862_v37 }
 0x382   :  { %5870 = vmatmul.msk.f32.gmra.mxu3 %vm2647_vm14, %v5862_v37 }
 0x383   :  { %5877 = vmatmul.msk.f32.vlgmr.msra.gmra.mxu2 %vm2647_vm14, %v5871_v3 }
 0x389   :  { %5875 = vmatmul.msk.f32.vlgmr.msra.gmra.mxu1 %vm2647_vm14, %v5871_v3 }
 0x38b   :  { %5878 = vmatmul.msk.f32.gmra.mxu2 %vm2647_vm14, %v5872_v32 }
 0x391   :  { %5876 = vmatmul.msk.f32.gmra.mxu1 %vm2647_vm14, %v5872_v32 }
 0x39e   :  { %v2477_v57 = vpop.xlane.xlu1 %2476 }
 0x39f   :  { %v2478_v36 = vmul.f32 %v2477_v57, %v7013_v38 }
 0x3a1   :  { %v2479_v23 = vadd.f32 1e-05, %v2478_v36 }
 0x3a3   :  { %6036 = vrsqrt.f32 %v2479_v23  ;;  %vm2486_vm10 = vweird.f32 %v2479_v23 }
 0x3a9   :  { %v6037_v15 = vpop.eup %6036 }
 0x3aa   :  { %v2481_v52 = vmul.f32 %v6037_v15, %v2479_v23  ;;  %vm2487_vm15 = vweird.f32 %v6037_v15 }
 0x3ab   :  { %vm2488_vm11 = vmor %vm2486_vm10, %vm2487_vm15 }
 0x3ac   :  { %v2482_v10 = vmul.f32 %v6037_v15, %v2481_v52 }
 0x3ae   :  { %v2483_v42 = vmul.f32 0.5, %v2482_v10  ;;  %v7427_v10 = vld [vmem:[%s8853_s4 + $0x20] ss:$0 sm:$0xff] }
 0x3af   :  { %8909 = vst [vmem:[#allocation10_spill] sm:$0xff] %v7427_v10 }
 0x3b0   :  { %v2484_v14 = vsub.f32 1.5, %v2483_v42 }
 0x3b2   :  { %v2485_v50 = vmul.f32 %v6037_v15, %v2484_v14 }
 0x3b4   :  { %v2489_v6 = vsel %vm2488_vm11, %v6037_v15, %v2485_v50  ;;  %v7416_v15 = vpop.f32.mrf.mxu2  ;;  %v7436_v50 = vpop.f32.mrf.mxu0 }
 0x3b5   :  { %v2491_v49 = vmul.f32 %v2489_v6, %v7183_v13  ;;  %v2492_v59 = vmul.f32 %v2489_v6, %v7188_v1  ;;  %v2493_v46 = vmul.f32 %v2489_v6, %v7193_v41  ;;  %v2490_v23 = vmul.f32 %v2489_v6, %v7180_v4  ;;  %v7413_v13 = vpop.f32.mrf.mxu1  ;;  %8908 = vst [vmem:[#allocation11_spill] sm:$0xff] %v7416_v15 }
 0x3b6   :  { %v2504_v51 = vpop.permute.xlu1 %2503  ;;  %8911 = vst [vmem:[#allocation17_spill] sm:$0xff] %v7436_v50 }
 0x3b7   :  { %v2499_v56 = vmul.f32 %v7274_v21, %v2491_v49  ;;  %v2500_v20 = vmul.f32 %v7274_v21, %v2492_v59  ;;  %v2501_v34 = vmul.f32 %v7274_v21, %v2493_v46  ;;  %v2498_v1 = vmul.f32 %v7274_v21, %v2490_v23  ;;  %v7433_v21 = vld [vmem:[%s8853_s4 + $0x38] ss:$0 sm:$0xff] }
 0x3b8   :  { %8910 = vst [vmem:[#allocation12_spill] sm:$0xff] %v7433_v21 }
 0x3b9   :  { %v7400_v37 = vadd.f32 %v2504_v51, %v2499_v56  ;;  %v7402_v57 = vadd.f32 %v2504_v51, %v2500_v20  ;;  %v7404_v36 = vadd.f32 %v2504_v51, %v2501_v34 }
 0x3bb   :  { %3751 = vrot.lane.b32.xlu0 %v7404_v36, %s6064_s23  ;;  %3749 = vrot.lane.b32.xlu1 %v7402_v57, %s6064_s23 }
 0x3bc   :  { %3747 = vrot.lane.b32.xlu2 %v7400_v37, %s6064_s23  ;;  %v7452_v49 = vpop.f32.mrf.mxu2  ;;  %v7454_v59 = vpop.f32.mrf.mxu0 }
 0x3bd   :  { %v7450_v6 = vpop.f32.mrf.mxu1 }
 0x3be   :  { %v2627_v41 = vpop.permute.xlu1 %2626 }
 0x3bf   :  { %v2636_v4 = vsel %vm337_vm9, %v2627_v41, %v7347_v26  ;;  %v2637_v52 = vsel %vm337_vm9, %v7330_v30, %v2627_v41  ;;  %v7438_v26 = vadd.f32 %v2504_v51, %v2498_v1  ;;  %v7448_v30 = vpop.f32.mrf.mxu3 }
 0x3c0   :  { %v2638_v42 = vmul.f32 %v7427_v10, %v2636_v4  ;;  %v2641_v14 = vmul.f32 %v7433_v21, %v2637_v52  ;;  %8912 = vst [vmem:[#allocation14_spill] sm:$0xff] %v7448_v30 }
 0x3c2   :  { %3522 = vmatpush.msra.mxu0 %v2638_v42  ;;  %3591 = vmatpush.msra.mxu3 %v2641_v14 }
 0x3c3   :  { %3733 = vrot.lane.b32.xlu0 %v7402_v57, %s6063_s2  ;;  %3731 = vrot.lane.b32.xlu1 %v7400_v37, %s6063_s2 }
 0x3c4   :  { %3745 = vrot.lane.b32.xlu2 %v7438_v26, %s6064_s23  ;;  %5873 = vmatmul.msk.f32.vlgmr.msra.gmra.mxu0 %vm2647_vm14, %v5871_v3  ;;  %v7468_v51 = vpop.f32.mrf.mxu2  ;;  %v7474_v56 = vpop.f32.mrf.mxu0 }
 0x3c5   :  { %5879 = vmatmul.msk.f32.vlgmr.msra.gmra.mxu3 %vm2647_vm14, %v5871_v3  ;;  %v7466_v46 = vpop.f32.mrf.mxu1  ;;  %8913 = vst [vmem:[#allocation5_spill] sm:$0xff] %v7468_v51 }
 0x3c6   :  { %8914 = vst [vmem:[#allocation3_spill] sm:$0xff] %v7474_v56 }
 0x3c7   :  { %v7464_v3 = vpop.f32.mrf.mxu3 }
 0x3cb   :  { %3763 = vrot.lane.b32.xlu0 %v7400_v37, %s6065_s0  ;;  %3729 = vrot.lane.b32.xlu1 %v7438_v26, %s6063_s2 }
 0x3cc   :  { %3735 = vrot.lane.b32.xlu2 %v7404_v36, %s6063_s2  ;;  %5874 = vmatmul.msk.f32.gmra.mxu0 %vm2647_vm14, %v5872_v32  ;;  %v7486_v34 = vpop.f32.mrf.mxu2  ;;  %v7490_v23 = vpop.f32.mrf.mxu0 }
 0x3cd   :  { %5880 = vmatmul.msk.f32.gmra.mxu3 %vm2647_vm14, %v5872_v32  ;;  %v7484_v32 = vpop.f32.mrf.mxu1 }
 0x3cf   :  { %v7478_v20 = vpop.f32.mrf.mxu3 }
 0x3d0   :  { %8915 = vst [vmem:[#allocation16_spill] sm:$0xff] %v7478_v20 }
 0x3d3   :  { %3761 = vrot.lane.b32.xlu0 %v7438_v26, %s6065_s0  ;;  %3767 = vrot.lane.b32.xlu1 %v7404_v36, %s6065_s0 }
 0x3d4   :  { %3765 = vrot.lane.b32.xlu2 %v7402_v57, %s6065_s0  ;;  %v7502_v4 = vpop.f32.mrf.mxu2  ;;  %v7504_v52 = vpop.f32.mrf.mxu0 }
 0x3d5   :  { %v7500_v41 = vpop.f32.mrf.mxu1  ;;  %8917 = vst [vmem:[#allocation4_spill] sm:$0xff] %v7502_v4 }
 0x3d6   :  { %8916 = vst [vmem:[#allocation13_spill] sm:$0xff] %v7500_v41 }
 0x3d7   :  { %v7496_v1 = vpop.f32.mrf.mxu3  ;;  %8918 = vst [vmem:[#allocation2_spill] sm:$0xff] %v7504_v52 }
 0x3db   :  { %3783 = vrot.lane.b32.xlu0 %v7404_v36, %s6066_s6  ;;  %3781 = vrot.lane.b32.xlu1 %v7402_v57, %s6066_s6 }
 0x3dc   :  { %3779 = vrot.lane.b32.xlu2 %v7400_v37, %s6066_s6  ;;  %v7516_v38 = vpop.f32.mrf.mxu2  ;;  %v7518_v21 = vpop.f32.mrf.mxu0 }
 0x3dd   :  { %v7514_v14 = vpop.f32.mrf.mxu1 }
 0x3df   :  { %v7512_v42 = vpop.f32.mrf.mxu3 }
 0x3e0   :  { %8919 = vst [vmem:[#allocation19_spill] sm:$0xff] %v7512_v42 }
 0x3e3   :  { %3803 = vrot.lane.b32.xlu0 %v7404_v36, %s6067_s24  ;;  %3801 = vrot.lane.b32.xlu1 %v7402_v57, %s6067_s24 }
 0x3e4   :  { %3777 = vrot.lane.b32.xlu2 %v7438_v26, %s6066_s6  ;;  %v7530_v10 = vpop.f32.mrf.mxu2  ;;  %v7536_v17 = vpop.f32.mrf.mxu0 }
 0x3e5   :  { %v7528_v28 = vpop.f32.mrf.mxu1  ;;  %8921 = vst [vmem:[#allocation31_spill] sm:$0xff] %v7530_v10 }
 0x3e6   :  { %8920 = vst [vmem:[#allocation30_spill] sm:$0xff] %v7528_v28 }
 0x3e7   :  { %v7526_v27 = vpop.f32.mrf.mxu3  ;;  %8922 = vst [vmem:[#allocation32_spill] sm:$0xff] %v7536_v17  ;;  %v7572_v17 = vld [vmem:[%s8753_s9 + $0x8] sm:$0xff] }
 0x3e8   :  { %8927 = vst [vmem:[#allocation37_spill] sm:$0xff] %v7572_v17 }
 0x3eb   :  { %3817 = vrot.lane.b32.xlu0 %v7402_v57, %s6068_s7  ;;  %3799 = vrot.lane.b32.xlu1 %v7400_v37, %s6067_s24 }
 0x3ec   :  { %3797 = vrot.lane.b32.xlu2 %v7438_v26, %s6067_s24  ;;  %v7548_v11 = vpop.f32.mrf.mxu2  ;;  %v7552_v40 = vpop.f32.mrf.mxu0 }
 0x3ed   :  { %v7546_v16 = vpop.f32.mrf.mxu1 }
 0x3ef   :  { %v7540_v33 = vpop.f32.mrf.mxu3 }
 0x3f0   :  { %8923 = vst [vmem:[#allocation33_spill] sm:$0xff] %v7540_v33 }
 0x3f3   :  { %3815 = vrot.lane.b32.xlu0 %v7400_v37, %s6068_s7  ;;  %3813 = vrot.lane.b32.xlu1 %v7438_v26, %s6068_s7 }
 0x3f4   :  { %3819 = vrot.lane.b32.xlu2 %v7404_v36, %s6068_s7  ;;  %v7565_v33 = vpop.f32.mrf.mxu2  ;;  %v7567_v10 = vpop.f32.mrf.mxu0 }
 0x3f5   :  { %v7563_v61 = vpop.f32.mrf.mxu1  ;;  %8925 = vst [vmem:[#allocation35_spill] sm:$0xff] %v7565_v33 }
 0x3f6   :  { %8924 = vst [vmem:[#allocation34_spill] sm:$0xff] %v7563_v61  ;;  %v8929_v61 = vmov 2  }
 0x3f7   :  { %v7559_v5 = vpop.f32.mrf.mxu3  ;;  %8926 = vst [vmem:[#allocation36_spill] sm:$0xff] %v7567_v10 }
 0x3fb   :  { %3829 = vrot.lane.b32.xlu0 %v7438_v26, %s6069_s25  ;;  %3835 = vrot.lane.b32.xlu1 %v7404_v36, %s6069_s25 }
 0x3fc   :  { %3833 = vrot.lane.b32.xlu2 %v7402_v57, %s6069_s25  ;;  %v7579_v52 = vpop.f32.mrf.mxu2  ;;  %v7581_v0 = vpop.f32.mrf.mxu0 }
 0x3fd   :  { %v7577_v4 = vpop.f32.mrf.mxu1 }
 0x3ff   :  { %v7575_v28 = vpop.f32.mrf.mxu3 }
 0x400   :  { %8928 = vst [vmem:[#allocation38_spill] sm:$0xff] %v7575_v28  ;;  %v5881_v28 = vld [vmem:[%s8754_s10 + $0x10] sm:$0xff] }
 0x403   :  { %3851 = vrot.lane.b32.xlu0 %v7404_v36, %s6070_s26  ;;  %3849 = vrot.lane.b32.xlu1 %v7402_v57, %s6070_s26 }
 0x404   :  { %3831 = vrot.lane.b32.xlu2 %v7400_v37, %s6069_s25  ;;  %v7594_v19 = vpop.f32.mrf.mxu2  ;;  %v7600_v51 = vpop.f32.mrf.mxu0 }
 0x405   :  { %v7592_v30 = vpop.f32.mrf.mxu1  ;;  %8932 = vst [vmem:[#allocation41_spill] sm:$0xff] %v7594_v19 }
 0x406   :  { %8931 = vst [vmem:[#allocation40_spill] sm:$0xff] %v7592_v30 }
 0x407   :  { %v7586_v41 = vpop.f32.mrf.mxu3  ;;  %8933 = vst [vmem:[#allocation42_spill] sm:$0xff] %v7600_v51 }
 0x408   :  { %8930 = vst [vmem:[#allocation39_spill] sm:$0xff] %v7586_v41 }
 0x40b   :  { %3611 = vperm.xlu0 %6014, %v3607_v22   ;;  %3847 = vrot.lane.b32.xlu1 %v7400_v37, %s6070_s26 }
 0x40c   :  { %3845 = vrot.lane.b32.xlu2 %v7438_v26, %s6070_s26  ;;  %v7615_v51 = vpop.f32.mrf.mxu2  ;;  %v7618_v56 = vpop.f32.mrf.mxu0 }
 0x40d   :  { %v7613_v30 = vpop.f32.mrf.mxu1  ;;  %8935 = vst [vmem:[#allocation44_spill] sm:$0xff] %v7615_v51 }
 0x40e   :  { %8936 = vst [vmem:[#allocation45_spill] sm:$0xff] %v7618_v56  ;;  %v4950_v56 = vld [vmem:[%s8757_s15 + $0x8] sm:$0xf] }
 0x40f   :  { %v7609_v19 = vpop.f32.mrf.mxu3 }
 0x410   :  { %8934 = vst [vmem:[#allocation43_spill] sm:$0xff] %v7609_v19 }
 0x414   :  { %3616 = vperm.xlu2 %6015, %v7572_v17  }
 0x416   :  { %v3748_v42 = vpop.permute.xlu2 %3747 }
 0x41c   :  { %6017 = vset.pattern.permute.xlu2 %v8929_v61 }
 0x41d   :  { %3714 = vperm.xlu2 %6017, %v3607_v22   ;;  %v4826_v22 = vld [vmem:[%s8755_s11 + $0x8] sm:$0xff] }
 0x41e   :  { %v3746_v33 = vpop.permute.xlu2 %3745  ;;  %4834 = vperm.xlu1 %6016, %v4826_v22  }
 0x41f   :  { %v3755_v10 = vsel %vm128_vm1, %v3746_v33, %v3748_v42 }
 0x420   :  { %v3758_v20 = vmul.f32 %v3755_v10, %v6346_v8  ;;  %v4947_v10 = vld [vmem:[%s8756_s13] sm:$0xff] }
 0x422   :  { %3910 = vmatpush.msrb.mxu1 %v3758_v20  ;;  %v5882_v20 = vld [vmem:[%s8754_s10 + $0x18] sm:$0xff] }
 0x423   :  { %5885 = vmatmul.msk.f32.vlgmr.msrb.gmra.mxu1 %vm2647_vm14, %v5881_v28 }
 0x425   :  { %6021 = vset.pattern.permute.xlu2 %v8886_v58 }
 0x426   :  { %v3736_v8 = vpop.permute.xlu2 %3735  ;;  %4955 = vperm.xlu2 %6021, %v4947_v10   ;;  %6018 = vset.pattern.permute.xlu1 %v8929_v61 }
 0x427   :  { %3718 = vperm.xlu1 %6018, %v7572_v17  }
 0x42b   :  { %5886 = vmatmul.msk.f32.gmra.mxu1 %vm2647_vm14, %v5882_v20 }
 0x42d   :  { %v3752_v41 = vpop.permute.xlu0 %3751  ;;  %v3750_v15 = vpop.permute.xlu1 %3749 }
 0x42e   :  { %v3756_v50 = vsel %vm128_vm1, %v3752_v41, %v3746_v33  ;;  %v3766_v10 = vpop.permute.xlu2 %3765  ;;  %v3753_v19 = vsel %vm128_vm1, %v3750_v15, %v3752_v41  ;;  %v3754_v61 = vsel %vm128_vm1, %v3748_v42, %v3750_v15  ;;  %5195 = vperm.xlu2 %6021, %v4950_v56   ;;  %v7635_v33 = vpop.f32.mrf.mxu3 }
 0x42f   :  { %v3757_v62 = vmul.f32 %v3756_v50, %v6343_v7  ;;  %v3759_v51 = vmul.f32 %v3754_v61, %v6329_v63  ;;  %v3760_v17 = vmul.f32 %v3753_v19, %v6332_v2  ;;  %4936 = vperm.xlu1 %6018, %v4826_v22   ;;  %v7637_v2 = vpop.f32.mrf.mxu1  ;;  %v7649_v50 = vpop.f32.mrf.mxu2 }
 0x431   :  { %3887 = vmatpush.msrb.mxu0 %v3757_v62  ;;  %3933 = vmatpush.msrb.mxu2 %v3759_v51  ;;  %v8937_v51 = vmov 1  }
 0x432   :  { %3956 = vmatpush.msrb.mxu3 %v3760_v17  ;;  %5883 = vmatmul.msk.f32.vlgmr.msrb.gmra.mxu0 %vm2647_vm14, %v5881_v28 }
 0x433   :  { %5887 = vmatmul.msk.f32.vlgmr.msrb.gmra.mxu2 %vm2647_vm14, %v5881_v28  ;;  %5889 = vmatmul.msk.f32.vlgmr.msrb.gmra.mxu3 %vm2647_vm14, %v5881_v28  ;;  %v7647_v28 = vpop.f32.mrf.mxu0 }
 0x435   :  { %v3734_v63 = vpop.permute.xlu0 %3733  ;;  %v3732_v7 = vpop.permute.xlu1 %3731 }
 0x436   :  { %v3737_v19 = vsel %vm96_vm3, %v3734_v63, %v3736_v8  ;;  %v7641_v61 = vpop.permute.xlu2 %3779  ;;  %v3738_v62 = vsel %vm96_vm3, %v3732_v7, %v3734_v63  ;;  %6024 = vset.pattern.permute.xlu2 %v8937_v51  ;;  %v7659_v41 = vpop.f32.mrf.mxu3 }
 0x437   :  { %v3744_v17 = vmul.f32 %v3737_v19, %v8888_v18  ;;  %v3743_v15 = vmul.f32 %v3738_v62, %v6356_v12  ;;  %6022 = vset.pattern.permute.xlu1 %v8886_v58  ;;  %v4948_v12 = vld [vmem:[%s8756_s13 + $0x8] sm:$0xf] }
 0x438   :  { %4960 = vperm.xlu1 %6022, %v4948_v12  }
 0x439   :  { %4031 = vmatpush.msra.mxu2 %v3743_v15  ;;  %4054 = vmatpush.msra.mxu3 %v3744_v17  ;;  %v3861_v17 = vld [vmem:[%s8754_s10] sm:$0xff]  ;;  %v7673_v15 = vpop.f32.mrf.mxu1 }
 0x43a   :  { %5884 = vmatmul.msk.f32.gmra.mxu0 %vm2647_vm14, %v5882_v20 }
 0x43b   :  { %5888 = vmatmul.msk.f32.gmra.mxu2 %vm2647_vm14, %v5882_v20  ;;  %5890 = vmatmul.msk.f32.gmra.mxu3 %vm2647_vm14, %v5882_v20  ;;  %v7675_v12 = vpop.f32.mrf.mxu0 }
 0x43d   :  { %v3764_v18 = vpop.permute.xlu0 %3763  ;;  %v3730_v56 = vpop.permute.xlu1 %3729 }
 0x43e   :  { %v3770_v42 = vsel %vm160_vm2, %v3764_v18, %v3766_v10  ;;  %v3778_v22 = vpop.permute.xlu2 %3777  ;;  %v3739_v63 = vsel %vm96_vm3, %v3730_v56, %v3732_v7  ;;  %v3740_v20 = vsel %vm96_vm3, %v3736_v8, %v3730_v56  ;;  %v7677_v7 = vpop.f32.mrf.mxu2 }
 0x43f   :  { %v3775_v58 = vmul.f32 %v3770_v42, %v8890_v43  ;;  %v3741_v19 = vmul.f32 %v3740_v20, %v6393_v29  ;;  %v3742_v62 = vmul.f32 %v3739_v63, %v6349_v9  ;;  %v3787_v63 = vsel %vm192_vm5, %v3778_v22, %v7641_v61 }
 0x441   :  { %3985 = vmatpush.msra.mxu0 %v3741_v19  ;;  %4008 = vmatpush.msra.mxu1 %v3742_v62  ;;  %v7700_v62 = vpop.f32.mrf.mxu3 }
 0x442   :  { %4132 = vmatpush.msrb.mxu2 %v3775_v58  ;;  %5891 = vmatmul.msk.f32.vlgmr.msra.gmra.mxu0 %vm2647_vm14, %v3861_v17 }
 0x443   :  { %5893 = vmatmul.msk.f32.vlgmr.msra.gmra.mxu1 %vm2647_vm14, %v3861_v17  ;;  %5895 = vmatmul.msk.f32.vlgmr.msra.gmra.mxu2 %vm2647_vm14, %v3861_v17 }
 0x444   :  { %5897 = vmatmul.msk.f32.vlgmr.msra.gmra.mxu3 %vm2647_vm14, %v3861_v17  ;;  %v3790_v17 = vmul.f32 %v3787_v63, %v8893_v54 }
 0x445   :  { %v3762_v9 = vpop.permute.xlu0 %3761  ;;  %v3768_v29 = vpop.permute.xlu1 %3767 }
 0x446   :  { %v3771_v43 = vsel %vm160_vm2, %v3762_v9, %v3764_v18  ;;  %v7685_v8 = vpop.permute.xlu2 %3797  ;;  %v3769_v56 = vsel %vm160_vm2, %v3766_v10, %v3768_v29  ;;  %v3772_v42 = vsel %vm160_vm2, %v3768_v29, %v3762_v9  ;;  %v3862_v18 = vld [vmem:[%s8754_s10 + $0x8] sm:$0xff]  ;;  %v7702_v10 = vpop.f32.mrf.mxu1 }
 0x447   :  { %v3774_v20 = vmul.f32 %v3771_v43, %v8889_v53  ;;  %v3773_v58 = vmul.f32 %v3772_v42, %v8891_v24  ;;  %v3776_v19 = vmul.f32 %v3769_v56, %v8892_v48  ;;  %v7708_v53 = vpop.f32.mrf.mxu0  ;;  %v7710_v24 = vpop.f32.mrf.mxu2 }
 0x449   :  { %4086 = vmatpush.msrb.mxu0 %v3773_v58  ;;  %4109 = vmatpush.msrb.mxu1 %v3774_v20  ;;  %v5899_v58 = vld [vmem:[%s8754_s10 + $0x20] sm:$0xff] }
 0x44a   :  { %4155 = vmatpush.msrb.mxu3 %v3776_v19  ;;  %5892 = vmatmul.msk.f32.gmra.mxu0 %vm2647_vm14, %v3862_v18  ;;  %v2819_v19 = vadd.f32 %v7486_v34, %v7452_v49 }
 0x44b   :  { %5894 = vmatmul.msk.f32.gmra.mxu1 %vm2647_vm14, %v3862_v18  ;;  %5896 = vmatmul.msk.f32.gmra.mxu2 %vm2647_vm14, %v3862_v18 }
 0x44c   :  { %5898 = vmatmul.msk.f32.gmra.mxu3 %vm2647_vm14, %v3862_v18  ;;  %4218 = vmatpush.msra.mxu1 %v3790_v17  ;;  %v7732_v18 = vpop.f32.mrf.mxu3 }
 0x44d   :  { %v3784_v48 = vpop.permute.xlu0 %3783  ;;  %v3782_v9 = vpop.permute.xlu1 %3781 }
 0x44e   :  { %v3788_v29 = vsel %vm192_vm5, %v3784_v48, %v3778_v22  ;;  %v7715_v54 = vpop.permute.xlu2 %3819  ;;  %v3785_v43 = vsel %vm192_vm5, %v3782_v9, %v3784_v48  ;;  %v3786_v56 = vsel %vm192_vm5, %v7641_v61, %v3782_v9  ;;  %v2796_v22 = vadd.f32 %v7484_v32, %v7450_v6  ;;  %v7745_v49 = vpop.f32.mrf.mxu1 }
 0x44f   :  { %v3789_v42 = vmul.f32 %v3788_v29, %v8898_v47  ;;  %v3791_v63 = vmul.f32 %v3786_v56, %v8894_v31  ;;  %v3792_v20 = vmul.f32 %v3785_v43, %v8899_v55  ;;  %v3793_v31 = vmul.f32 %v7438_v26, %v8900_v39 }
 0x450   :  { %v2773_v47 = vadd.f32 %v7490_v23, %v7454_v59  ;;  %v3794_v55 = vmul.f32 %v7400_v37, %v8895_v44  ;;  %v3795_v6 = vmul.f32 %v7402_v57, %v8896_v25  ;;  %v3796_v39 = vmul.f32 %v7404_v36, %v8901_v35  ;;  %v7754_v25 = vpop.f32.mrf.mxu0  ;;  %v7759_v23 = vpop.f32.mrf.mxu2  ;;  %v5900_v35 = vld [vmem:[%s8754_s10 + $0x28] sm:$0xff] }
 0x451   :  { %4195 = vmatpush.msra.mxu0 %v3789_v42  ;;  %4241 = vmatpush.msra.mxu2 %v3791_v63  ;;  %v2950_v26 = vadd.f32 %v7514_v14, %v2796_v22  ;;  %v2842_v44 = vadd.f32 %v7496_v1, %v7464_v3  ;;  %v2951_v37 = vadd.f32 %v7516_v38, %v2819_v19  ;;  %v8941_v19 = vld [vmem:[#allocation11_spill] sm:$0xff] }
 0x452   :  { %4264 = vmatpush.msra.mxu3 %v3792_v20  ;;  %5901 = vmatmul.msk.f32.vlgmr.msrb.gmra.mxu0 %vm2647_vm14, %v5899_v58  ;;  %v2949_v34 = vadd.f32 %v7518_v21, %v2773_v47  ;;  %v8938_v20 = vld [vmem:[#allocation18_spill] sm:$0xff] }
 0x453   :  { %5903 = vmatmul.msk.f32.vlgmr.msrb.gmra.mxu1 %vm2647_vm14, %v5899_v58  ;;  %5905 = vmatmul.msk.f32.vlgmr.msrb.gmra.mxu2 %vm2647_vm14, %v5899_v58  ;;  %v3059_v36 = vadd.f32 %v7546_v16, %v2950_v26  ;;  %v2952_v14 = vadd.f32 %v7526_v27, %v2842_v44  ;;  %v3060_v3 = vadd.f32 %v7548_v11, %v2951_v37 }
 0x454   :  { %5907 = vmatmul.msk.f32.vlgmr.msrb.gmra.mxu3 %vm2647_vm14, %v5899_v58  ;;  %4304 = vmatpush.msrb.mxu0 %v3793_v31  ;;  %v3058_v38 = vadd.f32 %v7552_v40, %v2949_v34  ;;  %v7771_v21 = vpop.f32.mrf.mxu3  ;;  %v8942_v31 = vld [vmem:[#allocation5_spill] sm:$0xff] }
 0x455   :  { %4327 = vmatpush.msrb.mxu1 %v3794_v55  ;;  %4350 = vmatpush.msrb.mxu2 %v3795_v6  ;;  %v3804_v59 = vpop.permute.xlu0 %3803  ;;  %v3802_v32 = vpop.permute.xlu1 %3801  ;;  %v3168_v1 = vadd.f32 %v7577_v4, %v3059_v36  ;;  %v3061_v27 = vadd.f32 %v7559_v5, %v2952_v14  ;;  %v3169_v11 = vadd.f32 %v7579_v52, %v3060_v3  ;;  %v5909_v4 = vld [vmem:[%s8754_s10 + $0x30] sm:$0xff]  ;;  %v8949_v34 = vld [vmem:[#allocation13_spill] sm:$0xff]  ;;  %v8950_v14 = vld [vmem:[#allocation20_spill] sm:$0xff] }
 0x456   :  { %4373 = vmatpush.msrb.mxu3 %v3796_v39  ;;  %v7756_v57 = vpop.permute.xlu2 %3833  ;;  %v3167_v9 = vadd.f32 %v7581_v0, %v3058_v38  ;;  %v2793_v5 = vadd.f32 %v7466_v46, %v7413_v13  ;;  %v7794_v52 = vpop.f32.mrf.mxu1  ;;  %v3805_v43 = vsel %vm241_vm6, %v3802_v32, %v3804_v59  ;;  %v3808_v0 = vsel %vm241_vm6, %v3804_v59, %v7685_v8  ;;  %v8939_v13 = vld [vmem:[#allocation17_spill] sm:$0xff]  ;;  %v8940_v46 = vld [vmem:[#allocation3_spill] sm:$0xff]  ;;  %v8944_v39 = vld [vmem:[#allocation44_spill] sm:$0xff] }
 0x457   :  { %v3277_v42 = vadd.f32 %v7613_v30, %v3168_v1  ;;  %v2770_v22 = vadd.f32 %v8940_v46, %v8939_v13  ;;  %v2816_v47 = vadd.f32 %v8942_v31, %v8941_v19  ;;  %v8943_v55 = vld [vmem:[#allocation39_spill] sm:$0xff]  ;;  %v8945_v30 = vld [vmem:[#allocation45_spill] sm:$0xff]  ;;  %v8948_v59 = vld [vmem:[#allocation16_spill] sm:$0xff]  ;;  %v3812_v3 = vmul.f32 %v3808_v0, %v8950_v14 }
 0x458   :  { %v7792_v29 = vpop.f32.mrf.mxu0  ;;  %v7800_v63 = vpop.f32.mrf.mxu2  ;;  %v3170_v6 = vadd.f32 %v8943_v55, %v3061_v27  ;;  %v3276_v26 = vadd.f32 %v8945_v30, %v3167_v9 }
 0x459   :  { %v3386_v38 = vadd.f32 %v7673_v15, %v3277_v42  ;;  %v5910_v15 = vld [vmem:[%s8754_s10 + $0x38] sm:$0xff]  ;;  %v8954_v42 = vld [vmem:[#allocation30_spill] sm:$0xff] }
 0x45a   :  { %5902 = vmatmul.msk.f32.gmra.mxu0 %vm2647_vm14, %v5900_v35 }
 0x45b   :  { %5904 = vmatmul.msk.f32.gmra.mxu1 %vm2647_vm14, %v5900_v35  ;;  %5906 = vmatmul.msk.f32.gmra.mxu2 %vm2647_vm14, %v5900_v35 }
 0x45c   :  { %5908 = vmatmul.msk.f32.gmra.mxu3 %vm2647_vm14, %v5900_v35  ;;  %v2946_v35 = vadd.f32 %v8949_v34, %v2793_v5  ;;  %v7820_v36 = vpop.f32.mrf.mxu3 }
 0x45d   :  { %v7775_v61 = vpop.permute.xlu0 %3817  ;;  %v3800_v16 = vpop.permute.xlu1 %3799 }
 0x45e   :  { %v7779_v17 = vpop.permute.xlu2 %3831  ;;  %v3806_v40 = vsel %vm241_vm6, %v3800_v16, %v3802_v32  ;;  %v3807_v48 = vsel %vm241_vm6, %v7685_v8, %v3800_v16  ;;  %v8946_v32 = vld [vmem:[#allocation15_spill] sm:$0xff]  ;;  %v8947_v8 = vld [vmem:[#allocation14_spill] sm:$0xff]  ;;  %v3055_v0 = vadd.f32 %v8954_v42, %v2946_v35  ;;  %v3821_v35 = vsel %vm273_vm7, %v7775_v61, %v7715_v54 }
 0x45f   :  { %v3809_v56 = vmul.f32 %v3807_v48, %v8902_v45  ;;  %v3810_v58 = vmul.f32 %v3806_v40, %v8938_v20  ;;  %v3278_v45 = vadd.f32 %v8944_v39, %v3169_v11  ;;  %v3811_v44 = vmul.f32 %v3805_v43, %v8946_v32  ;;  %v8951_v16 = vld [vmem:[#allocation2_spill] sm:$0xff]  ;;  %v8952_v11 = vld [vmem:[#allocation4_spill] sm:$0xff] }
 0x460   :  { %v2839_v37 = vadd.f32 %v8948_v59, %v8947_v8  ;;  %v2945_v27 = vadd.f32 %v8951_v16, %v2770_v22  ;;  %v2947_v40 = vadd.f32 %v8952_v11, %v2816_v47  ;;  %v3279_v48 = vadd.f32 %v7635_v33, %v3170_v6  ;;  %v8956_v33 = vld [vmem:[#allocation31_spill] sm:$0xff]  ;;  %v3527_v19 = vpop.f32.mrf.mxu0  ;;  %v3573_v47 = vpop.f32.mrf.mxu2  ;;  %v8958_v6 = vld [vmem:[#allocation34_spill] sm:$0xff]  ;;  %v5919_v16 = vld [vmem:[%s8754_s10 + $0x40] sm:$0xff] }
 0x461   :  { %v3387_v9 = vadd.f32 %v7677_v7, %v3278_v45  ;;  %v3385_v43 = vadd.f32 %v7675_v12, %v3276_v26  ;;  %v3495_v20 = vadd.f32 %v7745_v49, %v3386_v38  ;;  %v3550_v12 = vpop.f32.mrf.mxu1  ;;  %v8957_v49 = vld [vmem:[#allocation33_spill] sm:$0xff]  ;;  %v3164_v39 = vadd.f32 %v8958_v6, %v3055_v0  ;;  %v8959_v26 = vld [vmem:[#allocation36_spill] sm:$0xff] }
 0x462   :  { %5911 = vmatmul.msk.f32.vlgmr.msra.gmra.mxu0 %vm2647_vm14, %v5909_v4  ;;  %v3056_v46 = vadd.f32 %v8956_v33, %v2947_v40  ;;  %v3388_v7 = vadd.f32 %v7700_v62, %v3279_v48  ;;  %v8962_v11 = vld [vmem:[#allocation40_spill] sm:$0xff]  ;;  %v8964_v0 = vld [vmem:[#allocation41_spill] sm:$0xff]  ;;  %v8966_v33 = vld [vmem:[#allocation22_spill] sm:$0xff] }
 0x463   :  { %5913 = vmatmul.msk.f32.vlgmr.msra.gmra.mxu1 %vm2647_vm14, %v5909_v4  ;;  %5915 = vmatmul.msk.f32.vlgmr.msra.gmra.mxu2 %vm2647_vm14, %v5909_v4  ;;  %v3496_v22 = vadd.f32 %v7759_v23, %v3387_v9  ;;  %v3494_v31 = vadd.f32 %v7754_v25, %v3385_v43  ;;  %v3604_v23 = vadd.f32 %v3550_v12, %v3495_v20 }
 0x464   :  { %5917 = vmatmul.msk.f32.vlgmr.msra.gmra.mxu3 %vm2647_vm14, %v5909_v4  ;;  %4413 = vmatpush.msra.mxu0 %v3809_v56  ;;  %v8953_v4 = vld [vmem:[#allocation19_spill] sm:$0xff]  ;;  %v3497_v8 = vadd.f32 %v7771_v21, %v3388_v7  ;;  %v8961_v21 = vld [vmem:[#allocation38_spill] sm:$0xff]  ;;  %v3273_v40 = vadd.f32 %v8962_v11, %v3164_v39  ;;  %v8973_v11 = vld [vmem:[#allocation25_spill] sm:$0xff] }
 0x465   :  { %4436 = vmatpush.msra.mxu1 %v3810_v58  ;;  %4459 = vmatpush.msra.mxu2 %v3811_v44  ;;  %v3816_v1 = vpop.permute.xlu0 %3815  ;;  %v2948_v56 = vadd.f32 %v8953_v4, %v2839_v37  ;;  %v8955_v58 = vld [vmem:[#allocation32_spill] sm:$0xff]  ;;  %v3814_v45 = vpop.permute.xlu1 %3813  ;;  %v3603_v62 = vadd.f32 %v3527_v19, %v3494_v31  ;;  %v8960_v44 = vld [vmem:[#allocation35_spill] sm:$0xff]  ;;  %v3605_v59 = vadd.f32 %v3573_v47, %v3496_v22 }
 0x466   :  { %4482 = vmatpush.msra.mxu3 %v3812_v3  ;;  %v7829_v5 = vpop.permute.xlu2 %3845  ;;  %v3054_v13 = vadd.f32 %v8955_v58, %v2945_v27  ;;  %v3165_v25 = vadd.f32 %v8960_v44, %v3056_v46  ;;  %v3596_v37 = vpop.f32.mrf.mxu3  ;;  %v3823_v14 = vsel %vm273_vm7, %v3814_v45, %v3816_v1  ;;  %v3822_v48 = vsel %vm273_vm7, %v3816_v1, %v7775_v61  ;;  %v8965_v58 = vld [vmem:[#allocation23_spill] sm:$0xff]  ;;  %v8967_v61 = vld [vmem:[#allocation21_spill] sm:$0xff]  ;;  %v8968_v19 = vld [vmem:[#allocation24_spill] sm:$0xff] }
 0x467   :  { %v3057_v55 = vadd.f32 %v8957_v49, %v2948_v56  ;;  %v3606_v9 = vadd.f32 %v3596_v37, %v3497_v8  ;;  %v3824_v43 = vsel %vm273_vm7, %v7715_v54, %v3814_v45  ;;  %v8963_v56 = vld [vmem:[#allocation42_spill] sm:$0xff]  ;;  %v3825_v46 = vmul.f32 %v3823_v14, %v8966_v33  ;;  %v8969_v31 = vld [vmem:[#allocation43_spill] sm:$0xff] }
 0x468   :  { %v3163_v32 = vadd.f32 %v8959_v26, %v3054_v13  ;;  %v3274_v20 = vadd.f32 %v8964_v0, %v3165_v25  ;;  %v3827_v13 = vmul.f32 %v3821_v35, %v8965_v58  ;;  %v3826_v1 = vmul.f32 %v3822_v48, %v8967_v61  ;;  %v8970_v37 = vld [vmem:[#allocation27_spill] sm:$0xff]  ;;  %v5930_v48 = vld [vmem:[%s8754_s10 + $0x58] sm:$0xff] }
 0x469   :  { %v3166_v27 = vadd.f32 %v8961_v21, %v3057_v55  ;;  %v3382_v22 = vadd.f32 %v7637_v2, %v3273_v40  ;;  %v3828_v12 = vmul.f32 %v3824_v43, %v8968_v19  ;;  %v5920_v2 = vld [vmem:[%s8754_s10 + $0x48] sm:$0xff]  ;;  %v4966_v19 = vld.sshfl [vmem:[#allocation1] sm:$0xff pattern:$0x75316420] }
 0x46a   :  { %5912 = vmatmul.msk.f32.gmra.mxu0 %vm2647_vm14, %v5910_v15  ;;  %v3272_v42 = vadd.f32 %v8963_v56, %v3163_v32  ;;  %v3383_v39 = vadd.f32 %v7649_v50, %v3274_v20  ;;  %v8972_v21 = vld [vmem:[#allocation26_spill] sm:$0xff] }
 0x46b   :  { %5914 = vmatmul.msk.f32.gmra.mxu1 %vm2647_vm14, %v5910_v15  ;;  %5916 = vmatmul.msk.f32.gmra.mxu2 %vm2647_vm14, %v5910_v15  ;;  %v3275_v47 = vadd.f32 %v8969_v31, %v3166_v27  ;;  %v3491_v45 = vadd.f32 %v7702_v10, %v3382_v22  ;;  %v8974_v20 = vld [vmem:[#allocation10_spill] sm:$0xff]  ;;  %v5949_v22 = vld [vmem:[%s8754_s10 + $0x70] sm:$0xff] }
 0x46c   :  { %5918 = vmatmul.msk.f32.gmra.mxu3 %vm2647_vm14, %v5910_v15  ;;  %v3381_v6 = vadd.f32 %v7647_v28, %v3272_v42  ;;  %v3492_v32 = vadd.f32 %v7710_v24, %v3383_v39  ;;  %v8979_v31 = vld [vmem:[#allocation7_spill] sm:$0xff]  ;;  %v8981_v39 = vmov 2  }
 0x46d   :  { %v7849_v30 = vpop.permute.xlu0 %3829  ;;  %v3600_v50 = vadd.f32 %v7794_v52, %v3491_v45  ;;  %v5929_v52 = vld [vmem:[%s8754_s10 + $0x50] sm:$0xff] }
 0x46e   :  { %v3617_v34 = vpop.permute.xlu2 %3616  ;;  %v3490_v26 = vadd.f32 %v7708_v53, %v3381_v6  ;;  %v5950_v6 = vld [vmem:[%s8754_s10 + $0x78] sm:$0xff] }
 0x46f   :  { %v7860_v3 = vadd.f32 %v3617_v34, %v3603_v62  ;;  %v7862_v38 = vadd.f32 %v3617_v34, %v3604_v23  ;;  %v7875_v15 = vadd.f32 %v3617_v34, %v3605_v59  ;;  %v7885_v7 = vadd.f32 %v3617_v34, %v3606_v9  ;;  %v3836_v62 = vpop.permute.xlu1 %3835 }
 0x470   :  { %v3384_v23 = vadd.f32 %v7659_v41, %v3275_v47  ;;  %v3599_v28 = vadd.f32 %v7792_v29, %v3490_v26  ;;  %v3601_v41 = vadd.f32 %v7800_v63, %v3492_v32  ;;  %v3839_v29 = vsel %vm305_vm8, %v7849_v30, %v7779_v17  ;;  %v4968_v47 = vld.sshfl [vmem:[#allocation1 + $0x10] sm:$0xff pattern:$0x75316420]  ;;  %v8982_v26 = vld [vmem:[#allocation37_spill] sm:$0xff] }
 0x471   :  { %v3632_v4 = vadd.f32 %v7862_v38, %v7860_v3  ;;  %v3837_v63 = vsel %vm305_vm8, %v7756_v57, %v3836_v62  ;;  %v3840_v59 = vsel %vm305_vm8, %v3836_v62, %v7849_v30  ;;  %v3841_v34 = vmul.f32 %v3839_v29, %v8970_v37  ;;  %v5959_v62 = vld [vmem:[%s8754_s10 + $0x80] sm:$0xff]  ;;  %v5960_v29 = vld [vmem:[%s8754_s10 + $0x88] sm:$0xff] }
 0x472   :  { %5921 = vmatmul.msk.f32.vlgmr.msrb.gmra.mxu0 %vm2647_vm14, %v5919_v16  ;;  %v3493_v10 = vadd.f32 %v7732_v18, %v3384_v23  ;;  %v3838_v18 = vsel %vm305_vm8, %v7779_v17, %v7756_v57  ;;  %v3843_v27 = vmul.f32 %v3837_v63, %v8972_v21  ;;  %v3844_v40 = vmul.f32 %v3840_v59, %v8973_v11  ;;  %v4952_v21 = vld [vmem:[%s8758_s12 + $0x8] sm:$0xf] }
 0x473   :  { %5923 = vmatmul.msk.f32.vlgmr.msrb.gmra.mxu1 %vm2647_vm14, %v5919_v16  ;;  %5925 = vmatmul.msk.f32.vlgmr.msrb.gmra.mxu2 %vm2647_vm14, %v5919_v16  ;;  %v3633_v54 = vadd.f32 %v3632_v4, %v7875_v15  ;;  %v5939_v4 = vld [vmem:[%s8754_s10 + $0x60] sm:$0xff] }
 0x474   :  { %5927 = vmatmul.msk.f32.vlgmr.msrb.gmra.mxu3 %vm2647_vm14, %v5919_v16  ;;  %4522 = vmatpush.msrb.mxu0 %v3825_v46  ;;  %v3602_v25 = vadd.f32 %v7820_v36, %v3493_v10  ;;  %v8971_v16 = vld [vmem:[#allocation28_spill] sm:$0xff] }
 0x475   :  { %4545 = vmatpush.msrb.mxu1 %v3826_v1  ;;  %4568 = vmatpush.msrb.mxu2 %v3827_v13  ;;  %v3852_v49 = vpop.permute.xlu0 %3851  ;;  %v3634_v55 = vadd.f32 %v3633_v54, %v7885_v7  ;;  %v3842_v57 = vmul.f32 %v3838_v18, %v8971_v16  ;;  %v8975_v13 = vld [vmem:[#allocation9_spill] sm:$0xff]  ;;  %v8976_v46 = vld [vmem:[#allocation8_spill] sm:$0xff] }
 0x476   :  { %4591 = vmatpush.msrb.mxu3 %v3828_v12  ;;  %v3856_v0 = vsel %vm337_vm9, %v3852_v49, %v7829_v5  ;;  %v8977_v1 = vld [vmem:[#allocation12_spill] sm:$0xff]  ;;  %v4967_v12 = vld.sshfl [vmem:[#allocation1 + $0x8] sm:$0xff pattern:$0x75316420] }
 0x477   :  { %3635 = vadd.xlane.f32.xlu2 %v3634_v55  ;;  %v3850_v35 = vpop.permute.xlu1 %3849  ;;  %v3860_v54 = vmul.f32 %v8977_v1, %v3856_v0  ;;  %5198 = vst [vmem:[#allocation1] ss:$2 sm:$0xff] %v8979_v31  ;;  %v8980_v55 = vld [vmem:[#allocation6_spill] sm:$0xff] }
 0x478   :  { %v3853_v56 = vsel %vm337_vm9, %v3850_v35, %v3852_v49  ;;  %v4969_v49 = vld.sshfl [vmem:[#allocation1 + $0x18] sm:$0xff pattern:$0x75316420] }
 0x479   :  { %v3859_v33 = vmul.f32 %v8975_v13, %v3853_v56  ;;  %5200 = vst [vmem:[#allocation1 + $0x10] ss:$2 sm:$0xff] %v8980_v55 }
 0x47a   :  { %5922 = vmatmul.msk.f32.gmra.mxu0 %vm2647_vm14, %v5920_v2 }
 0x47b   :  { %5924 = vmatmul.msk.f32.gmra.mxu1 %vm2647_vm14, %v5920_v2  ;;  %5926 = vmatmul.msk.f32.gmra.mxu2 %vm2647_vm14, %v5920_v2 }
 0x47c   :  { %5928 = vmatmul.msk.f32.gmra.mxu3 %vm2647_vm14, %v5920_v2 }
 0x47d   :  { %v3612_v44 = vpop.permute.xlu0 %3611 }
 0x47e   :  { %v7912_v53 = vadd.f32 %v3612_v44, %v3599_v28  ;;  %v7914_v24 = vadd.f32 %v3612_v44, %v3600_v50  ;;  %v7931_v8 = vadd.f32 %v3612_v44, %v3601_v41  ;;  %v7939_v14 = vadd.f32 %v3612_v44, %v3602_v25  ;;  %v5201_v23 = vld.sshfl [vmem:[#allocation1] sm:$0xff pattern:$0x75316420]  ;;  %v5202_v32 = vld.sshfl [vmem:[#allocation1 + $0x8] sm:$0xff pattern:$0x75316420] }
 0x47f   :  { %v3848_v9 = vpop.permute.xlu1 %3847 }
 0x480   :  { %v3627_v36 = vadd.f32 %v7914_v24, %v7912_v53  ;;  %v3855_v43 = vsel %vm337_vm9, %v7829_v5, %v3848_v9  ;;  %v3854_v42 = vsel %vm337_vm9, %v3848_v9, %v3850_v35  ;;  %v7988_v5 = vld [vmem:[%s8755_s11] sm:$0xff]  ;;  %v5203_v28 = vld.sshfl [vmem:[#allocation1 + $0x10] sm:$0xff pattern:$0x75316420] }
 0x481   :  { %v3857_v58 = vmul.f32 %v8974_v20, %v3855_v43  ;;  %v3858_v61 = vmul.f32 %v8976_v46, %v3854_v42  ;;  %8978 = vst [vmem:[#allocation18_spill] sm:$0xff] %v7988_v5  ;;  %4829 = vperm.xlu0 %6014, %v7988_v5   ;;  %v5204_v50 = vld.sshfl [vmem:[#allocation1 + $0x18] sm:$0xff pattern:$0x75316420]  ;;  %v5186_v42 = vld [vmem:[%s8759_s14] sm:$0xff] }
 0x482   :  { %5931 = vmatmul.msk.f32.vlgmr.msra.gmra.mxu0 %vm2647_vm14, %v5929_v52  ;;  %v3628_v17 = vadd.f32 %v3627_v36, %v7931_v8  ;;  %v4951_v36 = vld [vmem:[%s8758_s12] sm:$0xff] }
 0x483   :  { %5933 = vmatmul.msk.f32.vlgmr.msra.gmra.mxu1 %vm2647_vm14, %v5929_v52  ;;  %5935 = vmatmul.msk.f32.vlgmr.msra.gmra.mxu2 %vm2647_vm14, %v5929_v52 }
 0x484   :  { %5937 = vmatmul.msk.f32.vlgmr.msra.gmra.mxu3 %vm2647_vm14, %v5929_v52  ;;  %4631 = vmatpush.msra.mxu0 %v3841_v34  ;;  %v3629_v30 = vadd.f32 %v3628_v17, %v7939_v14 }
 0x485   :  { %4654 = vmatpush.msra.mxu1 %v3842_v57  ;;  %4677 = vmatpush.msra.mxu2 %v3843_v27 }
 0x486   :  { %4700 = vmatpush.msra.mxu3 %v3844_v40  ;;  %3630 = vadd.xlane.f32.xlu1 %v3629_v30 }
 0x489   :  { %6019 = vset.pattern.permute.xlu0 %v8981_v39 }
 0x48a   :  { %5932 = vmatmul.msk.f32.gmra.mxu0 %vm2647_vm14, %v5930_v48  ;;  %4932 = vperm.xlu0 %6019, %v7988_v5  }
 0x48b   :  { %5934 = vmatmul.msk.f32.gmra.mxu1 %vm2647_vm14, %v5930_v48  ;;  %5936 = vmatmul.msk.f32.gmra.mxu2 %vm2647_vm14, %v5930_v48 }
 0x48c   :  { %5938 = vmatmul.msk.f32.gmra.mxu3 %vm2647_vm14, %v5930_v48  ;;  %v8047_v48 = vpop.permute.xlu2 %3714 }
 0x48d   :  { %8983 = vst [vmem:[#allocation17_spill] sm:$0xff] %v8047_v48 }
 0x490   :  { %v8052_v13 = vpop.permute.xlu1 %4834 }
 0x492   :  { %5941 = vmatmul.msk.f32.vlgmr.msrb.gmra.mxu0 %vm2647_vm14, %v5939_v4  ;;  %6020 = vset.pattern.permute.xlu0 %v8937_v51 }
 0x493   :  { %5943 = vmatmul.msk.f32.vlgmr.msrb.gmra.mxu1 %vm2647_vm14, %v5939_v4  ;;  %5945 = vmatmul.msk.f32.vlgmr.msrb.gmra.mxu2 %vm2647_vm14, %v5939_v4 }
 0x494   :  { %5947 = vmatmul.msk.f32.vlgmr.msrb.gmra.mxu3 %vm2647_vm14, %v5939_v4  ;;  %4740 = vmatpush.msrb.mxu0 %v3857_v58 }
 0x495   :  { %4763 = vmatpush.msrb.mxu1 %v3858_v61  ;;  %4786 = vmatpush.msrb.mxu2 %v3859_v33  ;;  %v8058_v61 = vpop.permute.xlu2 %4955 }
 0x496   :  { %4809 = vmatpush.msrb.mxu3 %v3860_v54  ;;  %3702 = vperm.xlu0 %6020, %v8982_v26  }
 0x49a   :  { %5942 = vmatmul.msk.f32.gmra.mxu0 %vm2647_vm14, %v5940_v60 }
 0x49b   :  { %5944 = vmatmul.msk.f32.gmra.mxu1 %vm2647_vm14, %v5940_v60  ;;  %5946 = vmatmul.msk.f32.gmra.mxu2 %vm2647_vm14, %v5940_v60 }
 0x49c   :  { %5948 = vmatmul.msk.f32.gmra.mxu3 %vm2647_vm14, %v5940_v60 }
 0x4a0   :  { %v3912_v2 = vpop.f32.mrf.mxu1 }
 0x4a2   :  { %5951 = vmatmul.msk.f32.vlgmr.msra.gmra.mxu0 %vm2647_vm14, %v5949_v22 }
 0x4a3   :  { %5953 = vmatmul.msk.f32.vlgmr.msra.gmra.mxu1 %vm2647_vm14, %v5949_v22  ;;  %5955 = vmatmul.msk.f32.vlgmr.msra.gmra.mxu2 %vm2647_vm14, %v5949_v22 }
 0x4a4   :  { %5957 = vmatmul.msk.f32.vlgmr.msra.gmra.mxu3 %vm2647_vm14, %v5949_v22  ;;  %5969 = vmatpush.msk.msra.mxu0 %vm215_vm0, %v4966_v19  ;;  %v5187_v22 = vld [vmem:[%s8759_s14 + $0x8] sm:$0xf]  ;;  %s6077_s14 = smov 6  }
 0x4a5   :  { %5972 = vmatpush.msk.msra.mxu1 %vm215_vm0, %v4967_v12  ;;  %5975 = vmatpush.msk.msra.mxu2 %vm215_vm0, %v4968_v47 }
 0x4a6   :  { %5978 = vmatpush.msk.msra.mxu3 %vm215_vm0, %v4969_v49  ;;  %v8064_v49 = vpop.permute.xlu1 %3718 }
 0x4a8   :  { %v3915_v10 = vpop.f32.mrf.mxu1 }
 0x4aa   :  { %5952 = vmatmul.msk.f32.gmra.mxu0 %vm2647_vm14, %v5950_v6 }
 0x4ab   :  { %5954 = vmatmul.msk.f32.gmra.mxu1 %vm2647_vm14, %v5950_v6  ;;  %5956 = vmatmul.msk.f32.gmra.mxu2 %vm2647_vm14, %v5950_v6 }
 0x4ac   :  { %5958 = vmatmul.msk.f32.gmra.mxu3 %vm2647_vm14, %v5950_v6 }
 0x4af   :  { %v3889_v45 = vpop.f32.mrf.mxu0 }
 0x4b2   :  { %5961 = vmatmul.msk.f32.vlgmr.msrb.gmra.mxu0 %vm2647_vm14, %v5959_v62 }
 0x4b3   :  { %5963 = vmatmul.msk.f32.vlgmr.msrb.gmra.mxu1 %vm2647_vm14, %v5959_v62  ;;  %5965 = vmatmul.msk.f32.vlgmr.msrb.gmra.mxu2 %vm2647_vm14, %v5959_v62 }
 0x4b4   :  { %5967 = vmatmul.msk.f32.vlgmr.msrb.gmra.mxu3 %vm2647_vm14, %v5959_v62  ;;  %5981 = vmatpush.msk.msrb.mxu0 %vm215_vm0, %v5201_v23 }
 0x4b5   :  { %5984 = vmatpush.msk.msrb.mxu1 %vm215_vm0, %v5202_v32  ;;  %5987 = vmatpush.msk.msrb.mxu2 %vm215_vm0, %v5203_v28  ;;  %v8071_v32 = vpop.permute.xlu2 %5195 }
 0x4b6   :  { %v3935_v44 = vpop.f32.mrf.mxu2  ;;  %v3958_v41 = vpop.f32.mrf.mxu3  ;;  %5990 = vmatpush.msk.msrb.mxu3 %vm215_vm0, %v5204_v50 }
 0x4b7   :  { %v3892_v25 = vpop.f32.mrf.mxu0  ;;  %v8075_v50 = vpop.permute.xlu1 %4936 }
 0x4b8   :  { %8984 = vst [vmem:[#allocation3_spill] sm:$0xff] %v8075_v50 }
 0x4ba   :  { %5962 = vmatmul.msk.f32.gmra.mxu0 %vm2647_vm14, %v5960_v29 }
 0x4bb   :  { %5964 = vmatmul.msk.f32.gmra.mxu1 %vm2647_vm14, %v5960_v29  ;;  %5966 = vmatmul.msk.f32.gmra.mxu2 %vm2647_vm14, %v5960_v29 }
 0x4bc   :  { %5968 = vmatmul.msk.f32.gmra.mxu3 %vm2647_vm14, %v5960_v29 }
 0x4be   :  { %v3938_v52 = vpop.f32.mrf.mxu2  ;;  %v3961_v18 = vpop.f32.mrf.mxu3 }
 0x4bf   :  { %v3987_v63 = vpop.f32.mrf.mxu0 }
 0x4c0   :  { %v3988_v59 = vadd.f32 %v3987_v63, %v3889_v45  ;;  %v4010_v37 = vpop.f32.mrf.mxu1 }
 0x4c1   :  { %v4011_v34 = vadd.f32 %v4010_v37, %v3912_v2 }
 0x4c2   :  { %5970 = vmatmul.msk.f32.vlgmr.msra.gmra.mxu0 %vm353_vm4, %v4951_v36 }
 0x4c3   :  { %5973 = vmatmul.msk.f32.vlgmr.msra.gmra.mxu1 %vm353_vm4, %v4951_v36  ;;  %5976 = vmatmul.msk.f32.vlgmr.msra.gmra.mxu2 %vm353_vm4, %v4951_v36 }
 0x4c4   :  { %5979 = vmatmul.msk.f32.vlgmr.msra.gmra.mxu3 %vm353_vm4, %v4951_v36 }
 0x4c6   :  { %v4033_v35 = vpop.f32.mrf.mxu2 }
 0x4c7   :  { %v4034_v17 = vadd.f32 %v4033_v35, %v3935_v44  ;;  %v4056_v16 = vpop.f32.mrf.mxu3  ;;  %v3990_v57 = vpop.f32.mrf.mxu0 }
 0x4c8   :  { %v4057_v27 = vadd.f32 %v4056_v16, %v3958_v41  ;;  %v3991_v11 = vadd.f32 %v3990_v57, %v3892_v25  ;;  %v4013_v40 = vpop.f32.mrf.mxu1  ;;  %v8095_v57 = vpop.permute.xlu1 %4960 }
 0x4c9   :  { %v4014_v30 = vadd.f32 %v4013_v40, %v3915_v10 }
 0x4ca   :  { %5971 = vmatmul.msk.f32.gmra.mxu0 %vm353_vm4, %v4952_v21 }
 0x4cb   :  { %5974 = vmatmul.msk.f32.gmra.mxu1 %vm353_vm4, %v4952_v21  ;;  %5977 = vmatmul.msk.f32.gmra.mxu2 %vm353_vm4, %v4952_v21 }
 0x4cc   :  { %5980 = vmatmul.msk.f32.gmra.mxu3 %vm353_vm4, %v4952_v21 }
 0x4ce   :  { %v4036_v9 = vpop.f32.mrf.mxu2 }
 0x4cf   :  { %v4037_v43 = vadd.f32 %v4036_v9, %v3938_v52  ;;  %v4059_v4 = vpop.f32.mrf.mxu3  ;;  %v4088_v56 = vpop.f32.mrf.mxu0 }
 0x4d0   :  { %v4060_v0 = vadd.f32 %v4059_v4, %v3961_v18  ;;  %v4163_v20 = vadd.f32 %v4088_v56, %v3988_v59  ;;  %v4111_v58 = vpop.f32.mrf.mxu1  ;;  %v8985_v59 = vld [vmem:[#allocation29_spill] sm:$0xff] }
 0x4d1   :  { %v4164_v33 = vadd.f32 %v4111_v58, %v4011_v34 }
 0x4d2   :  { %5982 = vmatmul.msk.f32.vlgmr.msrb.gmra.mxu0 %vm353_vm4, %v5186_v42 }
 0x4d3   :  { %5985 = vmatmul.msk.f32.vlgmr.msrb.gmra.mxu1 %vm353_vm4, %v5186_v42  ;;  %5988 = vmatmul.msk.f32.vlgmr.msrb.gmra.mxu2 %vm353_vm4, %v5186_v42 }
 0x4d4   :  { %5991 = vmatmul.msk.f32.vlgmr.msrb.gmra.mxu3 %vm353_vm4, %v5186_v42 }
 0x4d6   :  { %v4134_v46 = vpop.f32.mrf.mxu2 }
 0x4d7   :  { %v4165_v1 = vadd.f32 %v4134_v46, %v4034_v17  ;;  %v4157_v54 = vpop.f32.mrf.mxu3  ;;  %v4091_v60 = vpop.f32.mrf.mxu0 }
 0x4d8   :  { %v4166_v19 = vadd.f32 %v4157_v54, %v4057_v27  ;;  %v4167_v12 = vadd.f32 %v4091_v60, %v3991_v11  ;;  %v4114_v31 = vpop.f32.mrf.mxu1 }
 0x4d9   :  { %v4168_v47 = vadd.f32 %v4114_v31, %v4014_v30 }
 0x4da   :  { %5983 = vmatmul.msk.f32.gmra.mxu0 %vm353_vm4, %v5187_v22 }
 0x4db   :  { %5986 = vmatmul.msk.f32.gmra.mxu1 %vm353_vm4, %v5187_v22  ;;  %5989 = vmatmul.msk.f32.gmra.mxu2 %vm353_vm4, %v5187_v22 }
 0x4dc   :  { %5992 = vmatmul.msk.f32.gmra.mxu3 %vm353_vm4, %v5187_v22 }
 0x4de   :  { %v4137_v55 = vpop.f32.mrf.mxu2 }
 0x4df   :  { %v4169_v6 = vadd.f32 %v4137_v55, %v4037_v43  ;;  %v4160_v2 = vpop.f32.mrf.mxu3  ;;  %v4197_v45 = vpop.f32.mrf.mxu0 }
 0x4e0   :  { %v4170_v62 = vadd.f32 %v4160_v2, %v4060_v0  ;;  %v8069_v23 = vadd.f32 %v4197_v45, %v4163_v20  ;;  %v4220_v26 = vpop.f32.mrf.mxu1 }
 0x4e1   :  { %v8073_v28 = vadd.f32 %v4220_v26, %v4164_v33 }
 0x4e6   :  { %v4243_v10 = vpop.f32.mrf.mxu2 }
 0x4e7   :  { %v8077_v44 = vadd.f32 %v4243_v10, %v4165_v1  ;;  %v4266_v41 = vpop.f32.mrf.mxu3  ;;  %v4200_v25 = vpop.f32.mrf.mxu0 }
 0x4e8   :  { %v8079_v29 = vadd.f32 %v4266_v41, %v4166_v19  ;;  %v8081_v52 = vadd.f32 %v4200_v25, %v4167_v12  ;;  %v4223_v18 = vpop.f32.mrf.mxu1 }
 0x4e9   :  { %v8083_v63 = vadd.f32 %v4223_v18, %v4168_v47 }
 0x4ea   :  { %v3636_v36 = vpop.xlane.xlu2 %3635 }
 0x4eb   :  { %v3638_v37 = vmul.f32 %v3636_v36, %v8985_v59 }
 0x4ed   :  { %v8087_v34 = vsub.f32 %v7860_v3, %v3638_v37  ;;  %v8090_v35 = vsub.f32 %v7862_v38, %v3638_v37  ;;  %v8093_v17 = vsub.f32 %v7875_v15, %v3638_v37  ;;  %v8100_v40 = vsub.f32 %v7885_v7, %v3638_v37 }
 0x4ee   :  { %v4246_v16 = vpop.f32.mrf.mxu2 }
 0x4ef   :  { %v8097_v21 = vadd.f32 %v4246_v16, %v4169_v6  ;;  %v4269_v27 = vpop.f32.mrf.mxu3  ;;  %v4306_v11 = vpop.f32.mrf.mxu0  ;;  %v3651_v3 = vmul.f32 %v8087_v34, %v8087_v34  ;;  %v3652_v38 = vmul.f32 %v8090_v35, %v8090_v35  ;;  %v3653_v9 = vmul.f32 %v8093_v17, %v8093_v17 }
 0x4f0   :  { %v8106_v30 = vadd.f32 %v4269_v27, %v4170_v62  ;;  %v4329_v15 = vpop.f32.mrf.mxu1  ;;  %v3654_v4 = vmul.f32 %v8100_v40, %v8100_v40 }
 0x4f1   :  { %v3660_v43 = vadd.f32 %v3652_v38, %v3651_v3 }
 0x4f3   :  { %v3661_v56 = vadd.f32 %v3660_v43, %v3653_v9 }
 0x4f5   :  { %v3662_v42 = vadd.f32 %v3661_v56, %v3654_v4 }
 0x4f6   :  { %v4352_v7 = vpop.f32.mrf.mxu2 }
 0x4f7   :  { %v4375_v0 = vpop.f32.mrf.mxu3  ;;  %3663 = vadd.xlane.f32.xlu1 %v3662_v42  ;;  %v4309_v20 = vpop.f32.mrf.mxu0  ;;  %v4383_v50 = vadd.f32 %v4352_v7, %v8077_v44 }
 0x4f8   :  { %v4332_v58 = vpop.f32.mrf.mxu1  ;;  %v4385_v39 = vadd.f32 %v4309_v20, %v8081_v52  ;;  %v4830_v7 = vpop.permute.xlu0 %4829 }
 0x4f9   :  { %v3631_v33 = vpop.xlane.xlu1 %3630 }
 0x4fa   :  { %v3637_v46 = vmul.f32 %v3631_v33, %v8985_v59 }
 0x4fc   :  { %v8114_v1 = vsub.f32 %v7912_v53, %v3637_v46  ;;  %v8117_v54 = vsub.f32 %v7914_v24, %v3637_v46  ;;  %v8120_v60 = vsub.f32 %v7931_v8, %v3637_v46  ;;  %v8125_v19 = vsub.f32 %v7939_v14, %v3637_v46 }
 0x4fe   :  { %8986 = vst [vmem:[#allocation11_spill] sm:$0xff] %v8114_v1  ;;  %v8122_v22 = vpop.f32.mrf.mxu2  ;;  %v3647_v12 = vmul.f32 %v8114_v1, %v8114_v1  ;;  %v3648_v31 = vmul.f32 %v8117_v54, %v8117_v54  ;;  %v3649_v24 = vmul.f32 %v8120_v60, %v8120_v60  ;;  %v3650_v6 = vmul.f32 %v8125_v19, %v8125_v19 }
 0x4ff   :  { %8987 = vst [vmem:[#allocation5_spill] sm:$0xff] %v8117_v54  ;;  %v8131_v47 = vpop.f32.mrf.mxu3  ;;  %v4415_v53 = vpop.f32.mrf.mxu0  ;;  %v4384_v1 = vadd.f32 %v4375_v0, %v8079_v29  ;;  %v4387_v52 = vadd.f32 %v8122_v22, %v8097_v21 }
 0x500   :  { %8988 = vst [vmem:[#allocation39_spill] sm:$0xff] %v8120_v60  ;;  %v4438_v55 = vpop.f32.mrf.mxu1  ;;  %v3655_v8 = vadd.f32 %v3648_v31, %v3647_v12  ;;  %v4381_v12 = vadd.f32 %v4306_v11, %v8069_v23  ;;  %v4382_v31 = vadd.f32 %v4329_v15, %v8073_v28  ;;  %v4386_v23 = vadd.f32 %v4332_v58, %v8083_v63 }
 0x501   :  { %8989 = vst [vmem:[#allocation44_spill] sm:$0xff] %v8125_v19  ;;  %v4388_v58 = vadd.f32 %v8131_v47, %v8106_v30 }
 0x502   :  { %v3656_v2 = vadd.f32 %v3655_v8, %v3649_v24  ;;  %v4490_v24 = vadd.f32 %v4415_v53, %v4381_v12  ;;  %v4491_v8 = vadd.f32 %v4438_v55, %v4382_v31 }
 0x504   :  { %v3657_v14 = vadd.f32 %v3656_v2, %v3650_v6 }
 0x506   :  { %v4461_v45 = vpop.f32.mrf.mxu2  ;;  %3658 = vadd.xlane.f32.xlu0 %v3657_v14 }
 0x507   :  { %v4484_v62 = vpop.f32.mrf.mxu3  ;;  %v4418_v26 = vpop.f32.mrf.mxu0  ;;  %v4492_v11 = vadd.f32 %v4461_v45, %v4383_v50 }
 0x508   :  { %v4441_v10 = vpop.f32.mrf.mxu1  ;;  %v4493_v53 = vadd.f32 %v4484_v62, %v4384_v1  ;;  %v4494_v55 = vadd.f32 %v4418_v26, %v4385_v39 }
 0x50e   :  { %v4464_v41 = vpop.f32.mrf.mxu2 }
 0x50f   :  { %v4487_v25 = vpop.f32.mrf.mxu3  ;;  %v4524_v18 = vpop.f32.mrf.mxu0  ;;  %v4496_v1 = vadd.f32 %v4464_v41, %v4387_v52 }
 0x510   :  { %v4547_v36 = vpop.f32.mrf.mxu1  ;;  %v4599_v6 = vadd.f32 %v4524_v18, %v4490_v24  ;;  %v4495_v18 = vadd.f32 %v4441_v10, %v4386_v23  ;;  %v4497_v22 = vadd.f32 %v4487_v25, %v4388_v58  ;;  %v8214_v58 = vld [vmem:[%s8757_s15] sm:$0xff] }
 0x511   :  { %v4600_v2 = vadd.f32 %v4547_v36, %v4491_v8 }
 0x516   :  { %v4570_v37 = vpop.f32.mrf.mxu2 }
 0x517   :  { %v4593_v16 = vpop.f32.mrf.mxu3  ;;  %v4527_v27 = vpop.f32.mrf.mxu0  ;;  %v4601_v36 = vadd.f32 %v4570_v37, %v4492_v11 }
 0x518   :  { %v4550_v3 = vpop.f32.mrf.mxu1  ;;  %v4602_v12 = vadd.f32 %v4593_v16, %v4493_v53  ;;  %v4603_v44 = vadd.f32 %v4527_v27, %v4494_v55 }
 0x51e   :  { %v4573_v38 = vpop.f32.mrf.mxu2 }
 0x51f   :  { %v4596_v9 = vpop.f32.mrf.mxu3  ;;  %v4633_v43 = vpop.f32.mrf.mxu0  ;;  %v4605_v10 = vadd.f32 %v4573_v38, %v4496_v1 }
 0x520   :  { %v4656_v4 = vpop.f32.mrf.mxu1  ;;  %v4708_v48 = vadd.f32 %v4633_v43, %v4599_v6  ;;  %v4604_v43 = vadd.f32 %v4550_v3, %v4495_v18  ;;  %v4606_v27 = vadd.f32 %v4596_v9, %v4497_v22 }
 0x521   :  { %v4709_v19 = vadd.f32 %v4656_v4, %v4600_v2 }
 0x526   :  { %v4679_v56 = vpop.f32.mrf.mxu2 }
 0x527   :  { %v4702_v42 = vpop.f32.mrf.mxu3  ;;  %v4636_v33 = vpop.f32.mrf.mxu0  ;;  %v4710_v4 = vadd.f32 %v4679_v56, %v4601_v36 }
 0x528   :  { %v4659_v46 = vpop.f32.mrf.mxu1  ;;  %v4711_v63 = vadd.f32 %v4702_v42, %v4602_v12 }
 0x52e   :  { %v4682_v14 = vpop.f32.mrf.mxu2 }
 0x52f   :  { %v4705_v60 = vpop.f32.mrf.mxu3  ;;  %v4742_v54 = vpop.f32.mrf.mxu0  ;;  %v4714_v3 = vadd.f32 %v4682_v14, %v4605_v10 }
 0x530   :  { %v4765_v5 = vpop.f32.mrf.mxu1  ;;  %v4817_v28 = vadd.f32 %v4742_v54, %v4708_v48  ;;  %v4712_v48 = vadd.f32 %v4636_v33, %v4603_v44  ;;  %v4715_v56 = vadd.f32 %v4705_v60, %v4606_v27 }
 0x531   :  { %v4818_v15 = vadd.f32 %v4765_v5, %v4709_v19  ;;  %v4713_v5 = vadd.f32 %v4659_v46, %v4604_v43 }
 0x532   :  { %v8143_v31 = vadd.f32 %v4830_v7, %v4817_v28 }
 0x533   :  { %v8145_v29 = vadd.f32 %v4830_v7, %v4818_v15 }
 0x535   :  { %v4845_v62 = vadd.f32 %v8145_v29, %v8143_v31 }
 0x536   :  { %v4788_v50 = vpop.f32.mrf.mxu2 }
 0x537   :  { %v4819_v0 = vadd.f32 %v4788_v50, %v4710_v4  ;;  %v4811_v39 = vpop.f32.mrf.mxu3  ;;  %v4745_v20 = vpop.f32.mrf.mxu0 }
 0x538   :  { %v4820_v54 = vadd.f32 %v4811_v39, %v4711_v63  ;;  %v4768_v19 = vpop.f32.mrf.mxu1  ;;  %v4821_v26 = vadd.f32 %v4745_v20, %v4712_v48 }
 0x539   :  { %v8151_v45 = vadd.f32 %v4830_v7, %v4819_v0  ;;  %v4822_v21 = vadd.f32 %v4768_v19, %v4713_v5 }
 0x53a   :  { %v8156_v16 = vadd.f32 %v4830_v7, %v4820_v54  ;;  %v8159_v30 = vadd.f32 %v8052_v13, %v4821_v26 }
 0x53b   :  { %v4846_v37 = vadd.f32 %v4845_v62, %v8151_v45  ;;  %v8162_v47 = vadd.f32 %v8052_v13, %v4822_v21 }
 0x53d   :  { %v4847_v41 = vadd.f32 %v4846_v37, %v8156_v16  ;;  %v4850_v9 = vadd.f32 %v8162_v47, %v8159_v30  ;;  %v8227_v37 = vpop.permute.xlu0 %4932 }
 0x53e   :  { %v4791_v42 = vpop.f32.mrf.mxu2 }
 0x53f   :  { %v4823_v33 = vadd.f32 %v4791_v42, %v4714_v3  ;;  %v4814_v46 = vpop.f32.mrf.mxu3  ;;  %4848 = vadd.xlane.f32.xlu2 %v4847_v41  ;;  %v5001_v25 = vpop.f32.mrf.mxu0 }
 0x540   :  { %v4824_v38 = vadd.f32 %v4814_v46, %v4715_v56  ;;  %v5024_v24 = vpop.f32.mrf.mxu1  ;;  %v8175_v60 = vadd.f32 %v5001_v25, %v8058_v61 }
 0x541   :  { %v8168_v8 = vadd.f32 %v8052_v13, %v4823_v33  ;;  %v8178_v14 = vadd.f32 %v5024_v24, %v8058_v61 }
 0x542   :  { %v8172_v2 = vadd.f32 %v8052_v13, %v4824_v38 }
 0x543   :  { %v4851_v6 = vadd.f32 %v4850_v9, %v8168_v8  ;;  %v5076_v28 = vadd.f32 %v8178_v14, %v8175_v60 }
 0x545   :  { %v4852_v23 = vadd.f32 %v4851_v6, %v8172_v2 }
 0x546   :  { %v5047_v11 = vpop.f32.mrf.mxu2 }
 0x547   :  { %v8184_v15 = vadd.f32 %v5047_v11, %v8058_v61  ;;  %v5070_v53 = vpop.f32.mrf.mxu3  ;;  %4853 = vadd.xlane.f32.xlu1 %v4852_v23  ;;  %v5004_v55 = vpop.f32.mrf.mxu0 }
 0x548   :  { %v8187_v13 = vadd.f32 %v5004_v55, %v8095_v57  ;;  %v5027_v18 = vpop.f32.mrf.mxu1  ;;  %v8191_v12 = vadd.f32 %v5070_v53, %v8058_v61 }
 0x549   :  { %v5077_v36 = vadd.f32 %v5076_v28, %v8184_v15  ;;  %v8194_v44 = vadd.f32 %v5027_v18, %v8095_v57 }
 0x54a   :  { %v5081_v43 = vsel %vm215_vm0, %v8187_v13, 0.0 }
 0x54b   :  { %v5078_v7 = vadd.f32 %v5077_v36, %v8191_v12  ;;  %v5082_v4 = vsel %vm215_vm0, %v8194_v44, 0.0 }
 0x54c   :  { %v5083_v52 = vadd.f32 %v5082_v4, %v5081_v43  ;;  %v3703_v43 = vpop.permute.xlu0 %3702 }
 0x54d   :  { %5079 = vadd.xlane.f32.xlu2 %v5078_v7 }
 0x54e   :  { %v5050_v63 = vpop.f32.mrf.mxu2 }
 0x54f   :  { %v8202_v50 = vadd.f32 %v5050_v63, %v8095_v57  ;;  %v5073_v48 = vpop.f32.mrf.mxu3  ;;  %v8219_v19 = vpop.f32.mrf.mxu0 }
 0x550   :  { %v8205_v61 = vadd.f32 %v5073_v48, %v8095_v57  ;;  %v8221_v62 = vpop.f32.mrf.mxu1 }
 0x551   :  { %v5084_v5 = vsel %vm215_vm0, %v8202_v50, 0.0 }
 0x552   :  { %v5085_v0 = vadd.f32 %v5084_v5, %v5083_v52  ;;  %v5086_v39 = vsel %vm215_vm0, %v8205_v61, 0.0 }
 0x554   :  { %v5087_v20 = vadd.f32 %v5086_v39, %v5085_v0  ;;  %v8285_v39 = vld [vmem:[%s8756_s13 + $0x8] sm:$0xf] }
 0x556   :  { %5088 = vadd.xlane.f32.xlu0 %v5087_v20  ;;  %v8223_v26 = vpop.f32.mrf.mxu2 }
 0x557   :  { %v8225_v22 = vpop.f32.mrf.mxu3  ;;  %v5239_v27 = vpop.f32.mrf.mxu0 }
 0x558   :  { %v5262_v3 = vpop.f32.mrf.mxu1  ;;  %v8230_v42 = vadd.f32 %v5239_v27, %v8071_v32 }
 0x559   :  { %v8233_v33 = vadd.f32 %v5262_v3, %v8071_v32 }
 0x55a   :  { %v5316_v24 = vsel %vm215_vm0, %v8230_v42, 0.0 }
 0x55b   :  { %v5317_v9 = vsel %vm215_vm0, %v8233_v33, 0.0 }
 0x55c   :  { %v5318_v36 = vadd.f32 %v5317_v9, %v5316_v24 }
 0x55e   :  { %v5285_v41 = vpop.f32.mrf.mxu2 }
 0x55f   :  { %v8236_v46 = vadd.f32 %v5285_v41, %v8071_v32  ;;  %v5308_v6 = vpop.f32.mrf.mxu3 }
 0x560   :  { %5190 = vperm.xlu1 %6022, %v8214_v58   ;;  %v8249_v7 = vadd.f32 %v5308_v6, %v8071_v32 }
 0x561   :  { %v5319_v23 = vsel %vm215_vm0, %v8236_v46, 0.0 }
 0x562   :  { %v5320_v5 = vadd.f32 %v5319_v23, %v5318_v36  ;;  %v5321_v32 = vsel %vm215_vm0, %v8249_v7, 0.0 }
 0x568   :  { %6023 = vset.pattern.permute.xlu1 %v8937_v51 }
 0x56a   :  { %v3664_v57 = vpop.xlane.xlu1 %3663 }
 0x56b   :  { %v3666_v1 = vmul.f32 %v3664_v57, %v8985_v59 }
 0x56d   :  { %v3668_v54 = vadd.f32 1e-05, %v3666_v1  ;;  %v8292_v1 = vld [vmem:[%s8757_s15 + $0x8] sm:$0xf] }
 0x56e   :  { %8991 = vst [vmem:[#allocation45_spill] sm:$0xff] %v8292_v1 }
 0x56f   :  { %6038 = vrsqrt.f32 %v3668_v54  ;;  %vm3685_vm2 = vweird.f32 %v3668_v54 }
 0x575   :  { %v6039_v21 = vpop.eup %6038 }
 0x576   :  { %v3680_v10 = vmul.f32 %v6039_v21, %v3668_v54  ;;  %vm3686_vm1 = vweird.f32 %v6039_v21 }
 0x577   :  { %vm3687_vm3 = vmor %vm3685_vm2, %vm3686_vm1  ;;  %vm5472_vm2 = vcmask 7168  }
 0x578   :  { %v3681_v51 = vmul.f32 %v6039_v21, %v3680_v10 }
 0x57a   :  { %v3682_v56 = vmul.f32 0.5, %v3681_v51 }
 0x57c   :  { %v3683_v25 = vsub.f32 1.5, %v3682_v56  ;;  %v8992_v56 = vmov 2  }
 0x57e   :  { %v3684_v38 = vmul.f32 %v6039_v21, %v3683_v25 }
 0x580   :  { %v3688_v11 = vsel %vm3687_vm3, %v6039_v21, %v3684_v38 }
 0x581   :  { %v3693_v28 = vmul.f32 %v3688_v11, %v8087_v34  ;;  %v3694_v53 = vmul.f32 %v3688_v11, %v8090_v35  ;;  %v3695_v55 = vmul.f32 %v3688_v11, %v8093_v17  ;;  %v3696_v18 = vmul.f32 %v3688_v11, %v8100_v40  ;;  %v6060_v11 = vld [vmem:[%s8756_s13] sm:$0xff] }
 0x582   :  { %v5322_v40 = vadd.f32 %v5321_v32, %v5320_v5  ;;  %v6062_v5 = vld [vmem:[%s8755_s11 + $0x8] sm:$0xff] }
 0x583   :  { %v3709_v4 = vmul.f32 %v3703_v43, %v3693_v28  ;;  %v3710_v52 = vmul.f32 %v3703_v43, %v3694_v53  ;;  %v3711_v63 = vmul.f32 %v3703_v43, %v3695_v55  ;;  %v3712_v48 = vmul.f32 %v3703_v43, %v3696_v18 }
 0x585   :  { %v8252_v0 = vadd.f32 %v8064_v49, %v3709_v4  ;;  %v8255_v34 = vadd.f32 %v8064_v49, %v3710_v52  ;;  %v8258_v35 = vadd.f32 %v8064_v49, %v3711_v63  ;;  %v8261_v17 = vadd.f32 %v8064_v49, %v3712_v48  ;;  %v8990_v49 = vld [vmem:[#allocation18_spill] sm:$0xff] }
 0x587   :  { %5559 = vst [vmem:[%s8760_s17] sm:$0xff] %v8252_v0 }
 0x588   :  { %5560 = vst [vmem:[%s8760_s17 + $0x8] sm:$0xff] %v8255_v34 }
 0x589   :  { %5561 = vst [vmem:[%s8760_s17 + $0x10] sm:$0xff] %v8258_v35 }
 0x58a   :  { %5562 = vst [vmem:[%s8760_s17 + $0x18] sm:$0xff] %v8261_v17  ;;  %5323 = vadd.xlane.f32.xlu1 %v5322_v40  ;;  %s6076_s17 = smov 4  }
 0x5a3   :  { %4916 = vperm.xlu1 %6023, %v8990_v49  }
 0x5ab   :  { %5159 = vperm.xlu1 %6023, %v8285_v39  }
 0x5b2   :  { %v4849_v20 = vpop.xlane.xlu2 %4848 }
 0x5b3   :  { %v4855_v57 = vmul.f32 %v4849_v20, %v8985_v59  ;;  %5394 = vperm.xlu1 %6023, %v8292_v1  }
 0x5b5   :  { %v8296_v54 = vsub.f32 %v8143_v31, %v4855_v57  ;;  %v8299_v21 = vsub.f32 %v8145_v29, %v4855_v57  ;;  %v8302_v10 = vsub.f32 %v8151_v45, %v4855_v57  ;;  %v8305_v27 = vsub.f32 %v8156_v16, %v4855_v57 }
 0x5b7   :  { %v4865_v3 = vmul.f32 %v8296_v54, %v8296_v54  ;;  %v4866_v51 = vmul.f32 %v8299_v21, %v8299_v21  ;;  %v4867_v41 = vmul.f32 %v8302_v10, %v8302_v10  ;;  %v4868_v29 = vmul.f32 %v8305_v27, %v8305_v27 }
 0x5b9   :  { %v4873_v31 = vadd.f32 %v4866_v51, %v4865_v3 }
 0x5ba   :  { %v4854_v25 = vpop.xlane.xlu1 %4853 }
 0x5bb   :  { %6027 = vset.pattern.permute.xlu1 %v8992_v56  ;;  %v4874_v45 = vadd.f32 %v4873_v31, %v4867_v41 }
 0x5bc   :  { %5406 = vperm.xlu1 %6027, %v8214_v58  }
 0x5bd   :  { %v4875_v16 = vadd.f32 %v4874_v45, %v4868_v29 }
 0x5bf   :  { %4876 = vadd.xlane.f32.xlu0 %v4875_v16 }
 0x5c0   :  { %v5080_v38 = vpop.xlane.xlu2 %5079 }
 0x5c1   :  { %v5090_v24 = vmul.f32 %v5080_v38, %v8985_v59 }
 0x5c3   :  { %v8328_v28 = vsub.f32 %v8175_v60, %v5090_v24  ;;  %v8331_v53 = vsub.f32 %v8178_v14, %v5090_v24  ;;  %v8348_v43 = vsub.f32 %v8184_v15, %v5090_v24  ;;  %v6061_v15 = vld [vmem:[%s8753_s9] sm:$0xff] }
 0x5c5   :  { %v5100_v36 = vmul.f32 %v8328_v28, %v8328_v28  ;;  %v5101_v60 = vmul.f32 %v8331_v53, %v8331_v53  ;;  %v5102_v4 = vmul.f32 %v8348_v43, %v8348_v43 }
 0x5d2   :  { %v5191_v9 = vpop.permute.xlu1 %5190 }
 0x5d3   :  { %v8319_v6 = vadd.f32 %v8219_v19, %v5191_v9  ;;  %v8322_v23 = vadd.f32 %v8221_v62, %v5191_v9  ;;  %5155 = vperm.xlu0 %6020, %v6060_v11   ;;  %v8334_v55 = vadd.f32 %v8223_v26, %v5191_v9  ;;  %v8339_v62 = vadd.f32 %v8225_v22, %v5191_v9 }
 0x5d4   :  { %v5108_v26 = vadd.f32 %v5101_v60, %v5100_v36  ;;  %v8352_v22 = vsub.f32 %v8191_v12, %v5090_v24  ;;  %v4856_v12 = vmul.f32 %v4854_v25, %v8985_v59 }
 0x5d5   :  { %v5311_v19 = vadd.f32 %v8322_v23, %v8319_v6 }
 0x5d6   :  { %v5109_v52 = vadd.f32 %v5108_v26, %v5102_v4  ;;  %v5103_v63 = vmul.f32 %v8352_v22, %v8352_v22  ;;  %v8368_v32 = vsub.f32 %v8159_v30, %v4856_v12  ;;  %v8371_v40 = vsub.f32 %v8162_v47, %v4856_v12 }
 0x5d7   :  { %v5312_v18 = vadd.f32 %v5311_v19, %v8334_v55  ;;  %v8378_v57 = vsub.f32 %v8168_v8, %v4856_v12  ;;  %v8381_v51 = vsub.f32 %v8172_v2, %v4856_v12 }
 0x5d8   :  { %v5110_v48 = vadd.f32 %v5109_v52, %v5103_v63  ;;  %v4869_v49 = vmul.f32 %v8368_v32, %v8368_v32  ;;  %v4870_v20 = vmul.f32 %v8371_v40, %v8371_v40 }
 0x5d9   :  { %v5313_v14 = vadd.f32 %v5312_v18, %v8339_v62  ;;  %v4871_v30 = vmul.f32 %v8378_v57, %v8378_v57  ;;  %v4872_v47 = vmul.f32 %v8381_v51, %v8381_v51 }
 0x5da   :  { %v4878_v3 = vadd.f32 %v4870_v20, %v4869_v49 }
 0x5db   :  { %5314 = vadd.xlane.f32.xlu2 %v5313_v14  ;;  %6025 = vset.pattern.permute.xlu0 %v8992_v56 }
 0x5dc   :  { %5171 = vperm.xlu0 %6025, %v6060_v11   ;;  %v4879_v41 = vadd.f32 %v4878_v3, %v4871_v30 }
 0x5de   :  { %v4880_v29 = vadd.f32 %v4879_v41, %v4872_v47 }
 0x5e6   :  { %5111 = vadd.xlane.f32.xlu1 %v5110_v48 }
 0x5f3   :  { %3698 = vperm.xlu2 %6024, %v6061_v15  }
 0x5fb   :  { %4920 = vperm.xlu2 %6024, %v6062_v5  }
 0x5fd   :  { %v8387_v31 = vpop.xlane.xlu1 %5323 }
 0x603   :  { %5390 = vperm.xlu2 %6024, %v8214_v58   ;;  %v3659_v58 = vpop.xlane.xlu0 %3658 }
 0x604   :  { %v3665_v8 = vmul.f32 %v3659_v58, %v8985_v59 }
 0x606   :  { %v3667_v45 = vadd.f32 1e-05, %v3665_v8  ;;  %v8996_v8 = vld [vmem:[#allocation11_spill] sm:$0xff] }
 0x608   :  { %6040 = vrsqrt.f32 %v3667_v45  ;;  %vm3675_vm9 = vweird.f32 %v3667_v45 }
 0x60b   :  { %6026 = vset.pattern.permute.xlu2 %v8992_v56  ;;  %v8389_v56 = vpop.xlane.xlu0 %5088 }
 0x60e   :  { %v6041_v24 = vpop.eup %6040 }
 0x60f   :  { %v3670_v19 = vmul.f32 %v6041_v24, %v3667_v45  ;;  %vm3676_vm8 = vweird.f32 %v6041_v24  ;;  %v8997_v45 = vld [vmem:[#allocation5_spill] sm:$0xff] }
 0x610   :  { %vm3677_vm12 = vmor %vm3675_vm9, %vm3676_vm8 }
 0x611   :  { %v3671_v60 = vmul.f32 %v6041_v24, %v3670_v19 }
 0x613   :  { %v3672_v52 = vmul.f32 0.5, %v3671_v60 }
 0x615   :  { %v4917_v16 = vpop.permute.xlu1 %4916  ;;  %v3673_v20 = vsub.f32 1.5, %v3672_v52 }
 0x61d   :  { %v8393_v9 = vpop.permute.xlu1 %5159 }
 0x61e   :  { %8993 = vst [vmem:[#allocation15_spill] sm:$0xff] %v8393_v9 }
 0x625   :  { %v8396_v4 = vpop.permute.xlu1 %5394 }
 0x626   :  { %8994 = vst [vmem:[#allocation14_spill] sm:$0xff] %v8396_v4 }
 0x62c   :  { %4881 = vadd.xlane.f32.xlu2 %v4880_v29 }
 0x632   :  { %v4877_v25 = vpop.xlane.xlu0 %4876 }
 0x633   :  { %v4883_v2 = vmul.f32 %v4877_v25, %v8985_v59 }
 0x635   :  { %v4885_v38 = vadd.f32 1e-05, %v4883_v2  ;;  %v8998_v2 = vld [vmem:[#allocation39_spill] sm:$0xff] }
 0x637   :  { %6042 = vrsqrt.f32 %v4885_v38  ;;  %vm4893_vm6 = vweird.f32 %v4885_v38 }
 0x63d   :  { %v6043_v11 = vpop.eup %6042 }
 0x63e   :  { %v4888_v18 = vmul.f32 %v6043_v11, %v4885_v38  ;;  %vm4894_vm5 = vweird.f32 %v6043_v11 }
 0x63f   :  { %vm4895_vm7 = vmor %vm4893_vm6, %vm4894_vm5 }
 0x640   :  { %v4889_v36 = vmul.f32 %v6043_v11, %v4888_v18  ;;  %v8441_v18 = vld [vmem:[%s8762_s1] sm:$0xff] }
 0x641   :  { %v5430_v52 = vperm.slane %v8441_v18, 0 }
 0x642   :  { %v4890_v14 = vmul.f32 0.5, %v4889_v36 }
 0x644   :  { %v4891_v26 = vsub.f32 1.5, %v4890_v14  ;;  %5175 = vperm.xlu2 %6026, %v8285_v39  }
 0x646   :  { %v4892_v63 = vmul.f32 %v6043_v11, %v4891_v26 }
 0x648   :  { %v4896_v48 = vsel %vm4895_vm7, %v6043_v11, %v4892_v63  ;;  %v8999_v11 = vld [vmem:[#allocation44_spill] sm:$0xff]  ;;  %v9000_v63 = vld [vmem:[#allocation17_spill] sm:$0xff] }
 0x649   :  { %v4907_v15 = vmul.f32 %v4896_v48, %v8296_v54  ;;  %v4908_v5 = vmul.f32 %v4896_v48, %v8299_v21  ;;  %v4909_v12 = vmul.f32 %v4896_v48, %v8302_v10  ;;  %v4910_v49 = vmul.f32 %v4896_v48, %v8305_v27  ;;  %v8420_v27 = vpop.permute.xlu1 %5406 }
 0x64a   :  { %v3674_v54 = vmul.f32 %v6041_v24, %v3673_v20  ;;  %8995 = vst [vmem:[#allocation16_spill] sm:$0xff] %v8420_v27  ;;  %v5156_v27 = vpop.permute.xlu0 %5155 }
 0x64b   :  { %v4923_v58 = vmul.f32 %v4917_v16, %v4907_v15  ;;  %v4924_v3 = vmul.f32 %v4917_v16, %v4908_v5  ;;  %v4925_v30 = vmul.f32 %v4917_v16, %v4909_v12  ;;  %v4926_v39 = vmul.f32 %v4917_v16, %v4910_v49 }
 0x64c   :  { %v5431_v49 = vperm.slane %v8441_v18, 2 }
 0x64d   :  { %v8403_v41 = vadd.f32 %v8227_v37, %v4923_v58  ;;  %v8406_v47 = vadd.f32 %v8227_v37, %v4924_v3  ;;  %v8409_v29 = vadd.f32 %v8227_v37, %v4925_v30  ;;  %v8412_v21 = vadd.f32 %v8227_v37, %v4926_v39 }
 0x64e   :  { %v8414_v10 = vpop.xlane.xlu2 %5314  ;;  %v3678_v37 = vsel %vm3677_vm12, %v6041_v24, %v3674_v54  ;;  %v8470_v54 = vperm.slane %v5430_v52, 0 }
 0x64f   :  { %5563 = vst [vmem:[%s8761_s18] sm:$0xff] %v8403_v41  ;;  %v3689_v16 = vmul.f32 %v3678_v37, %v8996_v8  ;;  %v3690_v25 = vmul.f32 %v3678_v37, %v8997_v45  ;;  %v3691_v38 = vmul.f32 %v3678_v37, %v8998_v2  ;;  %v3692_v19 = vmul.f32 %v3678_v37, %v8999_v11 }
 0x650   :  { %5564 = vst [vmem:[%s8761_s18 + $0x8] sm:$0xff] %v8406_v47  ;;  %v8476_v37 = vperm.slane %v5431_v49, 0  ;;  %v5451_v11 = vperm.slane %v8441_v18, 1 }
 0x651   :  { %5565 = vst [vmem:[%s8761_s18 + $0x10] sm:$0xff] %v8409_v29 }
 0x652   :  { %5566 = vst [vmem:[%s8761_s18 + $0x18] sm:$0xff] %v8412_v21 }
 0x656   :  { %v3699_v36 = vpop.permute.xlu2 %3698 }
 0x657   :  { %v3705_v24 = vmul.f32 %v3699_v36, %v3689_v16  ;;  %v3706_v60 = vmul.f32 %v3699_v36, %v3690_v25  ;;  %v3707_v14 = vmul.f32 %v3699_v36, %v3691_v38  ;;  %v3708_v26 = vmul.f32 %v3699_v36, %v3692_v19 }
 0x658   :  { %v5432_v25 = vperm.slane %v8441_v18, 4 }
 0x659   :  { %v8445_v48 = vadd.f32 %v9000_v63, %v3705_v24  ;;  %v8448_v15 = vadd.f32 %v9000_v63, %v3706_v60  ;;  %v8451_v5 = vadd.f32 %v9000_v63, %v3707_v14  ;;  %v5112_v12 = vpop.xlane.xlu1 %5111  ;;  %v8455_v20 = vadd.f32 %v9000_v63, %v3708_v26 }
 0x65a   :  { %v5122_v58 = vmul.f32 %v5112_v12, %v8985_v59  ;;  %v5452_v24 = vperm.slane %v8441_v18, 3  ;;  %v5091_v60 = vmul.f32 %v8389_v56, %v8985_v59  ;;  %v5433_v14 = vperm.slane %v8441_v18, 6 }
 0x65b   :  { %v5474_v3 = vsub.f32 %v8252_v0, %v8445_v48  ;;  %v5475_v30 = vsub.f32 %v8255_v34, %v8448_v15  ;;  %5555 = vst [vmem:[%s8763_s16] sm:$0xff] %v8445_v48  ;;  %v5476_v8 = vsub.f32 %v8258_v35, %v8451_v5  ;;  %v5477_v19 = vsub.f32 %v8261_v17, %v8455_v20 }
 0x65c   :  { %5556 = vst [vmem:[%s8763_s16 + $0x8] sm:$0xff] %v8448_v15  ;;  %v5124_v39 = vadd.f32 1e-05, %v5122_v58  ;;  %v8494_v26 = vperm.slane %v5432_v25, 0  ;;  %v8496_v12 = vperm.slane %v5451_v11, 1  ;;  %v8505_v4 = vsub.f32 %v8194_v44, %v5091_v60 }
 0x65d   :  { %5557 = vst [vmem:[%s8763_s16 + $0x10] sm:$0xff] %v8451_v5  ;;  %v5478_v16 = vmul.f32 %v5474_v3, %v5474_v3  ;;  %v5479_v45 = vmul.f32 %v5475_v30, %v5475_v30  ;;  %v5480_v36 = vmul.f32 %v5476_v8, %v5476_v8  ;;  %v5481_v58 = vmul.f32 %v5477_v19, %v5477_v19 }
 0x65e   :  { %5558 = vst [vmem:[%s8763_s16 + $0x18] sm:$0xff] %v8455_v20  ;;  %6044 = vrsqrt.f32 %v5124_v39  ;;  %v8499_v30 = vperm.slane %v5452_v24, 1  ;;  %v8502_v8 = vsub.f32 %v8187_v13, %v5091_v60  ;;  %v8507_v56 = vperm.slane %v5433_v14, 0 }
 0x65f   :  { %v5482_v2 = vmul.f32 %v5478_v16, %v8470_v54  ;;  %v5483_v38 = vmul.f32 %v5479_v45, %v8476_v37  ;;  %v5484_v3 = vmul.f32 %v5480_v36, %v8494_v26  ;;  %9002 = vst [vmem:[#allocation20_spill] sm:$0xff] %v8505_v4  ;;  %v5453_v25 = vperm.slane %v8441_v18, 5 }
 0x660   :  { %9001 = vst [vmem:[#allocation13_spill] sm:$0xff] %v8502_v8  ;;  %v5491_v11 = vmul.f32 %v5478_v16, %v8496_v12  ;;  %v5492_v19 = vmul.f32 %v5479_v45, %v8499_v30  ;;  %v5485_v24 = vmul.f32 %v5481_v58, %v8507_v56  ;;  %v5104_v13 = vmul.f32 %v8502_v8, %v8502_v8 }
 0x661   :  { %v5486_v52 = vadd.f32 %v5483_v38, %v5482_v2  ;;  %v5105_v44 = vmul.f32 %v8505_v4, %v8505_v4  ;;  %v5454_v14 = vperm.slane %v8441_v18, 7  ;;  %v8518_v1 = vperm.slane %v5453_v25, 1 }
 0x662   :  { %v5495_v16 = vadd.f32 %v5492_v19, %v5491_v11  ;;  %v8521_v45 = vsub.f32 %v8202_v50, %v5091_v60  ;;  %vm5132_vm15 = vweird.f32 %v5124_v39  ;;  %v5113_v8 = vsel %vm215_vm0, %v5104_v13, 0.0 }
 0x663   :  { %v5487_v38 = vadd.f32 %v5486_v52, %v5484_v3  ;;  %v5114_v4 = vsel %vm215_vm0, %v5105_v44, 0.0  ;;  %v5325_v18 = vmul.f32 %v8414_v10, %v8985_v59  ;;  %v8528_v25 = vperm.slane %v5454_v14, 1 }
 0x664   :  { %v6045_v63 = vpop.eup %6044  ;;  %v8535_v19 = vsub.f32 %v8205_v61, %v5091_v60  ;;  %v5106_v10 = vmul.f32 %v8521_v45, %v8521_v45  ;;  %v5326_v61 = vmul.f32 %v8387_v31, %v8985_v59 }
 0x665   :  { %v5127_v49 = vmul.f32 %v6045_v63, %v5124_v39  ;;  %vm5133_vm13 = vweird.f32 %v6045_v63  ;;  %v5488_v52 = vadd.f32 %v5487_v38, %v5485_v24  ;;  %v5172_v24 = vpop.permute.xlu0 %5171  ;;  %v5494_v13 = vmul.f32 %v5481_v58, %v8528_v25 }
 0x666   :  { %vm5134_vm10 = vmor %vm5132_vm15, %vm5133_vm13 }
 0x667   :  { %v5128_v2 = vmul.f32 %v6045_v63, %v5127_v49 }
 0x669   :  { %v5129_v9 = vmul.f32 0.5, %v5128_v2  ;;  %v5493_v2 = vmul.f32 %v5480_v36, %v8518_v1 }
 0x66b   :  { %v5130_v49 = vsub.f32 1.5, %v5129_v9  ;;  %v5496_v38 = vadd.f32 %v5495_v16, %v5493_v2  ;;  %v8571_v2 = vsub.f32 %v8334_v55, %v5325_v18 }
 0x66d   :  { %v5131_v3 = vmul.f32 %v6045_v63, %v5130_v49  ;;  %5489 = vadd.xlane.f32.xlu2 %v5488_v52  ;;  %v5337_v55 = vmul.f32 %v8571_v2, %v8571_v2 }
 0x66f   :  { %v5135_v9 = vsel %vm5134_vm10, %v6045_v63, %v5131_v3  ;;  %v8565_v3 = vsub.f32 %v8233_v33, %v5326_v61  ;;  %vm5599_vm10 = vcmask 15360  }
 0x670   :  { %v5146_v50 = vmul.f32 %v5135_v9, %v8328_v28  ;;  %v5147_v11 = vmul.f32 %v5135_v9, %v8331_v53  ;;  %v5148_v39 = vmul.f32 %v5135_v9, %v8348_v43  ;;  %v5149_v36 = vmul.f32 %v5135_v9, %v8352_v22 }
 0x671   :  { %v8541_v28 = vsub.f32 %v8319_v6, %v5325_v18  ;;  %v8544_v53 = vsub.f32 %v8322_v23, %v5325_v18  ;;  %v5497_v43 = vadd.f32 %v5496_v38, %v5494_v13  ;;  %v5115_v22 = vadd.f32 %v5114_v4, %v5113_v8 }
 0x672   :  { %v5162_v63 = vmul.f32 %v5156_v27, %v5146_v50  ;;  %v5163_v44 = vmul.f32 %v5156_v27, %v5147_v11  ;;  %v5164_v14 = vmul.f32 %v5156_v27, %v5148_v39  ;;  %v5165_v49 = vmul.f32 %v5156_v27, %v5149_v36 }
 0x673   :  { %v5107_v6 = vmul.f32 %v8535_v19, %v8535_v19  ;;  %v5116_v23 = vsel %vm215_vm0, %v5106_v10, 0.0  ;;  %v5335_v31 = vmul.f32 %v8541_v28, %v8541_v28  ;;  %v5336_v27 = vmul.f32 %v8544_v53, %v8544_v53 }
 0x674   :  { %v5178_v60 = vadd.f32 %v5172_v24, %v5162_v63  ;;  %v5179_v58 = vadd.f32 %v5172_v24, %v5163_v44  ;;  %v5180_v52 = vadd.f32 %v5172_v24, %v5164_v14  ;;  %v5181_v16 = vadd.f32 %v5172_v24, %v5165_v49 }
 0x675   :  { %5498 = vadd.xlane.f32.xlu2 %v5497_v43  ;;  %v5117_v4 = vadd.f32 %v5116_v23, %v5115_v22  ;;  %v8562_v8 = vsub.f32 %v8230_v42, %v5326_v61  ;;  %v5118_v9 = vsel %vm215_vm0, %v5107_v6, 0.0  ;;  %v5343_v50 = vadd.f32 %v5336_v27, %v5335_v31 }
 0x676   :  { %5571 = vst [vmem:[%s8764_s20] sm:$0xff] %v5178_v60  ;;  %v5340_v33 = vmul.f32 %v8565_v3, %v8565_v3  ;;  %v8582_v11 = vsub.f32 %v8339_v62, %v5325_v18  ;;  %v8587_v39 = vsub.f32 %v8236_v46, %v5326_v61  ;;  %v5421_v36 = vsub.f32 %v8252_v0, %v8403_v41 }
 0x677   :  { %5572 = vst [vmem:[%s8764_s20 + $0x8] sm:$0xff] %v5179_v58  ;;  %v5119_v38 = vadd.f32 %v5118_v9, %v5117_v4  ;;  %v5339_v42 = vmul.f32 %v8562_v8, %v8562_v8  ;;  %v5422_v24 = vsub.f32 %v8255_v34, %v8406_v47  ;;  %v5344_v13 = vadd.f32 %v5343_v50, %v5337_v55  ;;  %v4921_v4 = vpop.permute.xlu2 %4920 }
 0x678   :  { %5573 = vst [vmem:[%s8764_s20 + $0x10] sm:$0xff] %v5180_v52  ;;  %v5349_v63 = vsel %vm215_vm0, %v5340_v33, 0.0  ;;  %v5338_v62 = vmul.f32 %v8582_v11, %v8582_v11  ;;  %v8598_v18 = vsub.f32 %v8249_v7, %v5326_v61  ;;  %v5341_v46 = vmul.f32 %v8587_v39, %v8587_v39 }
 0x679   :  { %5574 = vst [vmem:[%s8764_s20 + $0x18] sm:$0xff] %v5181_v16  ;;  %v5348_v10 = vsel %vm215_vm0, %v5339_v42, 0.0  ;;  %v5425_v0 = vmul.f32 %v5421_v36, %v5421_v36  ;;  %v5426_v49 = vmul.f32 %v5422_v24, %v5422_v24  ;;  %v5423_v34 = vsub.f32 %v8258_v35, %v8409_v29 }
 0x67a   :  { %v5345_v44 = vadd.f32 %v5344_v13, %v5338_v62  ;;  %v5350_v14 = vadd.f32 %v5349_v63, %v5348_v10  ;;  %v5342_v43 = vmul.f32 %v8598_v18, %v8598_v18  ;;  %v5351_v22 = vsel %vm215_vm0, %v5341_v46, 0.0 }
 0x67b   :  { %v5442_v7 = vmul.f32 %v8470_v54, %v5425_v0  ;;  %v5443_v61 = vmul.f32 %v8476_v37, %v5426_v49  ;;  %v5424_v58 = vsub.f32 %v8261_v17, %v8412_v21  ;;  %v5427_v52 = vmul.f32 %v5423_v34, %v5423_v34 }
 0x67c   :  { %v5352_v60 = vadd.f32 %v5351_v22, %v5350_v14  ;;  %v5353_v16 = vsel %vm215_vm0, %v5342_v43, 0.0  ;;  %v5463_v9 = vmul.f32 %v8496_v12, %v5425_v0 }
 0x67d   :  { %5120 = vadd.xlane.f32.xlu2 %v5119_v38  ;;  %v5446_v23 = vadd.f32 %v5443_v61, %v5442_v7  ;;  %v5428_v35 = vmul.f32 %v5424_v58, %v5424_v58  ;;  %v5444_v31 = vmul.f32 %v8494_v26, %v5427_v52  ;;  %v5464_v38 = vmul.f32 %v8499_v30, %v5426_v49 }
 0x67e   :  { %v5354_v6 = vadd.f32 %v5353_v16, %v5352_v60  ;;  %v5465_v17 = vmul.f32 %v8518_v1, %v5427_v52 }
 0x67f   :  { %v5447_v27 = vadd.f32 %v5446_v23, %v5444_v31  ;;  %v5445_v50 = vmul.f32 %v8507_v56, %v5428_v35  ;;  %v5467_v33 = vadd.f32 %v5464_v38, %v5463_v9  ;;  %v8617_v55 = vpop.permute.xlu2 %5390  ;;  %v5466_v24 = vmul.f32 %v8528_v25, %v5428_v35  ;;  %v9003_v23 = vld [vmem:[#allocation3_spill] sm:$0xff] }
 0x681   :  { %v5448_v42 = vadd.f32 %v5447_v27, %v5445_v50  ;;  %v5468_v36 = vadd.f32 %v5467_v33, %v5465_v17 }
 0x683   :  { %v5469_v13 = vadd.f32 %v5468_v36, %v5466_v24 }
 0x685   :  { %5346 = vadd.xlane.f32.xlu2 %v5345_v44 }
 0x68d   :  { %5355 = vadd.xlane.f32.xlu2 %v5354_v6 }
 0x695   :  { %5449 = vadd.xlane.f32.xlu2 %v5448_v42 }
 0x69d   :  { %5470 = vadd.xlane.f32.xlu2 %v5469_v13 }
 0x69f   :  { %v4882_v10 = vpop.xlane.xlu2 %4881 }
 0x6a0   :  { %v4884_v63 = vmul.f32 %v4882_v10, %v8985_v59 }
 0x6a2   :  { %v4886_v62 = vadd.f32 1e-05, %v4884_v63 }
 0x6a4   :  { %6046 = vrsqrt.f32 %v4886_v62  ;;  %vm4903_vm11 = vweird.f32 %v4886_v62 }
 0x6aa   :  { %v6047_v46 = vpop.eup %6046 }
 0x6ab   :  { %v4898_v44 = vmul.f32 %v6047_v46, %v4886_v62  ;;  %vm4904_vm0 = vweird.f32 %v6047_v46 }
 0x6ac   :  { %vm4905_vm1 = vmor %vm4903_vm11, %vm4904_vm0  ;;  %vm5602_vm0 = vcmask 48128  }
 0x6ad   :  { %v4899_v14 = vmul.f32 %v6047_v46, %v4898_v44 }
 0x6af   :  { %v4900_v0 = vmul.f32 0.5, %v4899_v14 }
 0x6b1   :  { %v4901_v49 = vsub.f32 1.5, %v4900_v0 }
 0x6b3   :  { %v4902_v34 = vmul.f32 %v6047_v46, %v4901_v49 }
 0x6b5   :  { %v4906_v43 = vsel %vm4905_vm1, %v6047_v46, %v4902_v34 }
 0x6b6   :  { %v4911_v22 = vmul.f32 %v4906_v43, %v8368_v32  ;;  %v4912_v60 = vmul.f32 %v4906_v43, %v8371_v40  ;;  %v4913_v7 = vmul.f32 %v4906_v43, %v8378_v57  ;;  %v4914_v61 = vmul.f32 %v4906_v43, %v8381_v51 }
 0x6b8   :  { %v4927_v58 = vmul.f32 %v4921_v4, %v4911_v22  ;;  %v4928_v52 = vmul.f32 %v4921_v4, %v4912_v60  ;;  %v4929_v16 = vmul.f32 %v4921_v4, %v4913_v7  ;;  %v4930_v6 = vmul.f32 %v4921_v4, %v4914_v61 }
 0x6ba   :  { %v4943_v35 = vadd.f32 %v9003_v23, %v4927_v58  ;;  %v4944_v31 = vadd.f32 %v9003_v23, %v4928_v52  ;;  %v4945_v27 = vadd.f32 %v9003_v23, %v4929_v16  ;;  %v4946_v9 = vadd.f32 %v9003_v23, %v4930_v6 }
 0x6bc   :  { %5567 = vst [vmem:[%s8765_s19] sm:$0xff] %v4943_v35  ;;  %v5501_v32 = vsub.f32 %v4943_v35, %v8445_v48  ;;  %v5502_v40 = vsub.f32 %v4944_v31, %v8448_v15  ;;  %v5503_v57 = vsub.f32 %v4945_v27, %v8451_v5  ;;  %v5504_v51 = vsub.f32 %v4946_v9, %v8455_v20 }
 0x6bd   :  { %5568 = vst [vmem:[%s8765_s19 + $0x8] sm:$0xff] %v4944_v31  ;;  %v5528_v4 = vsub.f32 %v4943_v35, %v8403_v41  ;;  %v5529_v38 = vsub.f32 %v4944_v31, %v8406_v47  ;;  %v5530_v50 = vsub.f32 %v4945_v27, %v8409_v29  ;;  %v5531_v42 = vsub.f32 %v4946_v9, %v8412_v21  ;;  %v5176_v35 = vpop.permute.xlu2 %5175 }
 0x6be   :  { %v5505_v33 = vmul.f32 %v5501_v32, %v5501_v32  ;;  %v5506_v48 = vmul.f32 %v5502_v40, %v5502_v40  ;;  %v5507_v17 = vmul.f32 %v5503_v57, %v5503_v57  ;;  %5569 = vst [vmem:[%s8765_s19 + $0x10] sm:$0xff] %v4945_v27  ;;  %v5508_v41 = vmul.f32 %v5504_v51, %v5504_v51  ;;  %v9004_v27 = vld [vmem:[#allocation45_spill] sm:$0xff] }
 0x6bf   :  { %5570 = vst [vmem:[%s8765_s19 + $0x18] sm:$0xff] %v4946_v9  ;;  %v5532_v15 = vmul.f32 %v5528_v4, %v5528_v4  ;;  %v5533_v5 = vmul.f32 %v5529_v38, %v5529_v38  ;;  %v5534_v36 = vmul.f32 %v5530_v50, %v5530_v50  ;;  %v5535_v24 = vmul.f32 %v5531_v42, %v5531_v42  ;;  %s6075_s19 = smov 2  }
 0x6c0   :  { %v5518_v47 = vmul.f32 %v5505_v33, %v8496_v12  ;;  %v5519_v29 = vmul.f32 %v5506_v48, %v8499_v30  ;;  %v5509_v21 = vmul.f32 %v5505_v33, %v8470_v54  ;;  %v5510_v20 = vmul.f32 %v5506_v48, %v8476_v37 }
 0x6c1   :  { %v5520_v13 = vmul.f32 %v5507_v17, %v8518_v1  ;;  %v5511_v63 = vmul.f32 %v5507_v17, %v8494_v26  ;;  %v5536_v62 = vmul.f32 %v5532_v15, %v8470_v54  ;;  %v5537_v44 = vmul.f32 %v5533_v5, %v8476_v37 }
 0x6c2   :  { %v5522_v10 = vadd.f32 %v5519_v29, %v5518_v47  ;;  %v5513_v46 = vadd.f32 %v5510_v20, %v5509_v21  ;;  %v5545_v14 = vmul.f32 %v5532_v15, %v8496_v12  ;;  %v5546_v0 = vmul.f32 %v5533_v5, %v8499_v30  ;;  %v9005_v47 = vld [vmem:[#allocation13_spill] sm:$0xff]  ;;  %v9006_v21 = vld [vmem:[#allocation20_spill] sm:$0xff] }
 0x6c3   :  { %v5521_v49 = vmul.f32 %v5508_v41, %v8528_v25  ;;  %v5512_v43 = vmul.f32 %v5508_v41, %v8507_v56  ;;  %v5547_v60 = vmul.f32 %v5534_v36, %v8518_v1  ;;  %v5540_v52 = vadd.f32 %v5537_v44, %v5536_v62 }
 0x6c4   :  { %v5523_v34 = vadd.f32 %v5522_v10, %v5520_v13  ;;  %v5514_v22 = vadd.f32 %v5513_v46, %v5511_v63  ;;  %v5549_v7 = vadd.f32 %v5546_v0, %v5545_v14  ;;  %v5548_v54 = vmul.f32 %v5535_v24, %v8528_v25  ;;  %v9007_v63 = vld [vmem:[#allocation15_spill] sm:$0xff] }
 0x6c5   :  { %v5538_v37 = vmul.f32 %v5534_v36, %v8494_v26  ;;  %v5539_v6 = vmul.f32 %v5535_v24, %v8507_v56 }
 0x6c6   :  { %v5524_v61 = vadd.f32 %v5523_v34, %v5521_v49  ;;  %v5515_v58 = vadd.f32 %v5514_v22, %v5512_v43  ;;  %v5550_v16 = vadd.f32 %v5549_v7, %v5547_v60 }
 0x6c7   :  { %v5541_v30 = vadd.f32 %v5540_v52, %v5538_v37 }
 0x6c8   :  { %5525 = vadd.xlane.f32.xlu1 %v5524_v61  ;;  %5516 = vadd.xlane.f32.xlu2 %v5515_v58  ;;  %v8664_v12 = vadd.f32 %v5550_v16, %v5548_v54 }
 0x6c9   :  { %v5542_v23 = vadd.f32 %v5541_v30, %v5539_v6 }
 0x6d0   :  { %5543 = vadd.xlane.f32.xlu2 %v5542_v23 }
 0x6e0   :  { %v5490_v1 = vpop.xlane.xlu2 %5489 }
 0x6e8   :  { %v5499_v31 = vpop.xlane.xlu2 %5498  ;;  %5410 = vperm.xlu2 %6026, %v9004_v27  }
 0x6e9   :  { %v5500_v25 = vsel %vm5472_vm2, %v5490_v1, %v5499_v31 }
 0x6ea   :  { %5588 = vrot.lane.b32.xlu0 %v5500_v25, %s6075_s19 }
 0x6f0   :  { %v5121_v9 = vpop.xlane.xlu2 %5120 }
 0x6f1   :  { %v5123_v26 = vmul.f32 %v5121_v9, %v8985_v59 }
 0x6f3   :  { %v5125_v32 = vadd.f32 1e-05, %v5123_v26 }
 0x6f5   :  { %6048 = vrsqrt.f32 %v5125_v32  ;;  %vm5142_vm5 = vweird.f32 %v5125_v32 }
 0x6f8   :  { %v5347_v40 = vpop.xlane.xlu2 %5346 }
 0x6f9   :  { %v5357_v56 = vmul.f32 %v5347_v40, %v8985_v59 }
 0x6fb   :  { %v6049_v57 = vpop.eup %6048  ;;  %v5359_v51 = vadd.f32 1e-05, %v5357_v56 }
 0x6fc   :  { %v5137_v4 = vmul.f32 %v6049_v57, %v5125_v32  ;;  %vm5143_vm3 = vweird.f32 %v6049_v57 }
 0x6fd   :  { %6050 = vrsqrt.f32 %v5359_v51  ;;  %vm5144_vm6 = vmor %vm5142_vm5, %vm5143_vm3  ;;  %vm5367_vm8 = vweird.f32 %v5359_v51 }
 0x6fe   :  { %v5138_v38 = vmul.f32 %v6049_v57, %v5137_v4 }
 0x700   :  { %v5139_v50 = vmul.f32 0.5, %v5138_v38  ;;  %v5356_v42 = vpop.xlane.xlu2 %5355 }
 0x702   :  { %v5140_v33 = vsub.f32 1.5, %v5139_v50  ;;  %v9009_v50 = vld [vmem:[#allocation14_spill] sm:$0xff] }
 0x703   :  { %v6051_v48 = vpop.eup %6050 }
 0x704   :  { %v5141_v17 = vmul.f32 %v6049_v57, %v5140_v33  ;;  %v5362_v15 = vmul.f32 %v6051_v48, %v5359_v51  ;;  %vm5368_vm7 = vweird.f32 %v6051_v48 }
 0x705   :  { %vm5369_vm9 = vmor %vm5367_vm8, %vm5368_vm7 }
 0x706   :  { %v5145_v5 = vsel %vm5144_vm6, %v6049_v57, %v5141_v17  ;;  %v5363_v41 = vmul.f32 %v6051_v48, %v5362_v15 }
 0x707   :  { %v5150_v29 = vmul.f32 %v5145_v5, %v9005_v47  ;;  %v5151_v20 = vmul.f32 %v5145_v5, %v9006_v21  ;;  %v5152_v36 = vmul.f32 %v5145_v5, %v8521_v45  ;;  %v5153_v24 = vmul.f32 %v5145_v5, %v8535_v19 }
 0x708   :  { %v5364_v13 = vmul.f32 0.5, %v5363_v41  ;;  %v5450_v10 = vpop.xlane.xlu2 %5449 }
 0x709   :  { %v5166_v62 = vmul.f32 %v9007_v63, %v5150_v29  ;;  %v5167_v46 = vmul.f32 %v9007_v63, %v5151_v20  ;;  %v5168_v44 = vmul.f32 %v9007_v63, %v5152_v36  ;;  %v5169_v14 = vmul.f32 %v9007_v63, %v5153_v24 }
 0x70a   :  { %v5365_v0 = vsub.f32 1.5, %v5364_v13 }
 0x70b   :  { %v5182_v49 = vadd.f32 %v5176_v35, %v5166_v62  ;;  %v5183_v34 = vadd.f32 %v5176_v35, %v5167_v46  ;;  %v5184_v43 = vadd.f32 %v5176_v35, %v5168_v44  ;;  %v5185_v22 = vadd.f32 %v5176_v35, %v5169_v14 }
 0x70c   :  { %v5366_v60 = vmul.f32 %v6051_v48, %v5365_v0 }
 0x70d   :  { %5575 = vst [vmem:[%s8764_s20 + $0x20] sm:$0xf] %v5182_v49 }
 0x70e   :  { %5576 = vst [vmem:[%s8764_s20 + $0x28] sm:$0xf] %v5183_v34  ;;  %v5370_v45 = vsel %vm5369_vm9, %v6051_v48, %v5366_v60 }
 0x70f   :  { %5577 = vst [vmem:[%s8764_s20 + $0x30] sm:$0xf] %v5184_v43  ;;  %v5381_v19 = vmul.f32 %v5370_v45, %v8541_v28  ;;  %v5382_v7 = vmul.f32 %v5370_v45, %v8544_v53  ;;  %v5383_v61 = vmul.f32 %v5370_v45, %v8571_v2  ;;  %v5384_v58 = vmul.f32 %v5370_v45, %v8582_v11  ;;  %v9008_v53 = vld [vmem:[#allocation16_spill] sm:$0xff] }
 0x710   :  { %5578 = vst [vmem:[%s8764_s20 + $0x38] sm:$0xf] %v5185_v22  ;;  %v5471_v52 = vpop.xlane.xlu2 %5470 }
 0x711   :  { %v5397_v54 = vmul.f32 %v8617_v55, %v5381_v19  ;;  %v5398_v16 = vmul.f32 %v8617_v55, %v5382_v7  ;;  %v5399_v37 = vmul.f32 %v8617_v55, %v5383_v61  ;;  %v5400_v30 = vmul.f32 %v8617_v55, %v5384_v58 }
 0x712   :  { %v5473_v28 = vsel %vm5472_vm2, %v5450_v10, %v5471_v52  ;;  %v5358_v55 = vmul.f32 %v5356_v42, %v8985_v59 }
 0x713   :  { %v5413_v6 = vadd.f32 %v9008_v53, %v5397_v54  ;;  %v5414_v2 = vadd.f32 %v9008_v53, %v5398_v16  ;;  %v5415_v11 = vadd.f32 %v9008_v53, %v5399_v37  ;;  %v5416_v23 = vadd.f32 %v9008_v53, %v5400_v30 }
 0x714   :  { %5552 = vadd.xlane.f32.xlu0 %v8664_v12  ;;  %v5360_v35 = vadd.f32 1e-05, %v5358_v55 }
 0x715   :  { %5579 = vst [vmem:[%s8766_s21] sm:$0xff] %v5413_v6 }
 0x716   :  { %5580 = vst [vmem:[%s8766_s21 + $0x8] sm:$0xff] %v5414_v2  ;;  %6052 = vrsqrt.f32 %v5360_v35  ;;  %vm5377_vm13 = vweird.f32 %v5360_v35 }
 0x717   :  { %5581 = vst [vmem:[%s8766_s21 + $0x10] sm:$0xff] %v5415_v11 }
 0x718   :  { %5582 = vst [vmem:[%s8766_s21 + $0x18] sm:$0xff] %v5416_v23 }
 0x71c   :  { %v6053_v12 = vpop.eup %6052 }
 0x71d   :  { %v5372_v1 = vmul.f32 %v6053_v12, %v5360_v35  ;;  %vm5378_vm12 = vweird.f32 %v6053_v12 }
 0x71e   :  { %vm5379_vm15 = vmor %vm5377_vm13, %vm5378_vm12 }
 0x71f   :  { %v5373_v31 = vmul.f32 %v6053_v12, %v5372_v1 }
 0x721   :  { %v5374_v27 = vmul.f32 0.5, %v5373_v31 }
 0x723   :  { %v5375_v9 = vsub.f32 1.5, %v5374_v27 }
 0x725   :  { %v5376_v40 = vmul.f32 %v6053_v12, %v5375_v9 }
 0x727   :  { %v5380_v56 = vsel %vm5379_vm15, %v6053_v12, %v5376_v40 }
 0x728   :  { %v5385_v59 = vmul.f32 %v5380_v56, %v8562_v8  ;;  %v5386_v51 = vmul.f32 %v5380_v56, %v8565_v3  ;;  %v5387_v4 = vmul.f32 %v5380_v56, %v8587_v39  ;;  %v5388_v38 = vmul.f32 %v5380_v56, %v8598_v18 }
 0x72a   :  { %v5401_v42 = vmul.f32 %v9009_v50, %v5385_v59  ;;  %v5402_v33 = vmul.f32 %v9009_v50, %v5386_v51  ;;  %v5403_v48 = vmul.f32 %v9009_v50, %v5387_v4  ;;  %v5404_v17 = vmul.f32 %v9009_v50, %v5388_v38 }
 0x73b   :  { %v5526_v25 = vpop.xlane.xlu1 %5525  ;;  %v5517_v26 = vpop.xlane.xlu2 %5516 }
 0x73c   :  { %v5527_v32 = vsel %vm5472_vm2, %v5517_v26, %v5526_v25 }
 0x73d   :  { %5592 = vrot.lane.b32.xlu1 %v5527_v32, %s6076_s17 }
 0x743   :  { %v5544_v57 = vpop.xlane.xlu2 %5543 }
 0x74b   :  { %v5411_v15 = vpop.permute.xlu2 %5410 }
 0x74c   :  { %v5417_v5 = vadd.f32 %v5411_v15, %v5401_v42  ;;  %v5418_v41 = vadd.f32 %v5411_v15, %v5402_v33  ;;  %v5419_v47 = vadd.f32 %v5411_v15, %v5403_v48  ;;  %v5420_v29 = vadd.f32 %v5411_v15, %v5404_v17 }
 0x74e   :  { %5583 = vst [vmem:[%s8766_s21 + $0x20] sm:$0xf] %v5417_v5 }
 0x74f   :  { %5584 = vst [vmem:[%s8766_s21 + $0x28] sm:$0xf] %v5418_v41 }
 0x750   :  { %5585 = vst [vmem:[%s8766_s21 + $0x30] sm:$0xf] %v5419_v47 }
 0x751   :  { %5586 = vst [vmem:[%s8766_s21 + $0x38] sm:$0xf] %v5420_v29 }
 0x75c   :  { %v5589_v8 = vpop.permute.xlu0 %5588 }
 0x75d   :  { %v5600_v3 = vsel %vm5599_vm10, %v5473_v28, %v5589_v8 }
 0x787   :  { %v5553_v39 = vpop.xlane.xlu0 %5552 }
 0x788   :  { %v5554_v18 = vsel %vm5472_vm2, %v5544_v57, %v5553_v39 }
 0x789   :  { %5596 = vrot.lane.b32.xlu0 %v5554_v18, %s6077_s14 }
 0x7af   :  { %v5593_v21 = vpop.permute.xlu1 %5592 }
 0x7b0   :  { %v5601_v20 = vsel %vm353_vm4, %v5600_v3, %v5593_v21 }
 0x7fb   :  { %v5597_v36 = vpop.permute.xlu0 %5596 }
 0x7fc   :  { %v5603_v24 = vsel %vm5602_vm0, %v5601_v20, %v5597_v36 }
 0x7fd   :  { %5604 = vst.msk [vmem:[%s8767_s22] sm:$0xff] %vm2647_vm14, %v5603_v24 }

</bundles_post_ra>
